<compile_context>
chip_gen: v5e
topology: v5e:2x2
jax: 0.10.0
libtpu: 0.0.40
codegen_flags: <defaults>
</compile_context>

<pallas_src>
import functools

import jax
import jax.numpy as jnp
from jax import lax
from jax.experimental import pallas as pl
from jax.experimental.pallas import tpu as pltpu


def _mhca_kernel(x_ref, cond_ref, mask_ref,
                 wq_ref, bq_ref, wkv_ref, bkv_ref, wp_ref, bp_ref,
                 o_ref,
                 q_s, kv_s, o_s, bias_s,
                 *, TQ, C, H, HD, KT, NKT, scale, unroll, exp_dtype):
    dtype = o_ref.dtype

    # ---- K/V projection + mask bias: once per batch element. ----
    # NOTE: kv_s / bias_s persistence across query tiles relies on the qi grid
    # axis being "arbitrary" (executed in order 0..NQT-1 on one core).  Do NOT
    # mark it parallel or reorder the grid axes without removing this hoist.
    @pl.when(pl.program_id(1) == 0)
    def _():
        cond = cond_ref[0]                                          # (L, C)
        kv = jnp.dot(cond, wkv_ref[...],
                     preferred_element_type=jnp.float32) + bkv_ref[...]
        kv_s[...] = kv.astype(dtype)                                # (L, 2C)
        m = mask_ref[0]                                             # (NKT, KT)
        bias_s[...] = jnp.where(m > 0, 0.0, -1e9).astype(jnp.float32)

    # ---- Q projection for this query tile (scale folded in, f32 math) ----
    x = x_ref[0]                                                    # (TQ, C)
    q = jnp.dot(x, wq_ref[...], preferred_element_type=jnp.float32)
    q_s[...] = ((q + bq_ref[...]) * scale).astype(dtype)

    # ---- per-head attention, flash-style online softmax over key tiles ----
    # Heads are lane slices of width HD; HD >= 128 (128-lane-aligned slabs) is
    # the MXU-efficient regime, smaller HD underfeeds the MXU N dimension.
    for h in range(H):                                              # static unroll
        lo = h * HD
        q_h = q_s[:, pl.ds(lo, HD)]                                 # (TQ, HD)

        def kt_body(t, carry):
            m_i, l_i, acc = carry
            off = pl.multiple_of(t * KT, KT)
            k_t = kv_s[pl.ds(off, KT), pl.ds(lo, HD)]               # (KT, HD)
            v_t = kv_s[pl.ds(off, KT), pl.ds(C + lo, HD)]           # (KT, HD)
            # s = q_h @ k_t^T (contract head_dim; no explicit transpose)
            s = lax.dot_general(q_h, k_t, (((1,), (1,)), ((), ())),
                                preferred_element_type=jnp.float32)  # (TQ, KT)
            s = s + bias_s[pl.ds(t, 1), :]                          # + (1, KT) bias
            m_new = jnp.maximum(m_i, s.max(axis=-1, keepdims=True))
            alpha = jnp.exp(m_i - m_new)
            # exp in exp_dtype (bf16 on v6e/v7x when running bf16 -> ~2x EUP
            # throughput; f32 otherwise).  l accumulates in f32.
            p = jnp.exp((s - m_new).astype(exp_dtype))
            l_new = alpha * l_i + p.sum(axis=-1, keepdims=True,
                                        dtype=jnp.float32)
            acc_new = alpha * acc + jnp.dot(p.astype(dtype), v_t,
                                            preferred_element_type=jnp.float32)
            return m_new, l_new, acc_new

        init = (jnp.full((TQ, 1), -jnp.inf, jnp.float32),
                jnp.zeros((TQ, 1), jnp.float32),
                jnp.zeros((TQ, HD), jnp.float32))
        m_i, l_i, acc = lax.fori_loop(0, NKT, kt_body, init, unroll=unroll)

        # Fold 1/l into the PV result; approx reciprocal = single EUP vrcp.
        out_h = acc * pl.reciprocal(l_i, approx=True)
        o_s[:, pl.ds(lo, HD)] = out_h.astype(dtype)

    # ---- output projection ----
    y = jnp.dot(o_s[...], wp_ref[...], preferred_element_type=jnp.float32)
    o_ref[0] = (y + bp_ref[...]).astype(dtype)


def masked_mhca(x, cond, wq, bq, wkv, bkv, wproj, bproj, mask=None, *,
                num_heads, query_tile=128, key_tile=256,
                softmax_exp_dtype=None):
    """Pallas forward for MaskedMultiHeadCrossAttention.

    x: (B, S, C), cond: (B, L, C), mask: (B, L) with 1 = attend, 0 = masked.
    Weights are (in, out): wq (C, C), wkv (C, 2C), wproj (C, C).
    key_tile=256 matches the 256-wide MXU on v6e/v7x (use 128-256 on v5e);
    query_tile can be raised to 256 on the 128 MiB parts once KT <= 256.
    softmax_exp_dtype: dtype used for the score exp (defaults to bf16 for
    bf16 inputs -> bf16 EUP on v6e/v7x; pass jnp.float32 on v5e).
    """
    B, S, C = x.shape
    L = cond.shape[1]
    assert cond.shape == (B, L, C)
    assert C % num_heads == 0
    H = num_heads
    HD = C // H
    scale = float(HD) ** -0.5
    dtype = x.dtype
    isz = jnp.dtype(dtype).itemsize
    pack = 32 // isz                      # sublane packing: 8 (f32) / 16 (bf16)

    TQ = query_tile if (query_tile <= S and S % query_tile == 0) else S
    KT = key_tile if (key_tile <= L and L % key_tile == 0) else L
    NQT, NKT = S // TQ, L // KT

    # Tile / slice alignment validation (8-sublane blocks, packed kv_s slices).
    assert TQ == S or TQ % 8 == 0, "query_tile must be a multiple of 8 or == S"
    assert KT == L or KT % pack == 0, (
        f"key_tile must be a multiple of {pack} for dtype {dtype} (or == L)")
    assert HD % 8 == 0, "head_dim must be a multiple of 8"

    if softmax_exp_dtype is None:
        softmax_exp_dtype = jnp.bfloat16 if dtype == jnp.bfloat16 else jnp.float32

    if mask is None:
        mask = jnp.ones((B, L), jnp.float32)
    mask_t = mask.astype(jnp.float32).reshape(B, NKT, KT)   # pre-tiled over key tiles

    wq = wq.astype(dtype)
    wkv = wkv.astype(dtype)
    wproj = wproj.astype(dtype)
    bq2 = bq.astype(dtype).reshape(1, C)
    bkv2 = bkv.astype(dtype).reshape(1, 2 * C)
    bp2 = bproj.astype(dtype).reshape(1, C)

    # Short loops fully unrolled; long loops get 2-deep partial unroll so the
    # LLO scheduler overlaps exp (EUP) of tile t with QK matmul (MXU) of t+1.
    unroll = NKT if NKT <= 8 else 2

    kernel = functools.partial(
        _mhca_kernel, TQ=TQ, C=C, H=H, HD=HD, KT=KT, NKT=NKT, scale=scale,
        unroll=unroll, exp_dtype=jnp.dtype(softmax_exp_dtype))

    # Generation-aware VMEM budget: x/out tiles double-buffered by the
    # pipeline, grid-invariant operands single-buffered, scratch once, plus
    # headroom for Mosaic internal scratch.
    try:
        vmem_cap = pltpu.get_tpu_info().vmem_capacity_bytes
    except Exception:                       # conservative default (v7x per-TC)
        vmem_cap = 64 << 20
    budget = int(0.85 * vmem_cap)
    dbuf = 2 * (TQ * C + TQ * C) * isz                        # x tile + out tile
    sbuf = (L * C + 4 * C * C + 4 * C) * isz + NKT * KT * 4   # cond + weights + mask
    scr = (2 * TQ * C + 2 * L * C) * isz + NKT * KT * 4       # q_s, o_s, kv_s, bias_s
    need = dbuf + sbuf + scr + (8 << 20)
    assert need <= budget, (
        f"steady-state VMEM footprint {need >> 20} MiB exceeds budget "
        f"{budget >> 20} MiB; reduce query_tile/key_tile or stream K/V")
    vmem_limit = int(min(max(need, 32 << 20), budget))

    def make_specs(inv_kwargs):
        # inv_kwargs = single-buffering request for grid-invariant operands.
        return [
            pl.BlockSpec((1, TQ, C), lambda b, qi: (b, qi, 0)),               # x (q tile)
            pl.BlockSpec((1, L, C), lambda b, qi: (b, 0, 0), **inv_kwargs),   # cond
            pl.BlockSpec((1, NKT, KT), lambda b, qi: (b, 0, 0), **inv_kwargs),  # mask
            pl.BlockSpec((C, C), lambda b, qi: (0, 0), **inv_kwargs),         # W_q
            pl.BlockSpec((1, C), lambda b, qi: (0, 0), **inv_kwargs),         # b_q
            pl.BlockSpec((C, 2 * C), lambda b, qi: (0, 0), **inv_kwargs),     # W_kv
            pl.BlockSpec((1, 2 * C), lambda b, qi: (0, 0), **inv_kwargs),     # b_kv
            pl.BlockSpec((C, C), lambda b, qi: (0, 0), **inv_kwargs),         # W_proj
            pl.BlockSpec((1, C), lambda b, qi: (0, 0), **inv_kwargs),         # b_proj
        ]

    def run(in_specs):
        return pl.pallas_call(
            kernel,
            out_shape=jax.ShapeDtypeStruct((B, S, C), dtype),
            grid_spec=pltpu.PrefetchScalarGridSpec(
                num_scalar_prefetch=0,
                grid=(B, NQT),
                in_specs=in_specs,
                out_specs=pl.BlockSpec((1, TQ, C), lambda b, qi: (b, qi, 0)),
                scratch_shapes=[
                    pltpu.VMEM((TQ, C), dtype),          # scaled q for this tile
                    pltpu.VMEM((L, 2 * C), dtype),       # kv (persists across q tiles)
                    pltpu.VMEM((TQ, C), dtype),          # per-head attention output
                    pltpu.VMEM((NKT, KT), jnp.float32),  # mask bias (persists)
                ]),
            compiler_params=pltpu.CompilerParams(
                dimension_semantics=("parallel", "arbitrary"),
                vmem_limit_bytes=vmem_limit),
        )(x, cond, mask_t, wq, bq2, wkv, bkv2, wproj, bp2)

    try:
        # Preferred path: single-buffer all grid-invariant operands (their
        # blocks never change within a batch element) -> halves their VMEM.
        return run(make_specs(dict(pipeline_mode=pl.Buffered(1))))
    except Exception:
        # Fallback for jax versions without BlockSpec.pipeline_mode support.
        return run(make_specs({}))


def _reference(x, cond, mask, wq, bq, wkv, bkv, wproj, bproj, *, num_heads):
    # Pure-JAX reference mirroring the PyTorch forward (masked cross-attention).
    B, S, C = x.shape
    L = cond.shape[1]
    HD = C // num_heads
    scale = HD ** -0.5
    q = x @ wq + bq                                   # (B, S, C)
    kv = cond @ wkv + bkv                             # (B, L, 2C)
    k, v = kv[..., :C], kv[..., C:]
    q = q.reshape(B, S, num_heads, HD).transpose(0, 2, 1, 3) * scale
    k = k.reshape(B, L, num_heads, HD).transpose(0, 2, 1, 3)
    v = v.reshape(B, L, num_heads, HD).transpose(0, 2, 1, 3)
    s = jnp.einsum('bhqd,bhkd->bhqk', q, k).astype(jnp.float32)
    if mask is not None:
        bias = jnp.where(mask > 0, 0.0, -1e9).astype(jnp.float32)   # (B, L)
        s = s + bias[:, None, None, :]
    p = jax.nn.softmax(s, axis=-1).astype(x.dtype)
    o = jnp.einsum('bhqk,bhkd->bhqd', p, v)
    o = o.transpose(0, 2, 1, 3).reshape(B, S, C)
    return o @ wproj + bproj


if __name__ == "__main__":
    B, S, L, d_model, num_heads = 2, 32, 32, 128, 4   # small, lane-dense (C=128)

    key = jax.random.PRNGKey(0)
    ks = jax.random.split(key, 9)
    x = jax.random.normal(ks[0], (B, S, d_model), jnp.float32)
    cond = jax.random.normal(ks[1], (B, L, d_model), jnp.float32)
    wq = 0.02 * jax.random.normal(ks[2], (d_model, d_model), jnp.float32)
    bq = 0.01 * jax.random.normal(ks[3], (d_model,), jnp.float32)
    wkv = 0.02 * jax.random.normal(ks[4], (d_model, 2 * d_model), jnp.float32)
    bkv = 0.01 * jax.random.normal(ks[5], (2 * d_model,), jnp.float32)
    wproj = 0.02 * jax.random.normal(ks[6], (d_model, d_model), jnp.float32)
    bproj = 0.01 * jax.random.normal(ks[7], (d_model,), jnp.float32)
    mask = (jax.random.uniform(ks[8], (B, L)) > 0.3).astype(jnp.float32)
    mask = mask.at[:, 0].set(1.0)                     # at least one valid key per row

    # query_tile=16 / key_tile=16 -> 2 query tiles x 2 key tiles per batch
    # element, exercising the pl.when hoisting and the online-softmax loop.
    out = masked_mhca(x, cond, wq, bq, wkv, bkv, wproj, bproj, mask,
                      num_heads=num_heads, query_tile=16, key_tile=16)
    out = jax.block_until_ready(out)

    ref = _reference(x, cond, mask, wq, bq, wkv, bkv, wproj, bproj,
                     num_heads=num_heads)
    assert out.shape == (B, S, d_model)
    # Tolerance slightly loosened vs exact-reciprocal version (EUP vrcp approx).
    assert jnp.allclose(out, ref, atol=1e-3, rtol=1e-3), \
        float(jnp.max(jnp.abs(out - ref)))

    # bf16 MXU + bf16-exp EUP path (v6e/v7x); f32 accumulation throughout.
    bf = jnp.bfloat16
    out_bf = masked_mhca(x.astype(bf), cond.astype(bf),
                         wq.astype(bf), bq.astype(bf),
                         wkv.astype(bf), bkv.astype(bf),
                         wproj.astype(bf), bproj.astype(bf),
                         mask, num_heads=num_heads, query_tile=16, key_tile=16)
    out_bf = jax.block_until_ready(out_bf).astype(jnp.float32)
    assert jnp.allclose(out_bf, ref, atol=2e-2, rtol=2e-2), \
        float(jnp.max(jnp.abs(out_bf - ref)))

    print("KERNEL_OK")
</pallas_src>

<mosaic_0001>
module attributes {stable_mosaic.version = 11 : i64} {
  func.func @_mhca_kernel(%arg0: i32, %arg1: i32, %arg2: memref<1x16x128xf32, #tpu.memory_space<vmem>>, %arg3: memref<1x32x128xf32, #tpu.memory_space<vmem>>, %arg4: memref<1x2x16xf32, #tpu.memory_space<vmem>>, %arg5: memref<128x128xf32, #tpu.memory_space<vmem>>, %arg6: memref<1x128xf32, #tpu.memory_space<vmem>>, %arg7: memref<128x256xf32, #tpu.memory_space<vmem>>, %arg8: memref<1x256xf32, #tpu.memory_space<vmem>>, %arg9: memref<128x128xf32, #tpu.memory_space<vmem>>, %arg10: memref<1x128xf32, #tpu.memory_space<vmem>>, %arg11: memref<1x16x128xf32, #tpu.memory_space<vmem>>, %arg12: memref<16x128xf32, #tpu.memory_space<vmem>>, %arg13: memref<32x256xf32, #tpu.memory_space<vmem>>, %arg14: memref<16x128xf32, #tpu.memory_space<vmem>>, %arg15: memref<2x16xf32, #tpu.memory_space<vmem>>) attributes {dimension_semantics = [#tpu.dimension_semantics<parallel>, #tpu.dimension_semantics<arbitrary>], iteration_bounds = array<i64: 2, 2>, scalar_prefetch = 0 : i64, scratch_operands = 4 : i64, tpu.core_type = #tpu.core_type<tc>, window_params = [{transform_indices = @transform_0, window_bounds = array<i64: 1, 16, 128>}, {pipeline_mode = #tpu.pipeline_mode<synchronous>, transform_indices = @transform_1, window_bounds = array<i64: 1, 32, 128>}, {pipeline_mode = #tpu.pipeline_mode<synchronous>, transform_indices = @transform_2, window_bounds = array<i64: 1, 2, 16>}, {pipeline_mode = #tpu.pipeline_mode<synchronous>, transform_indices = @transform_3, window_bounds = array<i64: 128, 128>}, {pipeline_mode = #tpu.pipeline_mode<synchronous>, transform_indices = @transform_4, window_bounds = array<i64: 1, 128>}, {pipeline_mode = #tpu.pipeline_mode<synchronous>, transform_indices = @transform_5, window_bounds = array<i64: 128, 256>}, {pipeline_mode = #tpu.pipeline_mode<synchronous>, transform_indices = @transform_6, window_bounds = array<i64: 1, 256>}, {pipeline_mode = #tpu.pipeline_mode<synchronous>, transform_indices = @transform_7, window_bounds = array<i64: 128, 128>}, {pipeline_mode = #tpu.pipeline_mode<synchronous>, transform_indices = @transform_8, window_bounds = array<i64: 1, 128>}, {transform_indices = @transform_9, window_bounds = array<i64: 1, 16, 128>}]} {
    %c0_i32 = arith.constant 0 : i32
    %0 = arith.cmpi eq, %arg1, %c0_i32 : i32
    %1 = arith.extui %0 : i1 to i32
    %c0_i32_0 = arith.constant 0 : i32
    %2 = arith.cmpi ne, %1, %c0_i32_0 : i32
    scf.if %2 {
      %c0_114 = arith.constant 0 : index
      %c0_115 = arith.constant 0 : index
      %c0_116 = arith.constant 0 : index
      %270 = vector.load %arg3[%c0_114, %c0_115, %c0_116] : memref<1x32x128xf32, #tpu.memory_space<vmem>>, vector<1x32x128xf32>
      %271 = vector.shape_cast %270 : vector<1x32x128xf32> to vector<32x128xf32>
      %c0_117 = arith.constant 0 : index
      %c0_118 = arith.constant 0 : index
      %272 = vector.load %arg7[%c0_117, %c0_118] : memref<128x256xf32, #tpu.memory_space<vmem>>, vector<128x256xf32>
      %cst_119 = arith.constant dense<0.000000e+00> : vector<32x256xf32>
      %273 = tpu.matmul %271, %272, %cst_119 {dimension_numbers = #tpu.dot_dimension_numbers<[1], [0], [0], [1], [0, 0, 1, 1], [], []>} : vector<32x128xf32>, vector<128x256xf32>, vector<32x256xf32> -> vector<32x256xf32>
      %c0_120 = arith.constant 0 : index
      %c0_121 = arith.constant 0 : index
      %274 = vector.load %arg8[%c0_120, %c0_121] : memref<1x256xf32, #tpu.memory_space<vmem>>, vector<1x256xf32>
      %275 = vector.broadcast %274 : vector<1x256xf32> to vector<32x256xf32>
      %276 = arith.addf %273, %275 : vector<32x256xf32>
      %c0_122 = arith.constant 0 : index
      %c0_123 = arith.constant 0 : index
      %277 = vector.load %arg13[%c0_122, %c0_123] : memref<32x256xf32, #tpu.memory_space<vmem>>, vector<32x256xf32>
      tpu.vector_store %arg13[%c0_122, %c0_123], %276 {strides = array<i32>} : memref<32x256xf32, #tpu.memory_space<vmem>>, vector<32x256xf32>,
      %c0_124 = arith.constant 0 : index
      %c0_125 = arith.constant 0 : index
      %c0_126 = arith.constant 0 : index
      %278 = vector.load %arg4[%c0_124, %c0_125, %c0_126] : memref<1x2x16xf32, #tpu.memory_space<vmem>>, vector<1x2x16xf32>
      %279 = vector.shape_cast %278 : vector<1x2x16xf32> to vector<2x16xf32>
      %cst_127 = arith.constant 0.000000e+00 : f32
      %280 = vector.broadcast %cst_127 : f32 to vector<2x16xf32>
      %281 = arith.cmpf ogt, %279, %280 : vector<2x16xf32>
      %cst_128 = arith.constant 0.000000e+00 : f32
      %cst_129 = arith.constant -1.000000e+09 : f32
      %282 = vector.broadcast %cst_128 : f32 to vector<2x16xf32>
      %283 = vector.broadcast %cst_129 : f32 to vector<2x16xf32>
      %284 = arith.select %281, %282, %283 : vector<2x16xi1>, vector<2x16xf32>
      %c0_130 = arith.constant 0 : index
      %c0_131 = arith.constant 0 : index
      %285 = vector.load %arg15[%c0_130, %c0_131] : memref<2x16xf32, #tpu.memory_space<vmem>>, vector<2x16xf32>
      tpu.vector_store %arg15[%c0_130, %c0_131], %284 {strides = array<i32>} : memref<2x16xf32, #tpu.memory_space<vmem>>, vector<2x16xf32>,
    } else {
    }
    %c0 = arith.constant 0 : index
    %c0_1 = arith.constant 0 : index
    %c0_2 = arith.constant 0 : index
    %3 = vector.load %arg2[%c0, %c0_1, %c0_2] : memref<1x16x128xf32, #tpu.memory_space<vmem>>, vector<1x16x128xf32>
    %4 = vector.shape_cast %3 : vector<1x16x128xf32> to vector<16x128xf32>
    %c0_3 = arith.constant 0 : index
    %c0_4 = arith.constant 0 : index
    %5 = vector.load %arg5[%c0_3, %c0_4] : memref<128x128xf32, #tpu.memory_space<vmem>>, vector<128x128xf32>
    %cst = arith.constant dense<0.000000e+00> : vector<16x128xf32>
    %6 = tpu.matmul %4, %5, %cst {dimension_numbers = #tpu.dot_dimension_numbers<[1], [0], [0], [1], [0, 0, 1, 1], [], []>} : vector<16x128xf32>, vector<128x128xf32>, vector<16x128xf32> -> vector<16x128xf32>
    %c0_5 = arith.constant 0 : index
    %c0_6 = arith.constant 0 : index
    %7 = vector.load %arg6[%c0_5, %c0_6] : memref<1x128xf32, #tpu.memory_space<vmem>>, vector<1x128xf32>
    %8 = vector.broadcast %7 : vector<1x128xf32> to vector<16x128xf32>
    %9 = arith.addf %6, %8 : vector<16x128xf32>
    %cst_7 = arith.constant 0.176776692 : f32
    %10 = vector.broadcast %cst_7 : f32 to vector<16x128xf32>
    %11 = arith.mulf %9, %10 : vector<16x128xf32>
    %c0_8 = arith.constant 0 : index
    %c0_9 = arith.constant 0 : index
    %12 = vector.load %arg12[%c0_8, %c0_9] : memref<16x128xf32, #tpu.memory_space<vmem>>, vector<16x128xf32>
    tpu.vector_store %arg12[%c0_8, %c0_9], %11 {strides = array<i32>} : memref<16x128xf32, #tpu.memory_space<vmem>>, vector<16x128xf32>,
    %c0_10 = arith.constant 0 : index
    %c0_11 = arith.constant 0 : index
    %13 = vector.load %arg12[%c0_10, %c0_11] : memref<16x128xf32, #tpu.memory_space<vmem>>, vector<16x32xf32>
    %cst_12 = arith.constant 0xFF800000 : f32
    %14 = vector.broadcast %cst_12 : f32 to vector<16x1xf32>
    %cst_13 = arith.constant 0.000000e+00 : f32
    %15 = vector.broadcast %cst_13 : f32 to vector<16x1xf32>
    %cst_14 = arith.constant 0.000000e+00 : f32
    %16 = vector.broadcast %cst_14 : f32 to vector<16x32xf32>
    %c0_i32_15 = arith.constant 0 : i32
    %c16_i32 = arith.constant 16 : i32
    %17 = arith.muli %c0_i32_15, %c16_i32 : i32
    %18 = tpu.assume_multiple %17, 16 : i32
    %19 = arith.index_cast %18 : i32 to index
    %c0_16 = arith.constant 0 : index
    %20 = vector.load %arg13[%19, %c0_16] : memref<32x256xf32, #tpu.memory_space<vmem>>, vector<16x32xf32>
    %21 = arith.index_cast %18 : i32 to index
    %c128 = arith.constant 128 : index
    %22 = vector.load %arg13[%21, %c128] : memref<32x256xf32, #tpu.memory_space<vmem>>, vector<16x32xf32>
    %cst_17 = arith.constant dense<0.000000e+00> : vector<16x16xf32>
    %23 = tpu.matmul %13, %20, %cst_17 {dimension_numbers = #tpu.dot_dimension_numbers<[1], [1], [0], [0], [0, 0, 1, 0], [], []>} : vector<16x32xf32>, vector<16x32xf32>, vector<16x16xf32> -> vector<16x16xf32>
    %24 = arith.index_cast %c0_i32_15 : i32 to index
    %c0_18 = arith.constant 0 : index
    %25 = vector.load %arg15[%24, %c0_18] : memref<2x16xf32, #tpu.memory_space<vmem>>, vector<1x16xf32>
    %26 = vector.broadcast %25 : vector<1x16xf32> to vector<16x16xf32>
    %27 = arith.addf %23, %26 : vector<16x16xf32>
    %cst_19 = arith.constant dense<0xFF800000> : vector<16xf32>
    %28 = vector.multi_reduction <maximumf>, %27, %cst_19 [1] : vector<16x16xf32> to vector<16xf32>
    %29 = vector.shape_cast %28 : vector<16xf32> to vector<16x1xf32>
    %30 = arith.maximumf %14, %29 : vector<16x1xf32>
    %31 = arith.subf %14, %30 : vector<16x1xf32>
    %32 = math.exp %31 : vector<16x1xf32>
    %33 = vector.broadcast %30 : vector<16x1xf32> to vector<16x16xf32>
    %34 = arith.subf %27, %33 : vector<16x16xf32>
    %35 = math.exp %34 : vector<16x16xf32>
    %36 = arith.mulf %32, %15 : vector<16x1xf32>
    %cst_20 = arith.constant dense<0.000000e+00> : vector<16xf32>
    %37 = vector.multi_reduction <add>, %35, %cst_20 [1] : vector<16x16xf32> to vector<16xf32>
    %38 = vector.shape_cast %37 : vector<16xf32> to vector<16x1xf32>
    %39 = arith.addf %36, %38 : vector<16x1xf32>
    %40 = vector.broadcast %32 : vector<16x1xf32> to vector<16x32xf32>
    %41 = arith.mulf %40, %16 : vector<16x32xf32>
    %cst_21 = arith.constant dense<0.000000e+00> : vector<16x32xf32>
    %42 = tpu.matmul %35, %22, %cst_21 {dimension_numbers = #tpu.dot_dimension_numbers<[1], [0], [0], [1], [0, 0, 1, 1], [], []>} : vector<16x16xf32>, vector<16x32xf32>, vector<16x32xf32> -> vector<16x32xf32>
    %43 = arith.addf %41, %42 : vector<16x32xf32>
    %c1_i32 = arith.constant 1 : i32
    %c16_i32_22 = arith.constant 16 : i32
    %44 = arith.muli %c1_i32, %c16_i32_22 : i32
    %45 = tpu.assume_multiple %44, 16 : i32
    %46 = arith.index_cast %45 : i32 to index
    %c0_23 = arith.constant 0 : index
    %47 = vector.load %arg13[%46, %c0_23] : memref<32x256xf32, #tpu.memory_space<vmem>>, vector<16x32xf32>
    %48 = arith.index_cast %45 : i32 to index
    %c128_24 = arith.constant 128 : index
    %49 = vector.load %arg13[%48, %c128_24] : memref<32x256xf32, #tpu.memory_space<vmem>>, vector<16x32xf32>
    %cst_25 = arith.constant dense<0.000000e+00> : vector<16x16xf32>
    %50 = tpu.matmul %13, %47, %cst_25 {dimension_numbers = #tpu.dot_dimension_numbers<[1], [1], [0], [0], [0, 0, 1, 0], [], []>} : vector<16x32xf32>, vector<16x32xf32>, vector<16x16xf32> -> vector<16x16xf32>
    %51 = arith.index_cast %c1_i32 : i32 to index
    %c0_26 = arith.constant 0 : index
    %52 = vector.load %arg15[%51, %c0_26] : memref<2x16xf32, #tpu.memory_space<vmem>>, vector<1x16xf32>
    %53 = vector.broadcast %52 : vector<1x16xf32> to vector<16x16xf32>
    %54 = arith.addf %50, %53 : vector<16x16xf32>
    %cst_27 = arith.constant dense<0xFF800000> : vector<16xf32>
    %55 = vector.multi_reduction <maximumf>, %54, %cst_27 [1] : vector<16x16xf32> to vector<16xf32>
    %56 = vector.shape_cast %55 : vector<16xf32> to vector<16x1xf32>
    %57 = arith.maximumf %30, %56 : vector<16x1xf32>
    %58 = arith.subf %30, %57 : vector<16x1xf32>
    %59 = math.exp %58 : vector<16x1xf32>
    %60 = vector.broadcast %57 : vector<16x1xf32> to vector<16x16xf32>
    %61 = arith.subf %54, %60 : vector<16x16xf32>
    %62 = math.exp %61 : vector<16x16xf32>
    %63 = arith.mulf %59, %39 : vector<16x1xf32>
    %cst_28 = arith.constant dense<0.000000e+00> : vector<16xf32>
    %64 = vector.multi_reduction <add>, %62, %cst_28 [1] : vector<16x16xf32> to vector<16xf32>
    %65 = vector.shape_cast %64 : vector<16xf32> to vector<16x1xf32>
    %66 = arith.addf %63, %65 : vector<16x1xf32>
    %67 = vector.broadcast %59 : vector<16x1xf32> to vector<16x32xf32>
    %68 = arith.mulf %67, %43 : vector<16x32xf32>
    %cst_29 = arith.constant dense<0.000000e+00> : vector<16x32xf32>
    %69 = tpu.matmul %62, %49, %cst_29 {dimension_numbers = #tpu.dot_dimension_numbers<[1], [0], [0], [1], [0, 0, 1, 1], [], []>} : vector<16x16xf32>, vector<16x32xf32>, vector<16x32xf32> -> vector<16x32xf32>
    %70 = arith.addf %68, %69 : vector<16x32xf32>
    %c2_i32 = arith.constant 2 : i32
    %71 = tpu.reciprocal %66 {approx = true} : vector<16x1xf32> -> vector<16x1xf32>
    %72 = vector.broadcast %71 : vector<16x1xf32> to vector<16x32xf32>
    %73 = arith.mulf %70, %72 : vector<16x32xf32>
    %c0_30 = arith.constant 0 : index
    %c0_31 = arith.constant 0 : index
    %74 = vector.load %arg14[%c0_30, %c0_31] : memref<16x128xf32, #tpu.memory_space<vmem>>, vector<16x32xf32>
    tpu.vector_store %arg14[%c0_30, %c0_31], %73 {strides = array<i32>} : memref<16x128xf32, #tpu.memory_space<vmem>>, vector<16x32xf32>,
    %c0_32 = arith.constant 0 : index
    %c32 = arith.constant 32 : index
    %75 = vector.load %arg12[%c0_32, %c32] : memref<16x128xf32, #tpu.memory_space<vmem>>, vector<16x32xf32>
    %cst_33 = arith.constant 0xFF800000 : f32
    %76 = vector.broadcast %cst_33 : f32 to vector<16x1xf32>
    %cst_34 = arith.constant 0.000000e+00 : f32
    %77 = vector.broadcast %cst_34 : f32 to vector<16x1xf32>
    %cst_35 = arith.constant 0.000000e+00 : f32
    %78 = vector.broadcast %cst_35 : f32 to vector<16x32xf32>
    %c0_i32_36 = arith.constant 0 : i32
    %c16_i32_37 = arith.constant 16 : i32
    %79 = arith.muli %c0_i32_36, %c16_i32_37 : i32
    %80 = tpu.assume_multiple %79, 16 : i32
    %81 = arith.index_cast %80 : i32 to index
    %c32_38 = arith.constant 32 : index
    %82 = vector.load %arg13[%81, %c32_38] : memref<32x256xf32, #tpu.memory_space<vmem>>, vector<16x32xf32>
    %83 = arith.index_cast %80 : i32 to index
    %c160 = arith.constant 160 : index
    %84 = vector.load %arg13[%83, %c160] : memref<32x256xf32, #tpu.memory_space<vmem>>, vector<16x32xf32>
    %cst_39 = arith.constant dense<0.000000e+00> : vector<16x16xf32>
    %85 = tpu.matmul %75, %82, %cst_39 {dimension_numbers = #tpu.dot_dimension_numbers<[1], [1], [0], [0], [0, 0, 1, 0], [], []>} : vector<16x32xf32>, vector<16x32xf32>, vector<16x16xf32> -> vector<16x16xf32>
    %86 = arith.index_cast %c0_i32_36 : i32 to index
    %c0_40 = arith.constant 0 : index
    %87 = vector.load %arg15[%86, %c0_40] : memref<2x16xf32, #tpu.memory_space<vmem>>, vector<1x16xf32>
    %88 = vector.broadcast %87 : vector<1x16xf32> to vector<16x16xf32>
    %89 = arith.addf %85, %88 : vector<16x16xf32>
    %cst_41 = arith.constant dense<0xFF800000> : vector<16xf32>
    %90 = vector.multi_reduction <maximumf>, %89, %cst_41 [1] : vector<16x16xf32> to vector<16xf32>
    %91 = vector.shape_cast %90 : vector<16xf32> to vector<16x1xf32>
    %92 = arith.maximumf %76, %91 : vector<16x1xf32>
    %93 = arith.subf %76, %92 : vector<16x1xf32>
    %94 = math.exp %93 : vector<16x1xf32>
    %95 = vector.broadcast %92 : vector<16x1xf32> to vector<16x16xf32>
    %96 = arith.subf %89, %95 : vector<16x16xf32>
    %97 = math.exp %96 : vector<16x16xf32>
    %98 = arith.mulf %94, %77 : vector<16x1xf32>
    %cst_42 = arith.constant dense<0.000000e+00> : vector<16xf32>
    %99 = vector.multi_reduction <add>, %97, %cst_42 [1] : vector<16x16xf32> to vector<16xf32>
    %100 = vector.shape_cast %99 : vector<16xf32> to vector<16x1xf32>
    %101 = arith.addf %98, %100 : vector<16x1xf32>
    %102 = vector.broadcast %94 : vector<16x1xf32> to vector<16x32xf32>
    %103 = arith.mulf %102, %78 : vector<16x32xf32>
    %cst_43 = arith.constant dense<0.000000e+00> : vector<16x32xf32>
    %104 = tpu.matmul %97, %84, %cst_43 {dimension_numbers = #tpu.dot_dimension_numbers<[1], [0], [0], [1], [0, 0, 1, 1], [], []>} : vector<16x16xf32>, vector<16x32xf32>, vector<16x32xf32> -> vector<16x32xf32>
    %105 = arith.addf %103, %104 : vector<16x32xf32>
    %c1_i32_44 = arith.constant 1 : i32
    %c16_i32_45 = arith.constant 16 : i32
    %106 = arith.muli %c1_i32_44, %c16_i32_45 : i32
    %107 = tpu.assume_multiple %106, 16 : i32
    %108 = arith.index_cast %107 : i32 to index
    %c32_46 = arith.constant 32 : index
    %109 = vector.load %arg13[%108, %c32_46] : memref<32x256xf32, #tpu.memory_space<vmem>>, vector<16x32xf32>
    %110 = arith.index_cast %107 : i32 to index
    %c160_47 = arith.constant 160 : index
    %111 = vector.load %arg13[%110, %c160_47] : memref<32x256xf32, #tpu.memory_space<vmem>>, vector<16x32xf32>
    %cst_48 = arith.constant dense<0.000000e+00> : vector<16x16xf32>
    %112 = tpu.matmul %75, %109, %cst_48 {dimension_numbers = #tpu.dot_dimension_numbers<[1], [1], [0], [0], [0, 0, 1, 0], [], []>} : vector<16x32xf32>, vector<16x32xf32>, vector<16x16xf32> -> vector<16x16xf32>
    %113 = arith.index_cast %c1_i32_44 : i32 to index
    %c0_49 = arith.constant 0 : index
    %114 = vector.load %arg15[%113, %c0_49] : memref<2x16xf32, #tpu.memory_space<vmem>>, vector<1x16xf32>
    %115 = vector.broadcast %114 : vector<1x16xf32> to vector<16x16xf32>
    %116 = arith.addf %112, %115 : vector<16x16xf32>
    %cst_50 = arith.constant dense<0xFF800000> : vector<16xf32>
    %117 = vector.multi_reduction <maximumf>, %116, %cst_50 [1] : vector<16x16xf32> to vector<16xf32>
    %118 = vector.shape_cast %117 : vector<16xf32> to vector<16x1xf32>
    %119 = arith.maximumf %92, %118 : vector<16x1xf32>
    %120 = arith.subf %92, %119 : vector<16x1xf32>
    %121 = math.exp %120 : vector<16x1xf32>
    %122 = vector.broadcast %119 : vector<16x1xf32> to vector<16x16xf32>
    %123 = arith.subf %116, %122 : vector<16x16xf32>
    %124 = math.exp %123 : vector<16x16xf32>
    %125 = arith.mulf %121, %101 : vector<16x1xf32>
    %cst_51 = arith.constant dense<0.000000e+00> : vector<16xf32>
    %126 = vector.multi_reduction <add>, %124, %cst_51 [1] : vector<16x16xf32> to vector<16xf32>
    %127 = vector.shape_cast %126 : vector<16xf32> to vector<16x1xf32>
    %128 = arith.addf %125, %127 : vector<16x1xf32>
    %129 = vector.broadcast %121 : vector<16x1xf32> to vector<16x32xf32>
    %130 = arith.mulf %129, %105 : vector<16x32xf32>
    %cst_52 = arith.constant dense<0.000000e+00> : vector<16x32xf32>
    %131 = tpu.matmul %124, %111, %cst_52 {dimension_numbers = #tpu.dot_dimension_numbers<[1], [0], [0], [1], [0, 0, 1, 1], [], []>} : vector<16x16xf32>, vector<16x32xf32>, vector<16x32xf32> -> vector<16x32xf32>
    %132 = arith.addf %130, %131 : vector<16x32xf32>
    %c2_i32_53 = arith.constant 2 : i32
    %133 = tpu.reciprocal %128 {approx = true} : vector<16x1xf32> -> vector<16x1xf32>
    %134 = vector.broadcast %133 : vector<16x1xf32> to vector<16x32xf32>
    %135 = arith.mulf %132, %134 : vector<16x32xf32>
    %c0_54 = arith.constant 0 : index
    %c32_55 = arith.constant 32 : index
    %136 = vector.load %arg14[%c0_54, %c32_55] : memref<16x128xf32, #tpu.memory_space<vmem>>, vector<16x32xf32>
    tpu.vector_store %arg14[%c0_54, %c32_55], %135 {strides = array<i32>} : memref<16x128xf32, #tpu.memory_space<vmem>>, vector<16x32xf32>,
    %c0_56 = arith.constant 0 : index
    %c64 = arith.constant 64 : index
    %137 = vector.load %arg12[%c0_56, %c64] : memref<16x128xf32, #tpu.memory_space<vmem>>, vector<16x32xf32>
    %cst_57 = arith.constant 0xFF800000 : f32
    %138 = vector.broadcast %cst_57 : f32 to vector<16x1xf32>
    %cst_58 = arith.constant 0.000000e+00 : f32
    %139 = vector.broadcast %cst_58 : f32 to vector<16x1xf32>
    %cst_59 = arith.constant 0.000000e+00 : f32
    %140 = vector.broadcast %cst_59 : f32 to vector<16x32xf32>
    %c0_i32_60 = arith.constant 0 : i32
    %c16_i32_61 = arith.constant 16 : i32
    %141 = arith.muli %c0_i32_60, %c16_i32_61 : i32
    %142 = tpu.assume_multiple %141, 16 : i32
    %143 = arith.index_cast %142 : i32 to index
    %c64_62 = arith.constant 64 : index
    %144 = vector.load %arg13[%143, %c64_62] : memref<32x256xf32, #tpu.memory_space<vmem>>, vector<16x32xf32>
    %145 = arith.index_cast %142 : i32 to index
    %c192 = arith.constant 192 : index
    %146 = vector.load %arg13[%145, %c192] : memref<32x256xf32, #tpu.memory_space<vmem>>, vector<16x32xf32>
    %cst_63 = arith.constant dense<0.000000e+00> : vector<16x16xf32>
    %147 = tpu.matmul %137, %144, %cst_63 {dimension_numbers = #tpu.dot_dimension_numbers<[1], [1], [0], [0], [0, 0, 1, 0], [], []>} : vector<16x32xf32>, vector<16x32xf32>, vector<16x16xf32> -> vector<16x16xf32>
    %148 = arith.index_cast %c0_i32_60 : i32 to index
    %c0_64 = arith.constant 0 : index
    %149 = vector.load %arg15[%148, %c0_64] : memref<2x16xf32, #tpu.memory_space<vmem>>, vector<1x16xf32>
    %150 = vector.broadcast %149 : vector<1x16xf32> to vector<16x16xf32>
    %151 = arith.addf %147, %150 : vector<16x16xf32>
    %cst_65 = arith.constant dense<0xFF800000> : vector<16xf32>
    %152 = vector.multi_reduction <maximumf>, %151, %cst_65 [1] : vector<16x16xf32> to vector<16xf32>
    %153 = vector.shape_cast %152 : vector<16xf32> to vector<16x1xf32>
    %154 = arith.maximumf %138, %153 : vector<16x1xf32>
    %155 = arith.subf %138, %154 : vector<16x1xf32>
    %156 = math.exp %155 : vector<16x1xf32>
    %157 = vector.broadcast %154 : vector<16x1xf32> to vector<16x16xf32>
    %158 = arith.subf %151, %157 : vector<16x16xf32>
    %159 = math.exp %158 : vector<16x16xf32>
    %160 = arith.mulf %156, %139 : vector<16x1xf32>
    %cst_66 = arith.constant dense<0.000000e+00> : vector<16xf32>
    %161 = vector.multi_reduction <add>, %159, %cst_66 [1] : vector<16x16xf32> to vector<16xf32>
    %162 = vector.shape_cast %161 : vector<16xf32> to vector<16x1xf32>
    %163 = arith.addf %160, %162 : vector<16x1xf32>
    %164 = vector.broadcast %156 : vector<16x1xf32> to vector<16x32xf32>
    %165 = arith.mulf %164, %140 : vector<16x32xf32>
    %cst_67 = arith.constant dense<0.000000e+00> : vector<16x32xf32>
    %166 = tpu.matmul %159, %146, %cst_67 {dimension_numbers = #tpu.dot_dimension_numbers<[1], [0], [0], [1], [0, 0, 1, 1], [], []>} : vector<16x16xf32>, vector<16x32xf32>, vector<16x32xf32> -> vector<16x32xf32>
    %167 = arith.addf %165, %166 : vector<16x32xf32>
    %c1_i32_68 = arith.constant 1 : i32
    %c16_i32_69 = arith.constant 16 : i32
    %168 = arith.muli %c1_i32_68, %c16_i32_69 : i32
    %169 = tpu.assume_multiple %168, 16 : i32
    %170 = arith.index_cast %169 : i32 to index
    %c64_70 = arith.constant 64 : index
    %171 = vector.load %arg13[%170, %c64_70] : memref<32x256xf32, #tpu.memory_space<vmem>>, vector<16x32xf32>
    %172 = arith.index_cast %169 : i32 to index
    %c192_71 = arith.constant 192 : index
    %173 = vector.load %arg13[%172, %c192_71] : memref<32x256xf32, #tpu.memory_space<vmem>>, vector<16x32xf32>
    %cst_72 = arith.constant dense<0.000000e+00> : vector<16x16xf32>
    %174 = tpu.matmul %137, %171, %cst_72 {dimension_numbers = #tpu.dot_dimension_numbers<[1], [1], [0], [0], [0, 0, 1, 0], [], []>} : vector<16x32xf32>, vector<16x32xf32>, vector<16x16xf32> -> vector<16x16xf32>
    %175 = arith.index_cast %c1_i32_68 : i32 to index
    %c0_73 = arith.constant 0 : index
    %176 = vector.load %arg15[%175, %c0_73] : memref<2x16xf32, #tpu.memory_space<vmem>>, vector<1x16xf32>
    %177 = vector.broadcast %176 : vector<1x16xf32> to vector<16x16xf32>
    %178 = arith.addf %174, %177 : vector<16x16xf32>
    %cst_74 = arith.constant dense<0xFF800000> : vector<16xf32>
    %179 = vector.multi_reduction <maximumf>, %178, %cst_74 [1] : vector<16x16xf32> to vector<16xf32>
    %180 = vector.shape_cast %179 : vector<16xf32> to vector<16x1xf32>
    %181 = arith.maximumf %154, %180 : vector<16x1xf32>
    %182 = arith.subf %154, %181 : vector<16x1xf32>
    %183 = math.exp %182 : vector<16x1xf32>
    %184 = vector.broadcast %181 : vector<16x1xf32> to vector<16x16xf32>
    %185 = arith.subf %178, %184 : vector<16x16xf32>
    %186 = math.exp %185 : vector<16x16xf32>
    %187 = arith.mulf %183, %163 : vector<16x1xf32>
    %cst_75 = arith.constant dense<0.000000e+00> : vector<16xf32>
    %188 = vector.multi_reduction <add>, %186, %cst_75 [1] : vector<16x16xf32> to vector<16xf32>
    %189 = vector.shape_cast %188 : vector<16xf32> to vector<16x1xf32>
    %190 = arith.addf %187, %189 : vector<16x1xf32>
    %191 = vector.broadcast %183 : vector<16x1xf32> to vector<16x32xf32>
    %192 = arith.mulf %191, %167 : vector<16x32xf32>
    %cst_76 = arith.constant dense<0.000000e+00> : vector<16x32xf32>
    %193 = tpu.matmul %186, %173, %cst_76 {dimension_numbers = #tpu.dot_dimension_numbers<[1], [0], [0], [1], [0, 0, 1, 1], [], []>} : vector<16x16xf32>, vector<16x32xf32>, vector<16x32xf32> -> vector<16x32xf32>
    %194 = arith.addf %192, %193 : vector<16x32xf32>
    %c2_i32_77 = arith.constant 2 : i32
    %195 = tpu.reciprocal %190 {approx = true} : vector<16x1xf32> -> vector<16x1xf32>
    %196 = vector.broadcast %195 : vector<16x1xf32> to vector<16x32xf32>
    %197 = arith.mulf %194, %196 : vector<16x32xf32>
    %c0_78 = arith.constant 0 : index
    %c64_79 = arith.constant 64 : index
    %198 = vector.load %arg14[%c0_78, %c64_79] : memref<16x128xf32, #tpu.memory_space<vmem>>, vector<16x32xf32>
    tpu.vector_store %arg14[%c0_78, %c64_79], %197 {strides = array<i32>} : memref<16x128xf32, #tpu.memory_space<vmem>>, vector<16x32xf32>,
    %c0_80 = arith.constant 0 : index
    %c96 = arith.constant 96 : index
    %199 = vector.load %arg12[%c0_80, %c96] : memref<16x128xf32, #tpu.memory_space<vmem>>, vector<16x32xf32>
    %cst_81 = arith.constant 0xFF800000 : f32
    %200 = vector.broadcast %cst_81 : f32 to vector<16x1xf32>
    %cst_82 = arith.constant 0.000000e+00 : f32
    %201 = vector.broadcast %cst_82 : f32 to vector<16x1xf32>
    %cst_83 = arith.constant 0.000000e+00 : f32
    %202 = vector.broadcast %cst_83 : f32 to vector<16x32xf32>
    %c0_i32_84 = arith.constant 0 : i32
    %c16_i32_85 = arith.constant 16 : i32
    %203 = arith.muli %c0_i32_84, %c16_i32_85 : i32
    %204 = tpu.assume_multiple %203, 16 : i32
    %205 = arith.index_cast %204 : i32 to index
    %c96_86 = arith.constant 96 : index
    %206 = vector.load %arg13[%205, %c96_86] : memref<32x256xf32, #tpu.memory_space<vmem>>, vector<16x32xf32>
    %207 = arith.index_cast %204 : i32 to index
    %c224 = arith.constant 224 : index
    %208 = vector.load %arg13[%207, %c224] : memref<32x256xf32, #tpu.memory_space<vmem>>, vector<16x32xf32>
    %cst_87 = arith.constant dense<0.000000e+00> : vector<16x16xf32>
    %209 = tpu.matmul %199, %206, %cst_87 {dimension_numbers = #tpu.dot_dimension_numbers<[1], [1], [0], [0], [0, 0, 1, 0], [], []>} : vector<16x32xf32>, vector<16x32xf32>, vector<16x16xf32> -> vector<16x16xf32>
    %210 = arith.index_cast %c0_i32_84 : i32 to index
    %c0_88 = arith.constant 0 : index
    %211 = vector.load %arg15[%210, %c0_88] : memref<2x16xf32, #tpu.memory_space<vmem>>, vector<1x16xf32>
    %212 = vector.broadcast %211 : vector<1x16xf32> to vector<16x16xf32>
    %213 = arith.addf %209, %212 : vector<16x16xf32>
    %cst_89 = arith.constant dense<0xFF800000> : vector<16xf32>
    %214 = vector.multi_reduction <maximumf>, %213, %cst_89 [1] : vector<16x16xf32> to vector<16xf32>
    %215 = vector.shape_cast %214 : vector<16xf32> to vector<16x1xf32>
    %216 = arith.maximumf %200, %215 : vector<16x1xf32>
    %217 = arith.subf %200, %216 : vector<16x1xf32>
    %218 = math.exp %217 : vector<16x1xf32>
    %219 = vector.broadcast %216 : vector<16x1xf32> to vector<16x16xf32>
    %220 = arith.subf %213, %219 : vector<16x16xf32>
    %221 = math.exp %220 : vector<16x16xf32>
    %222 = arith.mulf %218, %201 : vector<16x1xf32>
    %cst_90 = arith.constant dense<0.000000e+00> : vector<16xf32>
    %223 = vector.multi_reduction <add>, %221, %cst_90 [1] : vector<16x16xf32> to vector<16xf32>
    %224 = vector.shape_cast %223 : vector<16xf32> to vector<16x1xf32>
    %225 = arith.addf %222, %224 : vector<16x1xf32>
    %226 = vector.broadcast %218 : vector<16x1xf32> to vector<16x32xf32>
    %227 = arith.mulf %226, %202 : vector<16x32xf32>
    %cst_91 = arith.constant dense<0.000000e+00> : vector<16x32xf32>
    %228 = tpu.matmul %221, %208, %cst_91 {dimension_numbers = #tpu.dot_dimension_numbers<[1], [0], [0], [1], [0, 0, 1, 1], [], []>} : vector<16x16xf32>, vector<16x32xf32>, vector<16x32xf32> -> vector<16x32xf32>
    %229 = arith.addf %227, %228 : vector<16x32xf32>
    %c1_i32_92 = arith.constant 1 : i32
    %c16_i32_93 = arith.constant 16 : i32
    %230 = arith.muli %c1_i32_92, %c16_i32_93 : i32
    %231 = tpu.assume_multiple %230, 16 : i32
    %232 = arith.index_cast %231 : i32 to index
    %c96_94 = arith.constant 96 : index
    %233 = vector.load %arg13[%232, %c96_94] : memref<32x256xf32, #tpu.memory_space<vmem>>, vector<16x32xf32>
    %234 = arith.index_cast %231 : i32 to index
    %c224_95 = arith.constant 224 : index
    %235 = vector.load %arg13[%234, %c224_95] : memref<32x256xf32, #tpu.memory_space<vmem>>, vector<16x32xf32>
    %cst_96 = arith.constant dense<0.000000e+00> : vector<16x16xf32>
    %236 = tpu.matmul %199, %233, %cst_96 {dimension_numbers = #tpu.dot_dimension_numbers<[1], [1], [0], [0], [0, 0, 1, 0], [], []>} : vector<16x32xf32>, vector<16x32xf32>, vector<16x16xf32> -> vector<16x16xf32>
    %237 = arith.index_cast %c1_i32_92 : i32 to index
    %c0_97 = arith.constant 0 : index
    %238 = vector.load %arg15[%237, %c0_97] : memref<2x16xf32, #tpu.memory_space<vmem>>, vector<1x16xf32>
    %239 = vector.broadcast %238 : vector<1x16xf32> to vector<16x16xf32>
    %240 = arith.addf %236, %239 : vector<16x16xf32>
    %cst_98 = arith.constant dense<0xFF800000> : vector<16xf32>
    %241 = vector.multi_reduction <maximumf>, %240, %cst_98 [1] : vector<16x16xf32> to vector<16xf32>
    %242 = vector.shape_cast %241 : vector<16xf32> to vector<16x1xf32>
    %243 = arith.maximumf %216, %242 : vector<16x1xf32>
    %244 = arith.subf %216, %243 : vector<16x1xf32>
    %245 = math.exp %244 : vector<16x1xf32>
    %246 = vector.broadcast %243 : vector<16x1xf32> to vector<16x16xf32>
    %247 = arith.subf %240, %246 : vector<16x16xf32>
    %248 = math.exp %247 : vector<16x16xf32>
    %249 = arith.mulf %245, %225 : vector<16x1xf32>
    %cst_99 = arith.constant dense<0.000000e+00> : vector<16xf32>
    %250 = vector.multi_reduction <add>, %248, %cst_99 [1] : vector<16x16xf32> to vector<16xf32>
    %251 = vector.shape_cast %250 : vector<16xf32> to vector<16x1xf32>
    %252 = arith.addf %249, %251 : vector<16x1xf32>
    %253 = vector.broadcast %245 : vector<16x1xf32> to vector<16x32xf32>
    %254 = arith.mulf %253, %229 : vector<16x32xf32>
    %cst_100 = arith.constant dense<0.000000e+00> : vector<16x32xf32>
    %255 = tpu.matmul %248, %235, %cst_100 {dimension_numbers = #tpu.dot_dimension_numbers<[1], [0], [0], [1], [0, 0, 1, 1], [], []>} : vector<16x16xf32>, vector<16x32xf32>, vector<16x32xf32> -> vector<16x32xf32>
    %256 = arith.addf %254, %255 : vector<16x32xf32>
    %c2_i32_101 = arith.constant 2 : i32
    %257 = tpu.reciprocal %252 {approx = true} : vector<16x1xf32> -> vector<16x1xf32>
    %258 = vector.broadcast %257 : vector<16x1xf32> to vector<16x32xf32>
    %259 = arith.mulf %256, %258 : vector<16x32xf32>
    %c0_102 = arith.constant 0 : index
    %c96_103 = arith.constant 96 : index
    %260 = vector.load %arg14[%c0_102, %c96_103] : memref<16x128xf32, #tpu.memory_space<vmem>>, vector<16x32xf32>
    tpu.vector_store %arg14[%c0_102, %c96_103], %259 {strides = array<i32>} : memref<16x128xf32, #tpu.memory_space<vmem>>, vector<16x32xf32>,
    %c0_104 = arith.constant 0 : index
    %c0_105 = arith.constant 0 : index
    %261 = vector.load %arg14[%c0_104, %c0_105] : memref<16x128xf32, #tpu.memory_space<vmem>>, vector<16x128xf32>
    %c0_106 = arith.constant 0 : index
    %c0_107 = arith.constant 0 : index
    %262 = vector.load %arg9[%c0_106, %c0_107] : memref<128x128xf32, #tpu.memory_space<vmem>>, vector<128x128xf32>
    %cst_108 = arith.constant dense<0.000000e+00> : vector<16x128xf32>
    %263 = tpu.matmul %261, %262, %cst_108 {dimension_numbers = #tpu.dot_dimension_numbers<[1], [0], [0], [1], [0, 0, 1, 1], [], []>} : vector<16x128xf32>, vector<128x128xf32>, vector<16x128xf32> -> vector<16x128xf32>
    %c0_109 = arith.constant 0 : index
    %c0_110 = arith.constant 0 : index
    %264 = vector.load %arg10[%c0_109, %c0_110] : memref<1x128xf32, #tpu.memory_space<vmem>>, vector<1x128xf32>
    %265 = vector.broadcast %264 : vector<1x128xf32> to vector<16x128xf32>
    %266 = arith.addf %263, %265 : vector<16x128xf32>
    %c0_111 = arith.constant 0 : index
    %c0_112 = arith.constant 0 : index
    %c0_113 = arith.constant 0 : index
    %267 = vector.load %arg11[%c0_111, %c0_112, %c0_113] : memref<1x16x128xf32, #tpu.memory_space<vmem>>, vector<1x16x128xf32>
    %268 = vector.shape_cast %267 : vector<1x16x128xf32> to vector<16x128xf32>
    %269 = vector.shape_cast %266 : vector<16x128xf32> to vector<1x16x128xf32>
    tpu.vector_store %arg11[%c0_111, %c0_112, %c0_113], %269 {strides = array<i32>} : memref<1x16x128xf32, #tpu.memory_space<vmem>>, vector<1x16x128xf32>,
    return
  }
  func.func @transform_0(%arg0: i32, %arg1: i32) -> (i32, i32, i32) {
    %c0_i32 = arith.constant 0 : i32
    %c0_i32_0 = arith.constant 0 : i32
    return %arg0, %arg1, %c0_i32 : i32, i32, i32
  }
  func.func @transform_1(%arg0: i32, %arg1: i32) -> (i32, i32, i32) {
    %c0_i32 = arith.constant 0 : i32
    %c0_i32_0 = arith.constant 0 : i32
    %c0_i32_1 = arith.constant 0 : i32
    return %arg0, %c0_i32, %c0_i32_0 : i32, i32, i32
  }
  func.func @transform_2(%arg0: i32, %arg1: i32) -> (i32, i32, i32) {
    %c0_i32 = arith.constant 0 : i32
    %c0_i32_0 = arith.constant 0 : i32
    %c0_i32_1 = arith.constant 0 : i32
    return %arg0, %c0_i32, %c0_i32_0 : i32, i32, i32
  }
  func.func @transform_3(%arg0: i32, %arg1: i32) -> (i32, i32) {
    %c0_i32 = arith.constant 0 : i32
    %c0_i32_0 = arith.constant 0 : i32
    %c0_i32_1 = arith.constant 0 : i32
    return %c0_i32, %c0_i32_0 : i32, i32
  }
  func.func @transform_4(%arg0: i32, %arg1: i32) -> (i32, i32) {
    %c0_i32 = arith.constant 0 : i32
    %c0_i32_0 = arith.constant 0 : i32
    %c0_i32_1 = arith.constant 0 : i32
    return %c0_i32, %c0_i32_0 : i32, i32
  }
  func.func @transform_5(%arg0: i32, %arg1: i32) -> (i32, i32) {
    %c0_i32 = arith.constant 0 : i32
    %c0_i32_0 = arith.constant 0 : i32
    %c0_i32_1 = arith.constant 0 : i32
    return %c0_i32, %c0_i32_0 : i32, i32
  }
  func.func @transform_6(%arg0: i32, %arg1: i32) -> (i32, i32) {
    %c0_i32 = arith.constant 0 : i32
    %c0_i32_0 = arith.constant 0 : i32
    %c0_i32_1 = arith.constant 0 : i32
    return %c0_i32, %c0_i32_0 : i32, i32
  }
  func.func @transform_7(%arg0: i32, %arg1: i32) -> (i32, i32) {
    %c0_i32 = arith.constant 0 : i32
    %c0_i32_0 = arith.constant 0 : i32
    %c0_i32_1 = arith.constant 0 : i32
    return %c0_i32, %c0_i32_0 : i32, i32
  }
  func.func @transform_8(%arg0: i32, %arg1: i32) -> (i32, i32) {
    %c0_i32 = arith.constant 0 : i32
    %c0_i32_0 = arith.constant 0 : i32
    %c0_i32_1 = arith.constant 0 : i32
    return %c0_i32, %c0_i32_0 : i32, i32
  }
  func.func @transform_9(%arg0: i32, %arg1: i32) -> (i32, i32, i32) {
    %c0_i32 = arith.constant 0 : i32
    %c0_i32_0 = arith.constant 0 : i32
    return %arg0, %arg1, %c0_i32 : i32, i32, i32
  }
}

module attributes {stable_mosaic.version = 11 : i64} {
  func.func @_mhca_kernel(%arg0: i32, %arg1: i32, %arg2: memref<1x16x128xf32, #tpu.memory_space<vmem>>, %arg3: memref<1x32x128xf32, #tpu.memory_space<vmem>>, %arg4: memref<1x2x16xf32, #tpu.memory_space<vmem>>, %arg5: memref<128x128xf32, #tpu.memory_space<vmem>>, %arg6: memref<1x128xf32, #tpu.memory_space<vmem>>, %arg7: memref<128x256xf32, #tpu.memory_space<vmem>>, %arg8: memref<1x256xf32, #tpu.memory_space<vmem>>, %arg9: memref<128x128xf32, #tpu.memory_space<vmem>>, %arg10: memref<1x128xf32, #tpu.memory_space<vmem>>, %arg11: memref<1x16x128xf32, #tpu.memory_space<vmem>>, %arg12: memref<16x128xf32, #tpu.memory_space<vmem>>, %arg13: memref<32x256xf32, #tpu.memory_space<vmem>>, %arg14: memref<16x128xf32, #tpu.memory_space<vmem>>, %arg15: memref<2x16xf32, #tpu.memory_space<vmem>>) attributes {dimension_semantics = [#tpu.dimension_semantics<parallel>, #tpu.dimension_semantics<arbitrary>], iteration_bounds = array<i64: 2, 2>, scalar_prefetch = 0 : i64, scratch_operands = 4 : i64, tpu.core_type = #tpu.core_type<tc>, window_params = [{transform_indices = @transform_0, window_bounds = array<i64: 1, 16, 128>}, {transform_indices = @transform_1, window_bounds = array<i64: 1, 32, 128>}, {transform_indices = @transform_2, window_bounds = array<i64: 1, 2, 16>}, {pipeline_mode = #tpu.pipeline_mode<synchronous>, transform_indices = @transform_3, window_bounds = array<i64: 128, 128>}, {pipeline_mode = #tpu.pipeline_mode<synchronous>, transform_indices = @transform_4, window_bounds = array<i64: 1, 128>}, {pipeline_mode = #tpu.pipeline_mode<synchronous>, transform_indices = @transform_5, window_bounds = array<i64: 128, 256>}, {pipeline_mode = #tpu.pipeline_mode<synchronous>, transform_indices = @transform_6, window_bounds = array<i64: 1, 256>}, {pipeline_mode = #tpu.pipeline_mode<synchronous>, transform_indices = @transform_7, window_bounds = array<i64: 128, 128>}, {pipeline_mode = #tpu.pipeline_mode<synchronous>, transform_indices = @transform_8, window_bounds = array<i64: 1, 128>}, {transform_indices = @transform_9, window_bounds = array<i64: 1, 16, 128>}]} {
    %c0_i32 = arith.constant 0 : i32
    %0 = arith.cmpi eq, %arg1, %c0_i32 : i32
    %1 = arith.extui %0 : i1 to i32
    %c0_i32_0 = arith.constant 0 : i32
    %2 = arith.cmpi ne, %1, %c0_i32_0 : i32
    scf.if %2 {
      %c0_114 = arith.constant 0 : index
      %c0_115 = arith.constant 0 : index
      %c0_116 = arith.constant 0 : index
      %270 = vector.load %arg3[%c0_114, %c0_115, %c0_116] : memref<1x32x128xf32, #tpu.memory_space<vmem>>, vector<1x32x128xf32>
      %271 = vector.shape_cast %270 : vector<1x32x128xf32> to vector<32x128xf32>
      %c0_117 = arith.constant 0 : index
      %c0_118 = arith.constant 0 : index
      %272 = vector.load %arg7[%c0_117, %c0_118] : memref<128x256xf32, #tpu.memory_space<vmem>>, vector<128x256xf32>
      %cst_119 = arith.constant dense<0.000000e+00> : vector<32x256xf32>
      %273 = tpu.matmul %271, %272, %cst_119 {dimension_numbers = #tpu.dot_dimension_numbers<[1], [0], [0], [1], [0, 0, 1, 1], [], []>} : vector<32x128xf32>, vector<128x256xf32>, vector<32x256xf32> -> vector<32x256xf32>
      %c0_120 = arith.constant 0 : index
      %c0_121 = arith.constant 0 : index
      %274 = vector.load %arg8[%c0_120, %c0_121] : memref<1x256xf32, #tpu.memory_space<vmem>>, vector<1x256xf32>
      %275 = vector.broadcast %274 : vector<1x256xf32> to vector<32x256xf32>
      %276 = arith.addf %273, %275 : vector<32x256xf32>
      %c0_122 = arith.constant 0 : index
      %c0_123 = arith.constant 0 : index
      %277 = vector.load %arg13[%c0_122, %c0_123] : memref<32x256xf32, #tpu.memory_space<vmem>>, vector<32x256xf32>
      tpu.vector_store %arg13[%c0_122, %c0_123], %276 {strides = array<i32>} : memref<32x256xf32, #tpu.memory_space<vmem>>, vector<32x256xf32>,
      %c0_124 = arith.constant 0 : index
      %c0_125 = arith.constant 0 : index
      %c0_126 = arith.constant 0 : index
      %278 = vector.load %arg4[%c0_124, %c0_125, %c0_126] : memref<1x2x16xf32, #tpu.memory_space<vmem>>, vector<1x2x16xf32>
      %279 = vector.shape_cast %278 : vector<1x2x16xf32> to vector<2x16xf32>
      %cst_127 = arith.constant 0.000000e+00 : f32
      %280 = vector.broadcast %cst_127 : f32 to vector<2x16xf32>
      %281 = arith.cmpf ogt, %279, %280 : vector<2x16xf32>
      %cst_128 = arith.constant 0.000000e+00 : f32
      %cst_129 = arith.constant -1.000000e+09 : f32
      %282 = vector.broadcast %cst_128 : f32 to vector<2x16xf32>
      %283 = vector.broadcast %cst_129 : f32 to vector<2x16xf32>
      %284 = arith.select %281, %282, %283 : vector<2x16xi1>, vector<2x16xf32>
      %c0_130 = arith.constant 0 : index
      %c0_131 = arith.constant 0 : index
      %285 = vector.load %arg15[%c0_130, %c0_131] : memref<2x16xf32, #tpu.memory_space<vmem>>, vector<2x16xf32>
      tpu.vector_store %arg15[%c0_130, %c0_131], %284 {strides = array<i32>} : memref<2x16xf32, #tpu.memory_space<vmem>>, vector<2x16xf32>,
    } else {
    }
    %c0 = arith.constant 0 : index
    %c0_1 = arith.constant 0 : index
    %c0_2 = arith.constant 0 : index
    %3 = vector.load %arg2[%c0, %c0_1, %c0_2] : memref<1x16x128xf32, #tpu.memory_space<vmem>>, vector<1x16x128xf32>
    %4 = vector.shape_cast %3 : vector<1x16x128xf32> to vector<16x128xf32>
    %c0_3 = arith.constant 0 : index
    %c0_4 = arith.constant 0 : index
    %5 = vector.load %arg5[%c0_3, %c0_4] : memref<128x128xf32, #tpu.memory_space<vmem>>, vector<128x128xf32>
    %cst = arith.constant dense<0.000000e+00> : vector<16x128xf32>
    %6 = tpu.matmul %4, %5, %cst {dimension_numbers = #tpu.dot_dimension_numbers<[1], [0], [0], [1], [0, 0, 1, 1], [], []>} : vector<16x128xf32>, vector<128x128xf32>, vector<16x128xf32> -> vector<16x128xf32>
    %c0_5 = arith.constant 0 : index
    %c0_6 = arith.constant 0 : index
    %7 = vector.load %arg6[%c0_5, %c0_6] : memref<1x128xf32, #tpu.memory_space<vmem>>, vector<1x128xf32>
    %8 = vector.broadcast %7 : vector<1x128xf32> to vector<16x128xf32>
    %9 = arith.addf %6, %8 : vector<16x128xf32>
    %cst_7 = arith.constant 0.176776692 : f32
    %10 = vector.broadcast %cst_7 : f32 to vector<16x128xf32>
    %11 = arith.mulf %9, %10 : vector<16x128xf32>
    %c0_8 = arith.constant 0 : index
    %c0_9 = arith.constant 0 : index
    %12 = vector.load %arg12[%c0_8, %c0_9] : memref<16x128xf32, #tpu.memory_space<vmem>>, vector<16x128xf32>
    tpu.vector_store %arg12[%c0_8, %c0_9], %11 {strides = array<i32>} : memref<16x128xf32, #tpu.memory_space<vmem>>, vector<16x128xf32>,
    %c0_10 = arith.constant 0 : index
    %c0_11 = arith.constant 0 : index
    %13 = vector.load %arg12[%c0_10, %c0_11] : memref<16x128xf32, #tpu.memory_space<vmem>>, vector<16x32xf32>
    %cst_12 = arith.constant 0xFF800000 : f32
    %14 = vector.broadcast %cst_12 : f32 to vector<16x1xf32>
    %cst_13 = arith.constant 0.000000e+00 : f32
    %15 = vector.broadcast %cst_13 : f32 to vector<16x1xf32>
    %cst_14 = arith.constant 0.000000e+00 : f32
    %16 = vector.broadcast %cst_14 : f32 to vector<16x32xf32>
    %c0_i32_15 = arith.constant 0 : i32
    %c16_i32 = arith.constant 16 : i32
    %17 = arith.muli %c0_i32_15, %c16_i32 : i32
    %18 = tpu.assume_multiple %17, 16 : i32
    %19 = arith.index_cast %18 : i32 to index
    %c0_16 = arith.constant 0 : index
    %20 = vector.load %arg13[%19, %c0_16] : memref<32x256xf32, #tpu.memory_space<vmem>>, vector<16x32xf32>
    %21 = arith.index_cast %18 : i32 to index
    %c128 = arith.constant 128 : index
    %22 = vector.load %arg13[%21, %c128] : memref<32x256xf32, #tpu.memory_space<vmem>>, vector<16x32xf32>
    %cst_17 = arith.constant dense<0.000000e+00> : vector<16x16xf32>
    %23 = tpu.matmul %13, %20, %cst_17 {dimension_numbers = #tpu.dot_dimension_numbers<[1], [1], [0], [0], [0, 0, 1, 0], [], []>} : vector<16x32xf32>, vector<16x32xf32>, vector<16x16xf32> -> vector<16x16xf32>
    %24 = arith.index_cast %c0_i32_15 : i32 to index
    %c0_18 = arith.constant 0 : index
    %25 = vector.load %arg15[%24, %c0_18] : memref<2x16xf32, #tpu.memory_space<vmem>>, vector<1x16xf32>
    %26 = vector.broadcast %25 : vector<1x16xf32> to vector<16x16xf32>
    %27 = arith.addf %23, %26 : vector<16x16xf32>
    %cst_19 = arith.constant dense<0xFF800000> : vector<16xf32>
    %28 = vector.multi_reduction <maximumf>, %27, %cst_19 [1] : vector<16x16xf32> to vector<16xf32>
    %29 = vector.shape_cast %28 : vector<16xf32> to vector<16x1xf32>
    %30 = arith.maximumf %14, %29 : vector<16x1xf32>
    %31 = arith.subf %14, %30 : vector<16x1xf32>
    %32 = math.exp %31 : vector<16x1xf32>
    %33 = vector.broadcast %30 : vector<16x1xf32> to vector<16x16xf32>
    %34 = arith.subf %27, %33 : vector<16x16xf32>
    %35 = math.exp %34 : vector<16x16xf32>
    %36 = arith.mulf %32, %15 : vector<16x1xf32>
    %cst_20 = arith.constant dense<0.000000e+00> : vector<16xf32>
    %37 = vector.multi_reduction <add>, %35, %cst_20 [1] : vector<16x16xf32> to vector<16xf32>
    %38 = vector.shape_cast %37 : vector<16xf32> to vector<16x1xf32>
    %39 = arith.addf %36, %38 : vector<16x1xf32>
    %40 = vector.broadcast %32 : vector<16x1xf32> to vector<16x32xf32>
    %41 = arith.mulf %40, %16 : vector<16x32xf32>
    %cst_21 = arith.constant dense<0.000000e+00> : vector<16x32xf32>
    %42 = tpu.matmul %35, %22, %cst_21 {dimension_numbers = #tpu.dot_dimension_numbers<[1], [0], [0], [1], [0, 0, 1, 1], [], []>} : vector<16x16xf32>, vector<16x32xf32>, vector<16x32xf32> -> vector<16x32xf32>
    %43 = arith.addf %41, %42 : vector<16x32xf32>
    %c1_i32 = arith.constant 1 : i32
    %c16_i32_22 = arith.constant 16 : i32
    %44 = arith.muli %c1_i32, %c16_i32_22 : i32
    %45 = tpu.assume_multiple %44, 16 : i32
    %46 = arith.index_cast %45 : i32 to index
    %c0_23 = arith.constant 0 : index
    %47 = vector.load %arg13[%46, %c0_23] : memref<32x256xf32, #tpu.memory_space<vmem>>, vector<16x32xf32>
    %48 = arith.index_cast %45 : i32 to index
    %c128_24 = arith.constant 128 : index
    %49 = vector.load %arg13[%48, %c128_24] : memref<32x256xf32, #tpu.memory_space<vmem>>, vector<16x32xf32>
    %cst_25 = arith.constant dense<0.000000e+00> : vector<16x16xf32>
    %50 = tpu.matmul %13, %47, %cst_25 {dimension_numbers = #tpu.dot_dimension_numbers<[1], [1], [0], [0], [0, 0, 1, 0], [], []>} : vector<16x32xf32>, vector<16x32xf32>, vector<16x16xf32> -> vector<16x16xf32>
    %51 = arith.index_cast %c1_i32 : i32 to index
    %c0_26 = arith.constant 0 : index
    %52 = vector.load %arg15[%51, %c0_26] : memref<2x16xf32, #tpu.memory_space<vmem>>, vector<1x16xf32>
    %53 = vector.broadcast %52 : vector<1x16xf32> to vector<16x16xf32>
    %54 = arith.addf %50, %53 : vector<16x16xf32>
    %cst_27 = arith.constant dense<0xFF800000> : vector<16xf32>
    %55 = vector.multi_reduction <maximumf>, %54, %cst_27 [1] : vector<16x16xf32> to vector<16xf32>
    %56 = vector.shape_cast %55 : vector<16xf32> to vector<16x1xf32>
    %57 = arith.maximumf %30, %56 : vector<16x1xf32>
    %58 = arith.subf %30, %57 : vector<16x1xf32>
    %59 = math.exp %58 : vector<16x1xf32>
    %60 = vector.broadcast %57 : vector<16x1xf32> to vector<16x16xf32>
    %61 = arith.subf %54, %60 : vector<16x16xf32>
    %62 = math.exp %61 : vector<16x16xf32>
    %63 = arith.mulf %59, %39 : vector<16x1xf32>
    %cst_28 = arith.constant dense<0.000000e+00> : vector<16xf32>
    %64 = vector.multi_reduction <add>, %62, %cst_28 [1] : vector<16x16xf32> to vector<16xf32>
    %65 = vector.shape_cast %64 : vector<16xf32> to vector<16x1xf32>
    %66 = arith.addf %63, %65 : vector<16x1xf32>
    %67 = vector.broadcast %59 : vector<16x1xf32> to vector<16x32xf32>
    %68 = arith.mulf %67, %43 : vector<16x32xf32>
    %cst_29 = arith.constant dense<0.000000e+00> : vector<16x32xf32>
    %69 = tpu.matmul %62, %49, %cst_29 {dimension_numbers = #tpu.dot_dimension_numbers<[1], [0], [0], [1], [0, 0, 1, 1], [], []>} : vector<16x16xf32>, vector<16x32xf32>, vector<16x32xf32> -> vector<16x32xf32>
    %70 = arith.addf %68, %69 : vector<16x32xf32>
    %c2_i32 = arith.constant 2 : i32
    %71 = tpu.reciprocal %66 {approx = true} : vector<16x1xf32> -> vector<16x1xf32>
    %72 = vector.broadcast %71 : vector<16x1xf32> to vector<16x32xf32>
    %73 = arith.mulf %70, %72 : vector<16x32xf32>
    %c0_30 = arith.constant 0 : index
    %c0_31 = arith.constant 0 : index
    %74 = vector.load %arg14[%c0_30, %c0_31] : memref<16x128xf32, #tpu.memory_space<vmem>>, vector<16x32xf32>
    tpu.vector_store %arg14[%c0_30, %c0_31], %73 {strides = array<i32>} : memref<16x128xf32, #tpu.memory_space<vmem>>, vector<16x32xf32>,
    %c0_32 = arith.constant 0 : index
    %c32 = arith.constant 32 : index
    %75 = vector.load %arg12[%c0_32, %c32] : memref<16x128xf32, #tpu.memory_space<vmem>>, vector<16x32xf32>
    %cst_33 = arith.constant 0xFF800000 : f32
    %76 = vector.broadcast %cst_33 : f32 to vector<16x1xf32>
    %cst_34 = arith.constant 0.000000e+00 : f32
    %77 = vector.broadcast %cst_34 : f32 to vector<16x1xf32>
    %cst_35 = arith.constant 0.000000e+00 : f32
    %78 = vector.broadcast %cst_35 : f32 to vector<16x32xf32>
    %c0_i32_36 = arith.constant 0 : i32
    %c16_i32_37 = arith.constant 16 : i32
    %79 = arith.muli %c0_i32_36, %c16_i32_37 : i32
    %80 = tpu.assume_multiple %79, 16 : i32
    %81 = arith.index_cast %80 : i32 to index
    %c32_38 = arith.constant 32 : index
    %82 = vector.load %arg13[%81, %c32_38] : memref<32x256xf32, #tpu.memory_space<vmem>>, vector<16x32xf32>
    %83 = arith.index_cast %80 : i32 to index
    %c160 = arith.constant 160 : index
    %84 = vector.load %arg13[%83, %c160] : memref<32x256xf32, #tpu.memory_space<vmem>>, vector<16x32xf32>
    %cst_39 = arith.constant dense<0.000000e+00> : vector<16x16xf32>
    %85 = tpu.matmul %75, %82, %cst_39 {dimension_numbers = #tpu.dot_dimension_numbers<[1], [1], [0], [0], [0, 0, 1, 0], [], []>} : vector<16x32xf32>, vector<16x32xf32>, vector<16x16xf32> -> vector<16x16xf32>
    %86 = arith.index_cast %c0_i32_36 : i32 to index
    %c0_40 = arith.constant 0 : index
    %87 = vector.load %arg15[%86, %c0_40] : memref<2x16xf32, #tpu.memory_space<vmem>>, vector<1x16xf32>
    %88 = vector.broadcast %87 : vector<1x16xf32> to vector<16x16xf32>
    %89 = arith.addf %85, %88 : vector<16x16xf32>
    %cst_41 = arith.constant dense<0xFF800000> : vector<16xf32>
    %90 = vector.multi_reduction <maximumf>, %89, %cst_41 [1] : vector<16x16xf32> to vector<16xf32>
    %91 = vector.shape_cast %90 : vector<16xf32> to vector<16x1xf32>
    %92 = arith.maximumf %76, %91 : vector<16x1xf32>
    %93 = arith.subf %76, %92 : vector<16x1xf32>
    %94 = math.exp %93 : vector<16x1xf32>
    %95 = vector.broadcast %92 : vector<16x1xf32> to vector<16x16xf32>
    %96 = arith.subf %89, %95 : vector<16x16xf32>
    %97 = math.exp %96 : vector<16x16xf32>
    %98 = arith.mulf %94, %77 : vector<16x1xf32>
    %cst_42 = arith.constant dense<0.000000e+00> : vector<16xf32>
    %99 = vector.multi_reduction <add>, %97, %cst_42 [1] : vector<16x16xf32> to vector<16xf32>
    %100 = vector.shape_cast %99 : vector<16xf32> to vector<16x1xf32>
    %101 = arith.addf %98, %100 : vector<16x1xf32>
    %102 = vector.broadcast %94 : vector<16x1xf32> to vector<16x32xf32>
    %103 = arith.mulf %102, %78 : vector<16x32xf32>
    %cst_43 = arith.constant dense<0.000000e+00> : vector<16x32xf32>
    %104 = tpu.matmul %97, %84, %cst_43 {dimension_numbers = #tpu.dot_dimension_numbers<[1], [0], [0], [1], [0, 0, 1, 1], [], []>} : vector<16x16xf32>, vector<16x32xf32>, vector<16x32xf32> -> vector<16x32xf32>
    %105 = arith.addf %103, %104 : vector<16x32xf32>
    %c1_i32_44 = arith.constant 1 : i32
    %c16_i32_45 = arith.constant 16 : i32
    %106 = arith.muli %c1_i32_44, %c16_i32_45 : i32
    %107 = tpu.assume_multiple %106, 16 : i32
    %108 = arith.index_cast %107 : i32 to index
    %c32_46 = arith.constant 32 : index
    %109 = vector.load %arg13[%108, %c32_46] : memref<32x256xf32, #tpu.memory_space<vmem>>, vector<16x32xf32>
    %110 = arith.index_cast %107 : i32 to index
    %c160_47 = arith.constant 160 : index
    %111 = vector.load %arg13[%110, %c160_47] : memref<32x256xf32, #tpu.memory_space<vmem>>, vector<16x32xf32>
    %cst_48 = arith.constant dense<0.000000e+00> : vector<16x16xf32>
    %112 = tpu.matmul %75, %109, %cst_48 {dimension_numbers = #tpu.dot_dimension_numbers<[1], [1], [0], [0], [0, 0, 1, 0], [], []>} : vector<16x32xf32>, vector<16x32xf32>, vector<16x16xf32> -> vector<16x16xf32>
    %113 = arith.index_cast %c1_i32_44 : i32 to index
    %c0_49 = arith.constant 0 : index
    %114 = vector.load %arg15[%113, %c0_49] : memref<2x16xf32, #tpu.memory_space<vmem>>, vector<1x16xf32>
    %115 = vector.broadcast %114 : vector<1x16xf32> to vector<16x16xf32>
    %116 = arith.addf %112, %115 : vector<16x16xf32>
    %cst_50 = arith.constant dense<0xFF800000> : vector<16xf32>
    %117 = vector.multi_reduction <maximumf>, %116, %cst_50 [1] : vector<16x16xf32> to vector<16xf32>
    %118 = vector.shape_cast %117 : vector<16xf32> to vector<16x1xf32>
    %119 = arith.maximumf %92, %118 : vector<16x1xf32>
    %120 = arith.subf %92, %119 : vector<16x1xf32>
    %121 = math.exp %120 : vector<16x1xf32>
    %122 = vector.broadcast %119 : vector<16x1xf32> to vector<16x16xf32>
    %123 = arith.subf %116, %122 : vector<16x16xf32>
    %124 = math.exp %123 : vector<16x16xf32>
    %125 = arith.mulf %121, %101 : vector<16x1xf32>
    %cst_51 = arith.constant dense<0.000000e+00> : vector<16xf32>
    %126 = vector.multi_reduction <add>, %124, %cst_51 [1] : vector<16x16xf32> to vector<16xf32>
    %127 = vector.shape_cast %126 : vector<16xf32> to vector<16x1xf32>
    %128 = arith.addf %125, %127 : vector<16x1xf32>
    %129 = vector.broadcast %121 : vector<16x1xf32> to vector<16x32xf32>
    %130 = arith.mulf %129, %105 : vector<16x32xf32>
    %cst_52 = arith.constant dense<0.000000e+00> : vector<16x32xf32>
    %131 = tpu.matmul %124, %111, %cst_52 {dimension_numbers = #tpu.dot_dimension_numbers<[1], [0], [0], [1], [0, 0, 1, 1], [], []>} : vector<16x16xf32>, vector<16x32xf32>, vector<16x32xf32> -> vector<16x32xf32>
    %132 = arith.addf %130, %131 : vector<16x32xf32>
    %c2_i32_53 = arith.constant 2 : i32
    %133 = tpu.reciprocal %128 {approx = true} : vector<16x1xf32> -> vector<16x1xf32>
    %134 = vector.broadcast %133 : vector<16x1xf32> to vector<16x32xf32>
    %135 = arith.mulf %132, %134 : vector<16x32xf32>
    %c0_54 = arith.constant 0 : index
    %c32_55 = arith.constant 32 : index
    %136 = vector.load %arg14[%c0_54, %c32_55] : memref<16x128xf32, #tpu.memory_space<vmem>>, vector<16x32xf32>
    tpu.vector_store %arg14[%c0_54, %c32_55], %135 {strides = array<i32>} : memref<16x128xf32, #tpu.memory_space<vmem>>, vector<16x32xf32>,
    %c0_56 = arith.constant 0 : index
    %c64 = arith.constant 64 : index
    %137 = vector.load %arg12[%c0_56, %c64] : memref<16x128xf32, #tpu.memory_space<vmem>>, vector<16x32xf32>
    %cst_57 = arith.constant 0xFF800000 : f32
    %138 = vector.broadcast %cst_57 : f32 to vector<16x1xf32>
    %cst_58 = arith.constant 0.000000e+00 : f32
    %139 = vector.broadcast %cst_58 : f32 to vector<16x1xf32>
    %cst_59 = arith.constant 0.000000e+00 : f32
    %140 = vector.broadcast %cst_59 : f32 to vector<16x32xf32>
    %c0_i32_60 = arith.constant 0 : i32
    %c16_i32_61 = arith.constant 16 : i32
    %141 = arith.muli %c0_i32_60, %c16_i32_61 : i32
    %142 = tpu.assume_multiple %141, 16 : i32
    %143 = arith.index_cast %142 : i32 to index
    %c64_62 = arith.constant 64 : index
    %144 = vector.load %arg13[%143, %c64_62] : memref<32x256xf32, #tpu.memory_space<vmem>>, vector<16x32xf32>
    %145 = arith.index_cast %142 : i32 to index
    %c192 = arith.constant 192 : index
    %146 = vector.load %arg13[%145, %c192] : memref<32x256xf32, #tpu.memory_space<vmem>>, vector<16x32xf32>
    %cst_63 = arith.constant dense<0.000000e+00> : vector<16x16xf32>
    %147 = tpu.matmul %137, %144, %cst_63 {dimension_numbers = #tpu.dot_dimension_numbers<[1], [1], [0], [0], [0, 0, 1, 0], [], []>} : vector<16x32xf32>, vector<16x32xf32>, vector<16x16xf32> -> vector<16x16xf32>
    %148 = arith.index_cast %c0_i32_60 : i32 to index
    %c0_64 = arith.constant 0 : index
    %149 = vector.load %arg15[%148, %c0_64] : memref<2x16xf32, #tpu.memory_space<vmem>>, vector<1x16xf32>
    %150 = vector.broadcast %149 : vector<1x16xf32> to vector<16x16xf32>
    %151 = arith.addf %147, %150 : vector<16x16xf32>
    %cst_65 = arith.constant dense<0xFF800000> : vector<16xf32>
    %152 = vector.multi_reduction <maximumf>, %151, %cst_65 [1] : vector<16x16xf32> to vector<16xf32>
    %153 = vector.shape_cast %152 : vector<16xf32> to vector<16x1xf32>
    %154 = arith.maximumf %138, %153 : vector<16x1xf32>
    %155 = arith.subf %138, %154 : vector<16x1xf32>
    %156 = math.exp %155 : vector<16x1xf32>
    %157 = vector.broadcast %154 : vector<16x1xf32> to vector<16x16xf32>
    %158 = arith.subf %151, %157 : vector<16x16xf32>
    %159 = math.exp %158 : vector<16x16xf32>
    %160 = arith.mulf %156, %139 : vector<16x1xf32>
    %cst_66 = arith.constant dense<0.000000e+00> : vector<16xf32>
    %161 = vector.multi_reduction <add>, %159, %cst_66 [1] : vector<16x16xf32> to vector<16xf32>
    %162 = vector.shape_cast %161 : vector<16xf32> to vector<16x1xf32>
    %163 = arith.addf %160, %162 : vector<16x1xf32>
    %164 = vector.broadcast %156 : vector<16x1xf32> to vector<16x32xf32>
    %165 = arith.mulf %164, %140 : vector<16x32xf32>
    %cst_67 = arith.constant dense<0.000000e+00> : vector<16x32xf32>
    %166 = tpu.matmul %159, %146, %cst_67 {dimension_numbers = #tpu.dot_dimension_numbers<[1], [0], [0], [1], [0, 0, 1, 1], [], []>} : vector<16x16xf32>, vector<16x32xf32>, vector<16x32xf32> -> vector<16x32xf32>
    %167 = arith.addf %165, %166 : vector<16x32xf32>
    %c1_i32_68 = arith.constant 1 : i32
    %c16_i32_69 = arith.constant 16 : i32
    %168 = arith.muli %c1_i32_68, %c16_i32_69 : i32
    %169 = tpu.assume_multiple %168, 16 : i32
    %170 = arith.index_cast %169 : i32 to index
    %c64_70 = arith.constant 64 : index
    %171 = vector.load %arg13[%170, %c64_70] : memref<32x256xf32, #tpu.memory_space<vmem>>, vector<16x32xf32>
    %172 = arith.index_cast %169 : i32 to index
    %c192_71 = arith.constant 192 : index
    %173 = vector.load %arg13[%172, %c192_71] : memref<32x256xf32, #tpu.memory_space<vmem>>, vector<16x32xf32>
    %cst_72 = arith.constant dense<0.000000e+00> : vector<16x16xf32>
    %174 = tpu.matmul %137, %171, %cst_72 {dimension_numbers = #tpu.dot_dimension_numbers<[1], [1], [0], [0], [0, 0, 1, 0], [], []>} : vector<16x32xf32>, vector<16x32xf32>, vector<16x16xf32> -> vector<16x16xf32>
    %175 = arith.index_cast %c1_i32_68 : i32 to index
    %c0_73 = arith.constant 0 : index
    %176 = vector.load %arg15[%175, %c0_73] : memref<2x16xf32, #tpu.memory_space<vmem>>, vector<1x16xf32>
    %177 = vector.broadcast %176 : vector<1x16xf32> to vector<16x16xf32>
    %178 = arith.addf %174, %177 : vector<16x16xf32>
    %cst_74 = arith.constant dense<0xFF800000> : vector<16xf32>
    %179 = vector.multi_reduction <maximumf>, %178, %cst_74 [1] : vector<16x16xf32> to vector<16xf32>
    %180 = vector.shape_cast %179 : vector<16xf32> to vector<16x1xf32>
    %181 = arith.maximumf %154, %180 : vector<16x1xf32>
    %182 = arith.subf %154, %181 : vector<16x1xf32>
    %183 = math.exp %182 : vector<16x1xf32>
    %184 = vector.broadcast %181 : vector<16x1xf32> to vector<16x16xf32>
    %185 = arith.subf %178, %184 : vector<16x16xf32>
    %186 = math.exp %185 : vector<16x16xf32>
    %187 = arith.mulf %183, %163 : vector<16x1xf32>
    %cst_75 = arith.constant dense<0.000000e+00> : vector<16xf32>
    %188 = vector.multi_reduction <add>, %186, %cst_75 [1] : vector<16x16xf32> to vector<16xf32>
    %189 = vector.shape_cast %188 : vector<16xf32> to vector<16x1xf32>
    %190 = arith.addf %187, %189 : vector<16x1xf32>
    %191 = vector.broadcast %183 : vector<16x1xf32> to vector<16x32xf32>
    %192 = arith.mulf %191, %167 : vector<16x32xf32>
    %cst_76 = arith.constant dense<0.000000e+00> : vector<16x32xf32>
    %193 = tpu.matmul %186, %173, %cst_76 {dimension_numbers = #tpu.dot_dimension_numbers<[1], [0], [0], [1], [0, 0, 1, 1], [], []>} : vector<16x16xf32>, vector<16x32xf32>, vector<16x32xf32> -> vector<16x32xf32>
    %194 = arith.addf %192, %193 : vector<16x32xf32>
    %c2_i32_77 = arith.constant 2 : i32
    %195 = tpu.reciprocal %190 {approx = true} : vector<16x1xf32> -> vector<16x1xf32>
    %196 = vector.broadcast %195 : vector<16x1xf32> to vector<16x32xf32>
    %197 = arith.mulf %194, %196 : vector<16x32xf32>
    %c0_78 = arith.constant 0 : index
    %c64_79 = arith.constant 64 : index
    %198 = vector.load %arg14[%c0_78, %c64_79] : memref<16x128xf32, #tpu.memory_space<vmem>>, vector<16x32xf32>
    tpu.vector_store %arg14[%c0_78, %c64_79], %197 {strides = array<i32>} : memref<16x128xf32, #tpu.memory_space<vmem>>, vector<16x32xf32>,
    %c0_80 = arith.constant 0 : index
    %c96 = arith.constant 96 : index
    %199 = vector.load %arg12[%c0_80, %c96] : memref<16x128xf32, #tpu.memory_space<vmem>>, vector<16x32xf32>
    %cst_81 = arith.constant 0xFF800000 : f32
    %200 = vector.broadcast %cst_81 : f32 to vector<16x1xf32>
    %cst_82 = arith.constant 0.000000e+00 : f32
    %201 = vector.broadcast %cst_82 : f32 to vector<16x1xf32>
    %cst_83 = arith.constant 0.000000e+00 : f32
    %202 = vector.broadcast %cst_83 : f32 to vector<16x32xf32>
    %c0_i32_84 = arith.constant 0 : i32
    %c16_i32_85 = arith.constant 16 : i32
    %203 = arith.muli %c0_i32_84, %c16_i32_85 : i32
    %204 = tpu.assume_multiple %203, 16 : i32
    %205 = arith.index_cast %204 : i32 to index
    %c96_86 = arith.constant 96 : index
    %206 = vector.load %arg13[%205, %c96_86] : memref<32x256xf32, #tpu.memory_space<vmem>>, vector<16x32xf32>
    %207 = arith.index_cast %204 : i32 to index
    %c224 = arith.constant 224 : index
    %208 = vector.load %arg13[%207, %c224] : memref<32x256xf32, #tpu.memory_space<vmem>>, vector<16x32xf32>
    %cst_87 = arith.constant dense<0.000000e+00> : vector<16x16xf32>
    %209 = tpu.matmul %199, %206, %cst_87 {dimension_numbers = #tpu.dot_dimension_numbers<[1], [1], [0], [0], [0, 0, 1, 0], [], []>} : vector<16x32xf32>, vector<16x32xf32>, vector<16x16xf32> -> vector<16x16xf32>
    %210 = arith.index_cast %c0_i32_84 : i32 to index
    %c0_88 = arith.constant 0 : index
    %211 = vector.load %arg15[%210, %c0_88] : memref<2x16xf32, #tpu.memory_space<vmem>>, vector<1x16xf32>
    %212 = vector.broadcast %211 : vector<1x16xf32> to vector<16x16xf32>
    %213 = arith.addf %209, %212 : vector<16x16xf32>
    %cst_89 = arith.constant dense<0xFF800000> : vector<16xf32>
    %214 = vector.multi_reduction <maximumf>, %213, %cst_89 [1] : vector<16x16xf32> to vector<16xf32>
    %215 = vector.shape_cast %214 : vector<16xf32> to vector<16x1xf32>
    %216 = arith.maximumf %200, %215 : vector<16x1xf32>
    %217 = arith.subf %200, %216 : vector<16x1xf32>
    %218 = math.exp %217 : vector<16x1xf32>
    %219 = vector.broadcast %216 : vector<16x1xf32> to vector<16x16xf32>
    %220 = arith.subf %213, %219 : vector<16x16xf32>
    %221 = math.exp %220 : vector<16x16xf32>
    %222 = arith.mulf %218, %201 : vector<16x1xf32>
    %cst_90 = arith.constant dense<0.000000e+00> : vector<16xf32>
    %223 = vector.multi_reduction <add>, %221, %cst_90 [1] : vector<16x16xf32> to vector<16xf32>
    %224 = vector.shape_cast %223 : vector<16xf32> to vector<16x1xf32>
    %225 = arith.addf %222, %224 : vector<16x1xf32>
    %226 = vector.broadcast %218 : vector<16x1xf32> to vector<16x32xf32>
    %227 = arith.mulf %226, %202 : vector<16x32xf32>
    %cst_91 = arith.constant dense<0.000000e+00> : vector<16x32xf32>
    %228 = tpu.matmul %221, %208, %cst_91 {dimension_numbers = #tpu.dot_dimension_numbers<[1], [0], [0], [1], [0, 0, 1, 1], [], []>} : vector<16x16xf32>, vector<16x32xf32>, vector<16x32xf32> -> vector<16x32xf32>
    %229 = arith.addf %227, %228 : vector<16x32xf32>
    %c1_i32_92 = arith.constant 1 : i32
    %c16_i32_93 = arith.constant 16 : i32
    %230 = arith.muli %c1_i32_92, %c16_i32_93 : i32
    %231 = tpu.assume_multiple %230, 16 : i32
    %232 = arith.index_cast %231 : i32 to index
    %c96_94 = arith.constant 96 : index
    %233 = vector.load %arg13[%232, %c96_94] : memref<32x256xf32, #tpu.memory_space<vmem>>, vector<16x32xf32>
    %234 = arith.index_cast %231 : i32 to index
    %c224_95 = arith.constant 224 : index
    %235 = vector.load %arg13[%234, %c224_95] : memref<32x256xf32, #tpu.memory_space<vmem>>, vector<16x32xf32>
    %cst_96 = arith.constant dense<0.000000e+00> : vector<16x16xf32>
    %236 = tpu.matmul %199, %233, %cst_96 {dimension_numbers = #tpu.dot_dimension_numbers<[1], [1], [0], [0], [0, 0, 1, 0], [], []>} : vector<16x32xf32>, vector<16x32xf32>, vector<16x16xf32> -> vector<16x16xf32>
    %237 = arith.index_cast %c1_i32_92 : i32 to index
    %c0_97 = arith.constant 0 : index
    %238 = vector.load %arg15[%237, %c0_97] : memref<2x16xf32, #tpu.memory_space<vmem>>, vector<1x16xf32>
    %239 = vector.broadcast %238 : vector<1x16xf32> to vector<16x16xf32>
    %240 = arith.addf %236, %239 : vector<16x16xf32>
    %cst_98 = arith.constant dense<0xFF800000> : vector<16xf32>
    %241 = vector.multi_reduction <maximumf>, %240, %cst_98 [1] : vector<16x16xf32> to vector<16xf32>
    %242 = vector.shape_cast %241 : vector<16xf32> to vector<16x1xf32>
    %243 = arith.maximumf %216, %242 : vector<16x1xf32>
    %244 = arith.subf %216, %243 : vector<16x1xf32>
    %245 = math.exp %244 : vector<16x1xf32>
    %246 = vector.broadcast %243 : vector<16x1xf32> to vector<16x16xf32>
    %247 = arith.subf %240, %246 : vector<16x16xf32>
    %248 = math.exp %247 : vector<16x16xf32>
    %249 = arith.mulf %245, %225 : vector<16x1xf32>
    %cst_99 = arith.constant dense<0.000000e+00> : vector<16xf32>
    %250 = vector.multi_reduction <add>, %248, %cst_99 [1] : vector<16x16xf32> to vector<16xf32>
    %251 = vector.shape_cast %250 : vector<16xf32> to vector<16x1xf32>
    %252 = arith.addf %249, %251 : vector<16x1xf32>
    %253 = vector.broadcast %245 : vector<16x1xf32> to vector<16x32xf32>
    %254 = arith.mulf %253, %229 : vector<16x32xf32>
    %cst_100 = arith.constant dense<0.000000e+00> : vector<16x32xf32>
    %255 = tpu.matmul %248, %235, %cst_100 {dimension_numbers = #tpu.dot_dimension_numbers<[1], [0], [0], [1], [0, 0, 1, 1], [], []>} : vector<16x16xf32>, vector<16x32xf32>, vector<16x32xf32> -> vector<16x32xf32>
    %256 = arith.addf %254, %255 : vector<16x32xf32>
    %c2_i32_101 = arith.constant 2 : i32
    %257 = tpu.reciprocal %252 {approx = true} : vector<16x1xf32> -> vector<16x1xf32>
    %258 = vector.broadcast %257 : vector<16x1xf32> to vector<16x32xf32>
    %259 = arith.mulf %256, %258 : vector<16x32xf32>
    %c0_102 = arith.constant 0 : index
    %c96_103 = arith.constant 96 : index
    %260 = vector.load %arg14[%c0_102, %c96_103] : memref<16x128xf32, #tpu.memory_space<vmem>>, vector<16x32xf32>
    tpu.vector_store %arg14[%c0_102, %c96_103], %259 {strides = array<i32>} : memref<16x128xf32, #tpu.memory_space<vmem>>, vector<16x32xf32>,
    %c0_104 = arith.constant 0 : index
    %c0_105 = arith.constant 0 : index
    %261 = vector.load %arg14[%c0_104, %c0_105] : memref<16x128xf32, #tpu.memory_space<vmem>>, vector<16x128xf32>
    %c0_106 = arith.constant 0 : index
    %c0_107 = arith.constant 0 : index
    %262 = vector.load %arg9[%c0_106, %c0_107] : memref<128x128xf32, #tpu.memory_space<vmem>>, vector<128x128xf32>
    %cst_108 = arith.constant dense<0.000000e+00> : vector<16x128xf32>
    %263 = tpu.matmul %261, %262, %cst_108 {dimension_numbers = #tpu.dot_dimension_numbers<[1], [0], [0], [1], [0, 0, 1, 1], [], []>} : vector<16x128xf32>, vector<128x128xf32>, vector<16x128xf32> -> vector<16x128xf32>
    %c0_109 = arith.constant 0 : index
    %c0_110 = arith.constant 0 : index
    %264 = vector.load %arg10[%c0_109, %c0_110] : memref<1x128xf32, #tpu.memory_space<vmem>>, vector<1x128xf32>
    %265 = vector.broadcast %264 : vector<1x128xf32> to vector<16x128xf32>
    %266 = arith.addf %263, %265 : vector<16x128xf32>
    %c0_111 = arith.constant 0 : index
    %c0_112 = arith.constant 0 : index
    %c0_113 = arith.constant 0 : index
    %267 = vector.load %arg11[%c0_111, %c0_112, %c0_113] : memref<1x16x128xf32, #tpu.memory_space<vmem>>, vector<1x16x128xf32>
    %268 = vector.shape_cast %267 : vector<1x16x128xf32> to vector<16x128xf32>
    %269 = vector.shape_cast %266 : vector<16x128xf32> to vector<1x16x128xf32>
    tpu.vector_store %arg11[%c0_111, %c0_112, %c0_113], %269 {strides = array<i32>} : memref<1x16x128xf32, #tpu.memory_space<vmem>>, vector<1x16x128xf32>,
    return
  }
  func.func @transform_0(%arg0: i32, %arg1: i32) -> (i32, i32, i32) {
    %c0_i32 = arith.constant 0 : i32
    %c0_i32_0 = arith.constant 0 : i32
    return %arg0, %arg1, %c0_i32 : i32, i32, i32
  }
  func.func @transform_1(%arg0: i32, %arg1: i32) -> (i32, i32, i32) {
    %c0_i32 = arith.constant 0 : i32
    %c0_i32_0 = arith.constant 0 : i32
    %c0_i32_1 = arith.constant 0 : i32
    return %arg0, %c0_i32, %c0_i32_0 : i32, i32, i32
  }
  func.func @transform_2(%arg0: i32, %arg1: i32) -> (i32, i32, i32) {
    %c0_i32 = arith.constant 0 : i32
    %c0_i32_0 = arith.constant 0 : i32
    %c0_i32_1 = arith.constant 0 : i32
    return %arg0, %c0_i32, %c0_i32_0 : i32, i32, i32
  }
  func.func @transform_3(%arg0: i32, %arg1: i32) -> (i32, i32) {
    %c0_i32 = arith.constant 0 : i32
    %c0_i32_0 = arith.constant 0 : i32
    %c0_i32_1 = arith.constant 0 : i32
    return %c0_i32, %c0_i32_0 : i32, i32
  }
  func.func @transform_4(%arg0: i32, %arg1: i32) -> (i32, i32) {
    %c0_i32 = arith.constant 0 : i32
    %c0_i32_0 = arith.constant 0 : i32
    %c0_i32_1 = arith.constant 0 : i32
    return %c0_i32, %c0_i32_0 : i32, i32
  }
  func.func @transform_5(%arg0: i32, %arg1: i32) -> (i32, i32) {
    %c0_i32 = arith.constant 0 : i32
    %c0_i32_0 = arith.constant 0 : i32
    %c0_i32_1 = arith.constant 0 : i32
    return %c0_i32, %c0_i32_0 : i32, i32
  }
  func.func @transform_6(%arg0: i32, %arg1: i32) -> (i32, i32) {
    %c0_i32 = arith.constant 0 : i32
    %c0_i32_0 = arith.constant 0 : i32
    %c0_i32_1 = arith.constant 0 : i32
    return %c0_i32, %c0_i32_0 : i32, i32
  }
  func.func @transform_7(%arg0: i32, %arg1: i32) -> (i32, i32) {
    %c0_i32 = arith.constant 0 : i32
    %c0_i32_0 = arith.constant 0 : i32
    %c0_i32_1 = arith.constant 0 : i32
    return %c0_i32, %c0_i32_0 : i32, i32
  }
  func.func @transform_8(%arg0: i32, %arg1: i32) -> (i32, i32) {
    %c0_i32 = arith.constant 0 : i32
    %c0_i32_0 = arith.constant 0 : i32
    %c0_i32_1 = arith.constant 0 : i32
    return %c0_i32, %c0_i32_0 : i32, i32
  }
  func.func @transform_9(%arg0: i32, %arg1: i32) -> (i32, i32, i32) {
    %c0_i32 = arith.constant 0 : i32
    %c0_i32_0 = arith.constant 0 : i32
    return %arg0, %arg1, %c0_i32 : i32, i32, i32
  }
}

</mosaic_0001>

<bundles_post_ra>
// kernel: tpu_custom_call.1
= control target key start
LH: loop header
LB: loop body
LE: loop exit
PB: predicated region body
PF: predicated region fallthrough
CT: control target
= control target key end

     0   :  { %s3223_s0 = inlined_call_operand.hbm [shape: f32[2,32,128], index: 0, kind: input, shape index: {}]   ;;  %s3224_s1 = inlined_call_operand.hbm [shape: f32[2,32,128], index: 1, kind: input, shape index: {}]   ;;  %s3225_s2 = inlined_call_operand.hbm [shape: f32[2,2,16], index: 2, kind: input, shape index: {}]   ;;  %s3226_s3 = inlined_call_operand.hbm [shape: f32[128,128], index: 3, kind: input, shape index: {}]   ;;  %s3227_s4 = inlined_call_operand.vmem [shape: f32[1,128], index: 4, kind: input, shape index: {}]   ;;  %s3228_s5 = inlined_call_operand.hbm [shape: f32[128,256], index: 5, kind: input, shape index: {}]   ;;  %s3229_s6 = inlined_call_operand.vmem [shape: f32[1,256], index: 6, kind: input, shape index: {}]   ;;  %s3230_s7 = inlined_call_operand.hbm [shape: f32[128,128], index: 7, kind: input, shape index: {}]   ;;  %s3231_s8 = inlined_call_operand.vmem [shape: f32[1,128], index: 8, kind: input, shape index: {}]   ;;  %s3232_s9 = inlined_call_operand.hbm [shape: f32[2,32,128], index: 9, kind: output, shape index: {}]  }
   0x1   :  { %3242 = sst [smem:[#allocation28_spill]] %s3224_s1 }
   0x2   :  { %3243 = sst [smem:[#allocation29_spill]] %s3225_s2 }
   0x3   :  { %3244 = sst [smem:[#allocation30_spill]] %s3226_s3 }
   0x4   :  { %3245 = sst [smem:[#allocation31_spill]] %s3227_s4 }
   0x5   :  { %3246 = sst [smem:[#allocation32_spill]] %s3228_s5 }
   0x6   :  { %3247 = sst [smem:[#allocation33_spill]] %s3229_s6 }
   0x7   :  { %3248 = sst [smem:[#allocation34_spill]] %s3230_s7 }
   0x8   :  { %3249 = sst [smem:[#allocation35_spill]] %s3231_s8 }
   0x9   :  { %3250 = sst [smem:[#allocation36_spill]] %s3232_s9 }
   0xa   :  { %14 = vsyncpa [#allocation7], 0 }
   0xb   :  { %16 = vsyncpa [#allocation7 + $0x1], 0 }
   0xc   :  { %17 = vsyncpa [#allocation10], 0 }
   0xd   :  { %18 = vsyncpa [#allocation13], 0 }
   0xe   :  { %19 = vsyncpa [#allocation16], 0 }
   0xf   :  { %20 = vsyncpa [#allocation8], 0 }
  0x10   :  { %22 = vsyncpa [#allocation8 + $0x1], 0  ;;  %s2552_s30 = smov 0   ;;  %s2554_s10 = smov 0  }
  0x11   :  { %s2556_s11 = smov 0   ;;  %s2558_s12 = smov 0  }
  0x12   :  { %s2560_s13 = smov 0   ;;  %s2562_s14 = smov 0  }
  0x13   :  { %s2564_s15 = smov 0   ;;  %s2566_s16 = smov 0  }
  0x14   :  { %s2568_s17 = smov 0   ;;  %s2570_s18 = smov 0  }
  0x15   :  { %s2572_s19 = smov 0  }
  0x16 LB: > { %3251 = sst [smem:[#allocation23_spill]] %s2449_s10  ;;  %s3233_s20 = sadd.s32 4294967295, %s2485_s19   ;;  %s2485_s19 = sphi %s2572_s19, %s28_s19   ;;  %s2481_s18 = sphi %s2570_s18, %s3293_s18   ;;  %s2477_s17 = sphi %s2568_s17, %s3292_s17   ;;  %s2473_s16 = sphi %s2566_s16, %s3291_s16   ;;  %s2469_s15 = sphi %s2564_s15, %s3290_s15   ;;  %s2465_s14 = sphi %s2562_s14, %s3289_s14   ;;  %s2461_s13 = sphi %s2560_s13, %s3288_s13   ;;  %s2457_s12 = sphi %s2558_s12, %s3287_s12   ;;  %s2453_s11 = sphi %s2556_s11, %s3286_s11   ;;  %s2449_s10 = sphi %s2554_s10, %s3285_s10   ;;  %s2445_s30 = sphi %s2552_s30, %s3284_s30  }
  0x17   : > { %3252 = sst [smem:[#allocation24_spill]] %s2469_s15  ;;  %p88_p0 = scmp.ne.s32.totalorder %s2449_s10, %s2445_s30 }
  0x18   : > { %3253 = sst [smem:[#allocation25_spill]] %s2473_s16  ;;  %p2609_p1 = scmp.eq.s32.totalorder %s3233_s20, 0 }
  0x19   : > { %p1788_p2 = scmp.ge.s32.totalorder %s2485_s19, 1  ;;  %p279_p3 = scmp.lt.s32.totalorder %s2485_s19, 5 }
  0x1a   : > { %s1861_s22 = sshll.u32 %s2473_s16, 5  ;;  %p2618_p4 = por %p88_p0, %p2609_p1 }
  0x1b   : > { %s3257_s1 = sld [smem:[#allocation28_spill]]  ;;  %p2625_p5 = pnand %p1788_p2, %p279_p3 }
  0x1c   : > { %s3255_s23 = scalar_select %p2618_p4, 1, 0 }
  0x1d   : > { %p1916_p6 = pneg %p2625_p5  ;;  %s2487_s29 = smov [#allocation9]  }
  0x1e   : > { %3256 = sst [smem:[#allocation26_spill]] %s3255_s23  ;;  %s295_s30 = sshll.u32 %s2487_s29, 4  ;;  %s296_s30 = int_to_ptr.vmem [resolvable:$true] %s295_s30 }
  0x1f   : > { %p2636_p7 = pnand %p1916_p6, %p2618_p4  ;;  %s3260_s3 = sld [smem:[#allocation30_spill]] }
  0x21   : > { %s292_s26 = scalar_lea.hbm %s3257_s1, %s1861_s22  ;;  %p2175_p9 = pneg %p2636_p7 }
  0x22   : > { %s293_s28 = sshll.u32 %s292_s26, 4  ;;  %s2178_s8 = scalar_lea.hbm %s3257_s1, 64  ;;  %s294_s28 = int_to_ptr.hbm [resolvable:$true] %s293_s28 }
  0x23   : > { %s2171_s26 = sshra.s32 %s294_s28, 4  ;;  %s2172_s26 = int_to_ptr.hbm [resolvable:$true] %s2171_s26 }
  0x24   : > { %s2173_s10 = scalar_lea.hbm %s2172_s26, 32  ;;  %p2179_p12 = scmp.lt.s32.totalorder %s2172_s26, %s3257_s1 }
  0x25   : > { %s321_s20 = sshll.u32 %s3260_s3, 4  ;;  %p2174_p8 = scmp.ne.s32.totalorder %s2172_s26, %s2173_s10  ;;  %s322_s20 = int_to_ptr.hbm [resolvable:$true] %s321_s20 }
  0x26   : > { %p2180_p13 = scmp.lt.s32.totalorder %s2178_s8, %s2173_s10 }
  0x27   : > { %p2176_p10 = pnand %p2175_p9, %p2174_p8 }
  0x28   : > { %p2181_p0 = por %p2180_p13, %p2179_p12 }
  0x29   : > { %p2177_p11 = pneg %p2176_p10 }
  0x2b   : > { %p2182_p2 = pnand %p2181_p0, %p2177_p11 }
  0x2d   : > { %2185 = shalt.err (!%p2182_p2)
}
  0x2e   : > { %s3239_s22 = smov 128   ;;  %s3240_s25 = smov 8  }
  0x2f   : > { %1919 = dma.hbm_to_vmem [thread:$0]  (!%p2636_p7), %s294_s28, 512, %s296_s30, [#allocation10], %s3239_s22, %s3239_s22, %s3240_s25  }
  0x30   : > { %s2490_s9 = smov [#allocation12]   ;;  %p2664_p3 = pnand %p1916_p6, %p2609_p1 }
  0x31   : > { %s323_s29 = sshll.u32 %s2490_s9, 4  ;;  %s1791_s6 = sshll.u32 %s2473_s16, 1  ;;  %s324_s29 = int_to_ptr.vmem [resolvable:$true] %s323_s29 }
  0x32   : > { %s3262_s2 = sld [smem:[#allocation29_spill]]  ;;  %s2491_s30 = smov [#allocation11]  }
  0x33   : > { %1925 = dma.hbm_to_vmem [thread:$0]  (!%p2664_p3), %s322_s20, 2048, %s324_s29, [#allocation13], %s3239_s22, %s3239_s22, %s3240_s25  }
  0x34   : > { %s312_s9 = sshll.u32 %s2491_s30, 4  ;;  %s3263_s5 = sld [smem:[#allocation32_spill]]  ;;  %s313_s9 = int_to_ptr.vmem [resolvable:$true] %s312_s9 }
  0x38   : > { %s308_s26 = scalar_lea.hbm %s3262_s2, %s1791_s6  ;;  %s2238_s20 = scalar_lea.hbm %s3262_s2, 4 }
  0x39   : > { %s310_s28 = sshll.u32 %s308_s26, 4  ;;  %s311_s28 = int_to_ptr.hbm [resolvable:$true] %s310_s28 }
  0x3a   : > { %s338_s15 = sshll.u32 %s3263_s5, 4  ;;  %s2231_s23 = sshra.s32 %s311_s28, 4  ;;  %s2232_s23 = int_to_ptr.hbm [resolvable:$true] %s2231_s23  ;;  %s339_s15 = int_to_ptr.hbm [resolvable:$true] %s338_s15 }
  0x3b   : > { %s2233_s16 = scalar_lea.hbm %s2232_s23, 2  ;;  %p2239_p11 = scmp.lt.s32.totalorder %s2232_s23, %s3262_s2 }
  0x3c   : > { %p2234_p6 = scmp.ne.s32.totalorder %s2232_s23, %s2233_s16  ;;  %p2240_p12 = scmp.lt.s32.totalorder %s2238_s20, %s2233_s16 }
  0x3e   : > { %p2236_p8 = pnand %p2234_p6, %p2175_p9  ;;  %p2241_p13 = por %p2240_p12, %p2239_p11 }
  0x40   : > { %p2237_p10 = pneg %p2236_p8 }
  0x42   : > { %p2242_p0 = pnand %p2241_p13, %p2237_p10 }
  0x44   : > { %2245 = shalt.err (!%p2242_p0)
}
  0x45   : > { %1922 = dma.hbm_to_vmem [thread:$0]  (!%p2636_p7), %s311_s28, 32, %s313_s9, [#allocation10]  }
  0x46   : > { %s2492_s1 = smov [#allocation14]   ;;  %s2493_s23 = smov 256  }
  0x47   : > { %s340_s3 = sshll.u32 %s2492_s1, 4  ;;  %s2494_s16 = smov 16   ;;  %s341_s3 = int_to_ptr.vmem [resolvable:$true] %s340_s3 }
  0x48   : > { %1928 = dma.hbm_to_vmem [thread:$0]  (!%p2664_p3), %s339_s15, 4096, %s341_s3, [#allocation13], %s2493_s23, %s2493_s23, %s2494_s16  }
  0x49   : > { %s3264_s7 = sld [smem:[#allocation34_spill]]  ;;  %s2495_s28 = smov [#allocation15]  }
  0x4a   : > { %s357_s9 = sshll.u32 %s2495_s28, 4  ;;  %s1787_s15 = sadd.s32 4294967294, %s2485_s19   ;;  %s358_s9 = int_to_ptr.vmem [resolvable:$true] %s357_s9 }
  0x4b   : > { %s37_s6 = sadd.s32 1, %s2477_s17  ;;  %s40_s8 = sadd.s32 1, %s2481_s18 }
  0x4c   : > { %p38_p7 = scmp.ge.s32.totalorder %s37_s6, 2  ;;  %s49_s20 = sadd.s32 1, %s2465_s14 }
  0x4d   : > { %p56_p9 = scmp.ne.s32.totalorder %s2465_s14, %s2461_s13  ;;  %p57_p2 = scmp.eq.s32.totalorder %s2485_s19, 0 }
  0x4e   : > { %s3295_s6 = smov (%p38_p7, %s37_s6), 0  ;;  %s3297_s8 = smov (!%p38_p7, %s40_s8), %s2481_s18 }
  0x4f   : > { %s355_s30 = sshll.u32 %s3264_s7, 4  ;;  %s45_s4 = ssub.s32 %s2477_s17, %s3295_s6  ;;  %s356_s30 = int_to_ptr.hbm [resolvable:$true] %s355_s30 }
  0x50   : > { %1931 = dma.hbm_to_vmem [thread:$0]  (!%p2664_p3), %s356_s30, 2048, %s358_s9, [#allocation16], %s3239_s22, %s3239_s22, %s3240_s25  }
  0x51   : > { %p42_p3 = scmp.ge.s32.totalorder %s3297_s8, 2  ;;  %p62_p6 = scmp.ne.s32.totalorder %s2461_s13, %s2457_s12 }
  0x52   : > { %s75_s29 = sadd.s32 1, %s2453_s11  ;;  %s3265_s10 = sadd.s32 4294967295, %s2485_s19  }
  0x53   : > { %p266_p8 = scmp.eq.s32.totalorder %s3265_s10, 3  ;;  %s3299_s8 = smov (%p42_p3, %s3297_s8), 0 }
  0x54   : > { %3266 = sst [smem:[#allocation27_spill]] %s3299_s8  ;;  %p2722_p10 = por %p2609_p1, %p62_p6 }
  0x55   : > { %p2729_p11 = por %p266_p8, %p56_p9  ;;  %s44_s23 = ssub.s32 %s2481_s18, %s3299_s8 }
  0x56   : > { %p272_p12 = scmp.eq.s32.totalorder %s1787_s15, 3  ;;  %s46_s16 = sor.u32 %s45_s4, %s44_s23 }
  0x57   : > { %p73_p13 = scmp.eq.s32.totalorder %s44_s23, 0  ;;  %p47_p0 = scmp.eq.s32.totalorder %s46_s16, 0 }
  0x58   : > { %p2735_p7 = por %p272_p12, %p62_p6  ;;  %p58_p3 = por %p57_p2, %p56_p9 }
  0x59   : > { %s2740_s26 = scalar_select %p73_p13, %s2453_s11, %s75_s29  }
  0x5a   : > { %s2743_s30 = scalar_select %p47_p0, %s2465_s14, %s49_s20  }
  0x5b   : > { %s374_s28 = sand.u32 1, %s2465_s14   ;;  %p1943_p8 = scmp.lt.s32.totalorder %s2485_s19, 4 }
  0x5c   : > { %s1796_s9 = sshll.u32 %s374_s28, 4  ;;  %s1797_s10 = sshll.u32 %s2477_s17, 1 }
  0x5d   : > { %s1798_s22 = sshll.u32 %s2481_s18, 2  ;;  %s378_s15 = scalar_lea.vmem [#allocation6], %s1796_s9 }
  0x5e   : > { %s388_s4 = sshll.u32 %s378_s15, 4  ;;  %s383_s23 = sadd.s32 %s1798_s22, %s1797_s10  ;;  %s389_s4 = int_to_ptr.vmem [resolvable:$true] %s388_s4 }
  0x5f   : > { %s1799_s16 = sshll.u32 %s383_s23, 3  ;;  %p1933_p6 = pnand %p1943_p8, %p58_p3 }
  0x60   : > { %s385_s29 = scalar_lea.hbm %s3223_s0, %s1799_s16  ;;  %s375_s5 = scalar_lea.sflag [#allocation7], %s374_s28 }
  0x61   : > { %s386_s20 = sshll.u32 %s385_s29, 4  ;;  %s3270_s7 = smov 8   ;;  %s387_s20 = int_to_ptr.hbm [resolvable:$true] %s386_s20 }
  0x62   : > { %s3271_s8 = smov 128   ;;  %400 = sbr.rel (%p2625_p5) target bundleno = 1764 (0x6e4), region = 56 }
  0x63   : > { %1935 = dma.hbm_to_vmem [thread:$0]  (!%p1933_p6), %s387_s20, 256, %s389_s4, %s375_s5, %s3271_s8, %s3271_s8, %s3270_s7  }
  0x64   : > { %s2763_s22 = sand.u32 (!%p2625_p5), 1, %s2461_s13  }
  0x65   : > { %s1801_s9 = sshll.u32 (!%p2625_p5), %s2763_s22, 4  ;;  %s403_s2 = scalar_lea.sflag (!%p2625_p5), [#allocation7], %s2763_s22 }
  0x66   : > { %s2767_s25 = scalar_lea.vmem (!%p2625_p5), [#allocation6], %s1801_s9 }
  0x67   : > { %2424 = dma.done.wait (%p2722_p10), %s403_s2, 256  }
  0x68   : > { %2426 = vsyncadd (%p2722_p10), %s403_s2, 4294967040 }
  0x69   : > { %2428 = dma.done.wait (%p2618_p4), [#allocation10], 544  }
  0x6a   : > { %2430 = vsyncadd (%p2618_p4), [#allocation10], 4294966752 }
  0x6b   : > { %2432 = dma.done.wait (%p2609_p1), [#allocation13], 6144  }
  0x6c   : > { %2434 = vsyncadd (%p2609_p1), [#allocation13], 4294961152 }
  0x6d   : > { %2436 = dma.done.wait (%p2609_p1), [#allocation16], 2048  }
  0x6e   : > { %2438 = vsyncadd (%p2609_p1), [#allocation16], 4294965248  ;;  %s2785_s5 = scalar_lea.vmem [#allocation17], %s1801_s9  ;;  %s3273_s7 = sld [smem:[#allocation24_spill]] }
  0x74   : > { %p1806_p5 = scmp.ne.s32.totalorder %s3273_s7, 0 }
  0x75   : > { %s3274_s8 = sld [smem:[#allocation33_spill]] (!%p1806_p5) }
  0x76   : > { %472 = sbr.rel (%p1806_p5) target bundleno = 299 (0x12b), region = 84 }
  0x7b   : > { %v507_v0 = vld [vmem:[#allocation14 + $0xf0] sm:$0xff]  ;;  %v508_v1 = vld [vmem:[#allocation14 + $0xf8] sm:$0xff]  ;;  %v505_v2 = vld [vmem:[#allocation14 + $0xe0] sm:$0xff]  ;;  %v2496_v37 = vmov -1e+09   ;;  %vm584_vm1 = vcmask 123904  }
  0x7c   : > { %1862 = vmatpush.msra.mxu2 %v507_v0  ;;  %1878 = vmatpush.msra.mxu3 %v508_v1  ;;  %v506_v3 = vld [vmem:[#allocation14 + $0xe8] sm:$0xff]  ;;  %v503_v4 = vld [vmem:[#allocation14 + $0xd0] sm:$0xff]  ;;  %v504_v5 = vld [vmem:[#allocation14 + $0xd8] sm:$0xff] }
  0x7d   : > { %515 = vmatpush.msra.mxu0 %v507_v0  ;;  %544 = vmatpush.msra.mxu1 %v508_v1  ;;  %v501_v6 = vld [vmem:[#allocation14 + $0xc0] sm:$0xff]  ;;  %v502_v7 = vld [vmem:[#allocation14 + $0xc8] sm:$0xff]  ;;  %v499_v8 = vld [vmem:[#allocation14 + $0xb0] sm:$0xff] }
  0x7e   : > { %1863 = vmatpush.msra.mxu2 %v505_v2  ;;  %1879 = vmatpush.msra.mxu3 %v506_v3  ;;  %v500_v9 = vld [vmem:[#allocation14 + $0xb8] sm:$0xff]  ;;  %v497_v10 = vld [vmem:[#allocation14 + $0xa0] sm:$0xff]  ;;  %v498_v11 = vld [vmem:[#allocation14 + $0xa8] sm:$0xff] }
  0x7f   : > { %516 = vmatpush.msra.mxu0 %v505_v2  ;;  %545 = vmatpush.msra.mxu1 %v506_v3  ;;  %v495_v12 = vld [vmem:[#allocation14 + $0x90] sm:$0xff]  ;;  %v496_v13 = vld [vmem:[#allocation14 + $0x98] sm:$0xff]  ;;  %v493_v14 = vld [vmem:[#allocation14 + $0x80] sm:$0xff] }
  0x80   : > { %1864 = vmatpush.msra.mxu2 %v503_v4  ;;  %1880 = vmatpush.msra.mxu3 %v504_v5  ;;  %v494_v15 = vld [vmem:[#allocation14 + $0x88] sm:$0xff]  ;;  %v491_v16 = vld [vmem:[#allocation14 + $0x70] sm:$0xff]  ;;  %v492_v17 = vld [vmem:[#allocation14 + $0x78] sm:$0xff] }
  0x81   : > { %517 = vmatpush.msra.mxu0 %v503_v4  ;;  %546 = vmatpush.msra.mxu1 %v504_v5  ;;  %v489_v18 = vld [vmem:[#allocation14 + $0x60] sm:$0xff]  ;;  %v490_v19 = vld [vmem:[#allocation14 + $0x68] sm:$0xff]  ;;  %v487_v20 = vld [vmem:[#allocation14 + $0x50] sm:$0xff] }
  0x82   : > { %1865 = vmatpush.msra.mxu2 %v501_v6  ;;  %1881 = vmatpush.msra.mxu3 %v502_v7  ;;  %v488_v21 = vld [vmem:[#allocation14 + $0x58] sm:$0xff]  ;;  %v485_v22 = vld [vmem:[#allocation14 + $0x40] sm:$0xff]  ;;  %v486_v23 = vld [vmem:[#allocation14 + $0x48] sm:$0xff] }
  0x83   : > { %518 = vmatpush.msra.mxu0 %v501_v6  ;;  %547 = vmatpush.msra.mxu1 %v502_v7  ;;  %v483_v24 = vld [vmem:[#allocation14 + $0x30] sm:$0xff]  ;;  %v484_v25 = vld [vmem:[#allocation14 + $0x38] sm:$0xff]  ;;  %v481_v26 = vld [vmem:[#allocation14 + $0x20] sm:$0xff] }
  0x84   : > { %1866 = vmatpush.msra.mxu2 %v499_v8  ;;  %1882 = vmatpush.msra.mxu3 %v500_v9  ;;  %v482_v27 = vld [vmem:[#allocation14 + $0x28] sm:$0xff]  ;;  %v479_v28 = vld [vmem:[#allocation14 + $0x10] sm:$0xff]  ;;  %v480_v29 = vld [vmem:[#allocation14 + $0x18] sm:$0xff] }
  0x85   : > { %519 = vmatpush.msra.mxu0 %v499_v8  ;;  %548 = vmatpush.msra.mxu1 %v500_v9  ;;  %v477_v30 = vld [vmem:[#allocation14] sm:$0xff]  ;;  %v478_v31 = vld [vmem:[#allocation14 + $0x8] sm:$0xff]  ;;  %v476_v34 = vld [vmem:[#allocation9 + $0x18] sm:$0xff] }
  0x86   : > { %1867 = vmatpush.msra.mxu2 %v497_v10  ;;  %1883 = vmatpush.msra.mxu3 %v498_v11  ;;  %v475_v32 = vld [vmem:[#allocation9 + $0x10] sm:$0xff]  ;;  %v473_v33 = vld [vmem:[#allocation9] sm:$0xff]  ;;  %v474_v35 = vld [vmem:[#allocation9 + $0x8] sm:$0xff] }
  0x87   : > { %520 = vmatpush.msra.mxu0 %v497_v10  ;;  %549 = vmatpush.msra.mxu1 %v498_v11  ;;  %v581_v36 = vld [vmem:[#allocation11] sm:$0x3]  ;;  %v509_v39 = vld [vmem:[%s3274_s8] sm:$0x3] }
  0x88   : > { %1868 = vmatpush.msra.mxu2 %v495_v12  ;;  %1884 = vmatpush.msra.mxu3 %v496_v13  ;;  %vm582_vm0 = vcmp.gt.f32.partialorder %v581_v36, 0.0  ;;  %v511_v40 = vperm.slane %v509_v39, 0  ;;  %v512_v41 = vperm.slane %v509_v39, 1 }
  0x89   : > { %521 = vmatpush.msra.mxu0 %v495_v12  ;;  %550 = vmatpush.msra.mxu1 %v496_v13  ;;  %v583_v38 = vsel %vm582_vm0, 0.0, %v2496_v37 }
  0x8a   : > { %1869 = vmatpush.msra.mxu2 %v493_v14  ;;  %1885 = vmatpush.msra.mxu3 %v494_v15  ;;  %585 = vst.msk [vmem:[#allocation5] sm:$0x3] %vm584_vm1, %v583_v38 }
  0x8b   : > { %522 = vmatpush.msra.mxu0 %v493_v14  ;;  %551 = vmatpush.msra.mxu1 %v494_v15 }
  0x8c   : > { %1870 = vmatpush.msra.mxu2 %v491_v16  ;;  %1886 = vmatpush.msra.mxu3 %v492_v17 }
  0x8d   : > { %523 = vmatpush.msra.mxu0 %v491_v16  ;;  %552 = vmatpush.msra.mxu1 %v492_v17 }
  0x8e   : > { %1871 = vmatpush.msra.mxu2 %v489_v18  ;;  %1887 = vmatpush.msra.mxu3 %v490_v19 }
  0x8f   : > { %524 = vmatpush.msra.mxu0 %v489_v18  ;;  %553 = vmatpush.msra.mxu1 %v490_v19 }
  0x90   : > { %1872 = vmatpush.msra.mxu2 %v487_v20  ;;  %1888 = vmatpush.msra.mxu3 %v488_v21 }
  0x91   : > { %525 = vmatpush.msra.mxu0 %v487_v20  ;;  %554 = vmatpush.msra.mxu1 %v488_v21 }
  0x92   : > { %1873 = vmatpush.msra.mxu2 %v485_v22  ;;  %1889 = vmatpush.msra.mxu3 %v486_v23 }
  0x93   : > { %526 = vmatpush.msra.mxu0 %v485_v22  ;;  %555 = vmatpush.msra.mxu1 %v486_v23 }
  0x94   : > { %1874 = vmatpush.msra.mxu2 %v483_v24  ;;  %1890 = vmatpush.msra.mxu3 %v484_v25 }
  0x95   : > { %527 = vmatpush.msra.mxu0 %v483_v24  ;;  %556 = vmatpush.msra.mxu1 %v484_v25 }
  0x96   : > { %1875 = vmatpush.msra.mxu2 %v481_v26  ;;  %1891 = vmatpush.msra.mxu3 %v482_v27 }
  0x97   : > { %528 = vmatpush.msra.mxu0 %v481_v26  ;;  %557 = vmatpush.msra.mxu1 %v482_v27 }
  0x98   : > { %1876 = vmatpush.msra.mxu2 %v479_v28  ;;  %1892 = vmatpush.msra.mxu3 %v480_v29 }
  0x99   : > { %529 = vmatpush.msra.mxu0 %v479_v28  ;;  %558 = vmatpush.msra.mxu1 %v480_v29 }
  0x9a   : > { %1877 = vmatpush.msra.mxu2 %v477_v30  ;;  %1893 = vmatpush.msra.mxu3 %v478_v31 }
  0x9b   : > { %537 = vmatmul.f32.vlgmr.msra.gmra.mxu2 %v475_v32  ;;  %566 = vmatmul.f32.vlgmr.msra.gmra.mxu3 %v475_v32 }
  0x9c   : > { %530 = vmatpush.msra.mxu0 %v477_v30  ;;  %559 = vmatpush.msra.mxu1 %v478_v31 }
  0x9d   : > { %531 = vmatmul.f32.vlgmr.msra.gmra.mxu0 %v473_v33  ;;  %560 = vmatmul.f32.vlgmr.msra.gmra.mxu1 %v473_v33 }
  0xa3   : > { %540 = vmatmul.f32.gmra.mxu2 %v476_v34  ;;  %569 = vmatmul.f32.gmra.mxu3 %v476_v34 }
  0xa5   : > { %534 = vmatmul.f32.gmra.mxu0 %v474_v35  ;;  %563 = vmatmul.f32.gmra.mxu1 %v474_v35 }
 0x11a   : > { %v532_v42 = vpop.f32.mrf.mxu0  ;;  %v561_v43 = vpop.f32.mrf.mxu1 }
 0x11b   : > { %v533_v44 = vadd.f32 %v532_v42, %v511_v40  ;;  %v562_v45 = vadd.f32 %v561_v43, %v512_v41 }
 0x11d   : > { %573 = vst [vmem:[#allocation3 + $0x30] sm:$0xff] %v533_v44 }
 0x11e   : > { %v538_v46 = vpop.f32.mrf.mxu2  ;;  %574 = vst [vmem:[#allocation3] sm:$0xff] %v562_v45  ;;  %v567_v47 = vpop.f32.mrf.mxu3 }
 0x11f   : > { %v539_v48 = vadd.f32 %v538_v46, %v511_v40  ;;  %v568_v49 = vadd.f32 %v567_v47, %v512_v41 }
 0x121   : > { %577 = vst [vmem:[#allocation3 + $0x8] sm:$0xff] %v539_v48 }
 0x122   : > { %578 = vst [vmem:[#allocation3 + $0x20] sm:$0xff] %v568_v49  ;;  %v535_v50 = vpop.f32.mrf.mxu0  ;;  %v564_v51 = vpop.f32.mrf.mxu1 }
 0x123   : > { %v536_v52 = vadd.f32 %v535_v50, %v511_v40  ;;  %v565_v53 = vadd.f32 %v564_v51, %v512_v41 }
 0x125   : > { %575 = vst [vmem:[#allocation3 + $0x18] sm:$0xff] %v536_v52 }
 0x126   : > { %v541_v54 = vpop.f32.mrf.mxu2  ;;  %576 = vst [vmem:[#allocation3 + $0x10] sm:$0xff] %v565_v53  ;;  %v570_v55 = vpop.f32.mrf.mxu3 }
 0x127   : > { %v542_v56 = vadd.f32 %v541_v54, %v511_v40  ;;  %v571_v57 = vadd.f32 %v570_v55, %v512_v41 }
 0x129   : > { %579 = vst [vmem:[#allocation3 + $0x28] sm:$0xff] %v542_v56 }
 0x12a   : > { %580 = vst [vmem:[#allocation3 + $0x38] sm:$0xff] %v571_v57 }
 0x12b PF: > { %v603_v58 = vld [vmem:[#allocation12 + $0x78] sm:$0xff]  ;;  %v602_v59 = vld [vmem:[#allocation12 + $0x70] sm:$0xff]  ;;  %v601_v60 = vld [vmem:[#allocation12 + $0x68] sm:$0xff]  ;;  %vm646_vm2 = vcmask 261120   ;;  %s2497_s1 = smov 96   ;;  %s3275_s4 = sld [smem:[#allocation31_spill]] }
 0x12c   : > { %608 = vmatpush.msra.mxu0 %v603_v58  ;;  %v600_v61 = vld [vmem:[#allocation12 + $0x60] sm:$0xff]  ;;  %v599_v62 = vld [vmem:[#allocation12 + $0x58] sm:$0xff]  ;;  %v598_v63 = vld [vmem:[#allocation12 + $0x50] sm:$0xff]  ;;  %s2498_s23 = smov 64   ;;  %vm682_vm3 = vcmask 130048   ;;  %s2499_s16 = smov 32  }
 0x12d   : > { %v2791_v0 = vld [vmem:[#allocation3 + $0x18] sm:$0xff]  ;;  %v2797_v3 = vld [vmem:[#allocation3 + $0x30] sm:$0xff]  ;;  %v594_v5 = vld [vmem:[#allocation12 + $0x30] sm:$0xff]  ;;  %vm1089_vm4 = vcmask 523520   ;;  %vm1332_vm5 = vcmask 785920   ;;  %vm1575_vm6 = vcmask 1048320  }
 0x12e   : > { %609 = vmatpush.msra.mxu0 %v602_v59  ;;  %867 = vrot.lane.b32.xlu1 %v2791_v0, %s2497_s1  ;;  %v597_v1 = vld [vmem:[#allocation12 + $0x48] sm:$0xff]  ;;  %v596_v2 = vld [vmem:[#allocation12 + $0x40] sm:$0xff]  ;;  %v595_v4 = vld [vmem:[#allocation12 + $0x38] sm:$0xff]  ;;  %s3276_s29 = sld [smem:[#allocation24_spill]]  ;;  %s1626_s9 = scalar_lea.sflag [#allocation8], %s2763_s22 }
 0x12f   : > { %1807 = vmatpush.xpose.msk.msra.mxu1 %vm646_vm2, %v2791_v0  ;;  %v593_v6 = vld [vmem:[#allocation12 + $0x28] sm:$0xff]  ;;  %v592_v7 = vld [vmem:[#allocation12 + $0x20] sm:$0xff]  ;;  %v591_v8 = vld [vmem:[#allocation12 + $0x18] sm:$0xff]  ;;  %s3277_s20 = sld [smem:[#allocation25_spill]] }
 0x130   : > { %610 = vmatpush.msra.mxu0 %v601_v60  ;;  %v590_v9 = vld [vmem:[#allocation12 + $0x10] sm:$0xff]  ;;  %v589_v10 = vld [vmem:[#allocation12 + $0x8] sm:$0xff]  ;;  %v588_v11 = vld [vmem:[#allocation12] sm:$0xff]  ;;  %s3279_s10 = sld [smem:[#allocation36_spill]] }
 0x131   : > { %v586_v12 = vld [vmem:[%s2767_s25] sm:$0xff]  ;;  %v587_v14 = vld [vmem:[%s2767_s25 + $0x8] sm:$0xff]  ;;  %s3278_s25 = sld [smem:[#allocation35_spill]] }
 0x132   : > { %611 = vmatpush.msra.mxu0 %v600_v61  ;;  %v2804_v13 = vld [vmem:[#allocation3 + $0x28] sm:$0xff]  ;;  %v2081_v18 = vld [vmem:[%s3275_s4] ss:$0 sm:$0xff]  ;;  %v854_v28 = vld [vmem:[#allocation3 + $0x10] sm:$0xff] }
 0x133   : > { %1808 = vmatpush.xpose.msk.msra.mxu1 %vm646_vm2, %v2797_v3  ;;  %v2809_v15 = vld [vmem:[#allocation3 + $0x8] sm:$0xff]  ;;  %v853_v27 = vld [vmem:[#allocation3] sm:$0xff]  ;;  %731 = vmatpush.msra.mxu2 %v854_v28  ;;  %v2082_v30 = vld [vmem:[#allocation5] ss:$0 sm:$0xff] }
 0x134   : > { %612 = vmatpush.msra.mxu0 %v599_v62  ;;  %v2844_v29 = vpack.i.bf16 %v853_v27, %v854_v28  ;;  %v2857_v36 = vld [vmem:[#allocation5 + $0x1] ss:$0 sm:$0xff]  ;;  %v2084_v41 = vld [vmem:[#allocation5] ss:$0 sm:$0xff]  ;;  %v2877_v53 = vld [vmem:[#allocation3 + $0x38] sm:$0xff]  ;;  %s1856_s28 = sshll.u32 %s3276_s29, 1 }
 0x135   : > { %732 = vmatpush.msra.mxu2 %v853_v27  ;;  %v2885_v56 = vld [vmem:[#allocation3 + $0x20] sm:$0xff]  ;;  %s1857_s7 = sshll.u32 %s3277_s20, 2 }
 0x136   : > { %613 = vmatpush.msra.mxu0 %v598_v63  ;;  %865 = vrot.lane.b32.xlu1 %v2797_v3, %s2497_s1  ;;  %s1637_s21 = sadd.s32 %s1857_s7, %s1856_s28  ;;  %s3280_s4 = smov %s3279_s10 }
 0x137   : > { %1894 = vmatpush.xpose.msk.msrb.mxu2 %vm646_vm2, %v2804_v13  ;;  %s1858_s27 = sshll.u32 %s1637_s21, 3  ;;  %s2371_s28 = scalar_lea.hbm %s3280_s4, 64 }
 0x138   : > { %614 = vmatpush.msra.mxu0 %v597_v1  ;;  %s1639_s15 = scalar_lea.hbm %s3279_s10, %s1858_s27 }
 0x13a   : > { %615 = vmatpush.msra.mxu0 %v596_v2 }
 0x13b   : > { %1895 = vmatpush.xpose.msk.msrb.mxu2 %vm646_vm2, %v2809_v15 }
 0x13c   : > { %616 = vmatpush.msra.mxu0 %v595_v4 }
 0x13e   : > { %617 = vmatpush.msra.mxu0 %v594_v5  ;;  %975 = vrot.lane.b32.xlu1 %v2809_v15, %s2497_s1 }
 0x140   : > { %618 = vmatpush.msra.mxu0 %v593_v6 }
 0x142   : > { %619 = vmatpush.msra.mxu0 %v592_v7 }
 0x144   : > { %620 = vmatpush.msra.mxu0 %v591_v8 }
 0x146   : > { %621 = vmatpush.msra.mxu0 %v590_v9  ;;  %1220 = vrot.lane.b32.xlu1 %v2804_v13, %s2498_s23 }
 0x148   : > { %622 = vmatpush.msra.mxu0 %v589_v10 }
 0x14a   : > { %623 = vmatpush.msra.mxu0 %v588_v11 }
 0x14b   : > { %624 = vmatmul.f32.vlgmr.msra.gmra.mxu0 %v586_v12 }
 0x14c   : > { %1813 = vmatpush.xpose.msk.msrb.mxu0 %vm646_vm2, %v2804_v13 }
 0x150   : > { %1814 = vmatpush.xpose.msk.msrb.mxu0 %vm646_vm2, %v2809_v15 }
 0x153   : > { %627 = vmatmul.f32.gmra.mxu0 %v587_v14 }
 0x1a0   : > { %v868_v16 = vpop.permute.xlu1 %867 }
 0x1a1   : > { %1819 = vmatpush.xpose.msk.msrb.mxu1 %vm646_vm2, %v868_v16 }
 0x1a8   : > { %v866_v17 = vpop.permute.xlu1 %865 }
 0x1a9   : > { %1820 = vmatpush.xpose.msk.msrb.mxu1 %vm646_vm2, %v866_v17 }
 0x1c8   : > { %v625_v19 = vpop.f32.mrf.mxu0 }
 0x1c9   : > { %v626_v20 = vadd.f32 %v2081_v18, %v625_v19 }
 0x1cb   : > { %v2820_v21 = vmul.f32 0.17677669, %v626_v20 }
 0x1cd   : > { %859 = vrot.lane.b32.xlu2 %v2820_v21, %s2497_s1  ;;  %1809 = vmatmul.msk.f32.vlgmr.msra.gmra.mxu1 %vm646_vm2, %v2820_v21 }
 0x1ce   : > { %1815 = vmatmul.msk.f32.vlgmr.msrb.gmra.mxu0 %vm646_vm2, %v2820_v21 }
 0x1d0   : > { %v628_v22 = vpop.f32.mrf.mxu0 }
 0x1d1   : > { %v629_v23 = vadd.f32 %v2081_v18, %v628_v22 }
 0x1d3   : > { %v2828_v24 = vmul.f32 0.17677669, %v629_v23 }
 0x1d5   : > { %861 = vrot.lane.b32.xlu2 %v2828_v24, %s2497_s1  ;;  %1810 = vmatmul.msk.f32.gmra.mxu1 %vm646_vm2, %v2828_v24 }
 0x1dd   : > { %2052 = vrot.lane.b32.xlu2 %v2844_v29, %s2497_s1 }
 0x1e5   : > { %1110 = vrot.lane.b32.xlu2 %v2791_v0, %s2498_s23 }
 0x1ed   : > { %1218 = vrot.lane.b32.xlu2 %v2809_v15, %s2498_s23 }
 0x227   : > { %v2836_v25 = vpop.permute.xlu2 %859 }
 0x228   : > { %1821 = vmatmul.msk.f32.vlgmr.msrb.gmra.mxu1 %vm646_vm2, %v2836_v25 }
 0x22f   : > { %v2840_v26 = vpop.permute.xlu2 %861 }
 0x230   : > { %1822 = vmatmul.msk.f32.gmra.mxu1 %vm646_vm2, %v2840_v26 }
 0x237   : > { %v2053_v2 = vpop.permute.xlu2 %2052 }
 0x238   : > { %v2055_v4 = vunpack.i.h.bf16 %v2053_v2 }
 0x23f   : > { %v1111_v5 = vpop.permute.xlu2 %1110 }
 0x247   : > { %v1219_v7 = vpop.permute.xlu2 %1218 }
 0x24a   : > { %v676_v31 = vpop.f32.mrf.mxu1 }
 0x24b   : > { %v677_v32 = vadd.f32 %v2082_v30, %v676_v31  ;;  %v774_v38 = vpop.f32.mrf.mxu0 }
 0x24c   : > { %v775_v39 = vadd.f32 %v2857_v36, %v774_v38 }
 0x24d   : > { %v683_v33 = vsel %vm682_vm3, %v677_v32, -inf }
 0x24e   : > { %684 = vmax.xlane.f32.xlu0 %v683_v33  ;;  %v780_v40 = vsel %vm682_vm3, %v775_v39, -inf }
 0x252   : > { %v679_v34 = vpop.f32.mrf.mxu1 }
 0x253   : > { %v680_v35 = vadd.f32 %v2082_v30, %v679_v34  ;;  %v976_v34 = vpop.permute.xlu1 %975 }
 0x255   : > { %v686_v37 = vsel %vm682_vm3, %v680_v35, -inf }
 0x256   : > { %687 = vmax.xlane.f32.xlu0 %v686_v37 }
 0x25e   : > { %781 = vmax.xlane.f32.xlu0 %v780_v40 }
 0x272   : > { %977 = vrot.lane.b32.xlu0 %v2804_v13, %s2497_s1 }
 0x27a   : > { %1108 = vrot.lane.b32.xlu0 %v2797_v3, %s2498_s23 }
 0x2a5   : > { %v894_v42 = vpop.f32.mrf.mxu1 }
 0x2a6   : > { %v895_v43 = vadd.f32 %v2084_v41, %v894_v42 }
 0x2a8   : > { %v900_v44 = vsel %vm682_vm3, %v895_v43, -inf }
 0x2a9   : > { %901 = vmax.xlane.f32.xlu2 %v900_v44 }
 0x2ad   : > { %v897_v45 = vpop.f32.mrf.mxu1 }
 0x2ae   : > { %v898_v46 = vadd.f32 %v2084_v41, %v897_v45 }
 0x2b0   : > { %v903_v47 = vsel %vm682_vm3, %v898_v46, -inf }
 0x2b1   : > { %904 = vmax.xlane.f32.xlu0 %v903_v47 }
 0x2c1   : > { %1104 = vrot.lane.b32.xlu2 %v2828_v24, %s2498_s23  ;;  %v685_v48 = vpop.xlane.xlu0 %684 }
 0x2c2   : > { %v695_v49 = vsub.f32 %v677_v32, %v685_v48  ;;  %v689_v17 = vsub.f32 -inf, %v685_v48 }
 0x2c4   : > { %v697_v50 = vmul.f32 1.442695, %v695_v49  ;;  %v691_v18 = vmul.f32 1.442695, %v689_v17 }
 0x2c5   : > { %1351 = vrot.lane.b32.xlu0 %v2797_v3, %s2499_s16  ;;  %v2054_v3 = vunpack.i.l.bf16 %v2053_v2 }
 0x2c6   : > { %2091 = vpow2.f32 %v697_v50  ;;  %v2056_v50 = vpack.i.bf16 %v2885_v56, %v2877_v53 }
 0x2c7   : > { %956 = vmatpush.msra.mxu3 %v2054_v3 }
 0x2c9   : > { %1463 = vrot.lane.b32.xlu2 %v2804_v13, %s2499_s16  ;;  %v2874_v51 = vpop.xlane.xlu0 %687  ;;  %957 = vmatpush.msra.mxu3 %v2055_v4 }
 0x2ca   : > { %v696_v52 = vsub.f32 %v680_v35, %v2874_v51  ;;  %v1221_v35 = vpop.permute.xlu1 %1220 }
 0x2cb   : > { %1831 = vmatpush.xpose.msk.msrb.mxu3 %vm646_vm2, %v1111_v5 }
 0x2cc   : > { %v2879_v54 = vpop.eup %2091  ;;  %v699_v55 = vmul.f32 1.442695, %v696_v52 }
 0x2cd   : > { %1347 = vrot.lane.b32.xlu0 %v2828_v24, %s2499_s16  ;;  %1811 = vmatmul.msk.f32.vlgmr.msra.gmra.mxu2 %vm682_vm3, %v2879_v54 }
 0x2ce   : > { %2093 = vpow2.f32 %v699_v55  ;;  %832 = vmatpush.msra.mxu2 %v2877_v53 }
 0x2d0   : > { %833 = vmatpush.msra.mxu2 %v2885_v56 }
 0x2d1   : > { %1345 = vrot.lane.b32.xlu2 %v2820_v21, %s2499_s16  ;;  %v782_v57 = vpop.xlane.xlu0 %781 }
 0x2d2   : > { %v786_v58 = vmax.f32 %v685_v48, %v782_v57 }
 0x2d4   : > { %v2891_v59 = vpop.eup %2093  ;;  %v788_v60 = vsub.f32 %v685_v48, %v786_v58  ;;  %v794_v61 = vsub.f32 %v775_v39, %v786_v58 }
 0x2d5   : > { %1812 = vmatmul.msk.f32.gmra.mxu2 %vm682_vm3, %v2891_v59  ;;  %2057 = vrot.lane.b32.xlu0 %v2056_v50, %s2497_s1 }
 0x2d6   : > { %v796_v62 = vmul.f32 1.442695, %v794_v61  ;;  %v790_v19 = vmul.f32 1.442695, %v788_v60  ;;  %v2085_v61 = vld [vmem:[#allocation5 + $0x1] ss:$0 sm:$0xff] }
 0x2d8   : > { %2095 = vpow2.f32 %v796_v62  ;;  %v2086_v62 = vld [vmem:[#allocation5] ss:$0 sm:$0xff] }
 0x2dd   : > { %1816 = vmatmul.msk.f32.vlgmr.msrb.gmra.mxu2 %vm646_vm2, %v2828_v24 }
 0x2de   : > { %v2897_v63 = vpop.eup %2095 }
 0x2e4   : > { %v978_v1 = vpop.permute.xlu0 %977 }
 0x2e5   : > { %1817 = vmatmul.msk.f32.vlgmr.msra.gmra.mxu2 %vm682_vm3, %v2897_v63 }
 0x2e6   : > { %1825 = vmatpush.xpose.msk.msrb.mxu2 %vm646_vm2, %v978_v1 }
 0x2ea   : > { %1826 = vmatpush.xpose.msk.msrb.mxu2 %vm646_vm2, %v976_v34 }
 0x2ec   : > { %v1109_v6 = vpop.permute.xlu0 %1108 }
 0x2ed   : > { %1832 = vmatpush.xpose.msk.msrb.mxu3 %vm646_vm2, %v1109_v6 }
 0x2ee   : > { %1837 = vmatpush.xpose.msk.msra.mxu2 %vm646_vm2, %v1221_v35 }
 0x2f2   : > { %1838 = vmatpush.xpose.msk.msra.mxu2 %vm646_vm2, %v1219_v7 }
 0x31c   : > { %v2904_v8 = vpop.xlane.xlu2 %901 }
 0x31d   : > { %v912_v9 = vsub.f32 %v895_v43, %v2904_v8 }
 0x31f   : > { %v914_v10 = vmul.f32 1.442695, %v912_v9 }
 0x321   : > { %2097 = vpow2.f32 %v914_v10 }
 0x324   : > { %v2907_v11 = vpop.xlane.xlu0 %904  ;;  %v1105_v45 = vpop.permute.xlu2 %1104 }
 0x325   : > { %v913_v12 = vsub.f32 %v898_v46, %v2907_v11 }
 0x327   : > { %v2910_v13 = vpop.eup %2097  ;;  %v916_v14 = vmul.f32 1.442695, %v913_v12 }
 0x328   : > { %1823 = vmatmul.msk.f32.vlgmr.msra.gmra.mxu3 %vm682_vm3, %v2910_v13 }
 0x329   : > { %2099 = vpow2.f32 %v916_v14  ;;  %v2087_v14 = vld [vmem:[#allocation5 + $0x1] ss:$0 sm:$0xff] }
 0x32a   : > { %2101 = vpow2.f32 %v691_v18 }
 0x32b   : > { %2103 = vpow2.f32 %v790_v19 }
 0x32c   : > { %v1464_v48 = vpop.permute.xlu2 %1463 }
 0x32f   : > { %v2914_v16 = vpop.eup %2099 }
 0x330   : > { %1824 = vmatmul.msk.f32.gmra.mxu3 %vm682_vm3, %v2914_v16  ;;  %v2102_v20 = vpop.eup %2101 }
 0x331   : > { %v2918_v22 = vmul.f32 0.0, %v2102_v20  ;;  %v2921_v27 = vpop.eup %2103 }
 0x337   : > { %v1352_v52 = vpop.permute.xlu0 %1351 }
 0x350   : > { %v734_v23 = vpop.f32.mrf.mxu2 }
 0x351   : > { %v740_v24 = vadd.f32 %v734_v23, %v2918_v22  ;;  %v2088_v23 = vld [vmem:[#allocation5] ss:$0 sm:$0xff] }
 0x353   : > { %v2924_v28 = vmul.f32 %v2921_v27, %v740_v24 }
 0x358   : > { %v737_v30 = vpop.f32.mrf.mxu2 }
 0x360   : > { %v777_v31 = vpop.f32.mrf.mxu2 }
 0x361   : > { %v778_v32 = vadd.f32 %v2857_v36, %v777_v31  ;;  %v690_v36 = vsub.f32 -inf, %v2874_v51 }
 0x363   : > { %v783_v33 = vsel %vm682_vm3, %v778_v32, -inf  ;;  %v693_v37 = vmul.f32 1.442695, %v690_v36  ;;  %v2089_v36 = vld [vmem:[#allocation5 + $0x1] ss:$0 sm:$0xff] }
 0x364   : > { %784 = vmax.xlane.f32.xlu1 %v783_v33 }
 0x365   : > { %2105 = vpow2.f32 %v693_v37 }
 0x368   : > { %v2969_v53 = vpop.f32.mrf.mxu2 }
 0x36b   : > { %v2106_v42 = vpop.eup %2105 }
 0x37d   : > { %1102 = vrot.lane.b32.xlu1 %v2820_v21, %s2498_s23 }
 0x385   : > { %1353 = vrot.lane.b32.xlu1 %v2791_v0, %s2499_s16 }
 0x38d   : > { %1461 = vrot.lane.b32.xlu1 %v2809_v15, %s2499_s16  ;;  %v2940_v15 = vmul.f32 0.0, %v2106_v42 }
 0x38f   : > { %v741_v43 = vadd.f32 %v737_v30, %v2940_v15 }
 0x3ab   : > { %v2971_v56 = vpop.f32.mrf.mxu3 }
 0x3b3   : > { %v2975_v60 = vpop.f32.mrf.mxu3 }
 0x3d7   : > { %v785_v38 = vpop.xlane.xlu1 %784 }
 0x3d8   : > { %v787_v39 = vmax.f32 %v2874_v51, %v785_v38 }
 0x3da   : > { %v789_v21 = vsub.f32 %v2874_v51, %v787_v39  ;;  %v795_v40 = vsub.f32 %v778_v32, %v787_v39 }
 0x3dc   : > { %v792_v41 = vmul.f32 1.442695, %v789_v21  ;;  %v798_v0 = vmul.f32 1.442695, %v795_v40 }
 0x3de   : > { %2107 = vpow2.f32 %v792_v41 }
 0x3df   : > { %2109 = vpow2.f32 %v798_v0 }
 0x3e4   : > { %v2943_v44 = vpop.eup %2107 }
 0x3e5   : > { %v2945_v46 = vpop.eup %2109  ;;  %v811_v47 = vmul.f32 %v2943_v44, %v741_v43 }
 0x3e6   : > { %1818 = vmatmul.msk.f32.gmra.mxu2 %vm682_vm3, %v2945_v46 }
 0x3ee   : > { %1827 = vmatmul.msk.f32.vlgmr.msrb.gmra.mxu2 %vm646_vm2, %v2836_v25  ;;  %v1346_v25 = vpop.permute.xlu2 %1345 }
 0x3ef   : > { %v1103_v49 = vpop.permute.xlu1 %1102  ;;  %1849 = vmatpush.xpose.msk.msrb.mxu2 %vm646_vm2, %v1464_v48 }
 0x3f0   : > { %1833 = vmatmul.msk.f32.vlgmr.msrb.gmra.mxu3 %vm646_vm2, %v1103_v49 }
 0x3f6   : > { %1828 = vmatmul.msk.f32.gmra.mxu2 %vm646_vm2, %v2840_v26  ;;  %v1348_v26 = vpop.permute.xlu0 %1347 }
 0x3f7   : > { %v1354_v51 = vpop.permute.xlu1 %1353 }
 0x3f8   : > { %1834 = vmatmul.msk.f32.gmra.mxu3 %vm646_vm2, %v1105_v45 }
 0x3f9   : > { %1843 = vmatpush.xpose.msk.msra.mxu3 %vm646_vm2, %v1354_v51 }
 0x3fd   : > { %1844 = vmatpush.xpose.msk.msra.mxu3 %vm646_vm2, %v1352_v52 }
 0x3fe   : > { %1839 = vmatmul.msk.f32.vlgmr.msra.gmra.mxu2 %vm646_vm2, %v1103_v49  ;;  %v2058_v0 = vpop.permute.xlu0 %2057  ;;  %v906_v49 = vsub.f32 -inf, %v2904_v8 }
 0x3ff   : > { %v1462_v55 = vpop.permute.xlu1 %1461  ;;  %v2060_v42 = vunpack.i.h.bf16 %v2058_v0  ;;  %v2059_v43 = vunpack.i.l.bf16 %v2058_v0 }
 0x400   : > { %1845 = vmatmul.msk.f32.vlgmr.msra.gmra.mxu3 %vm646_vm2, %v1346_v25  ;;  %1850 = vmatpush.xpose.msk.msrb.mxu2 %vm646_vm2, %v1462_v55 }
 0x401   : > { %1066 = vmatpush.msra.mxu1 %v2059_v43 }
 0x403   : > { %1067 = vmatpush.msra.mxu1 %v2060_v42 }
 0x406   : > { %1840 = vmatmul.msk.f32.gmra.mxu2 %vm646_vm2, %v1105_v45  ;;  %v920_v45 = vsel %vm682_vm3, %v2910_v13, 0.0 }
 0x408   : > { %1846 = vmatmul.msk.f32.gmra.mxu3 %vm646_vm2, %v1348_v26 }
 0x40e   : > { %1851 = vmatmul.msk.f32.vlgmr.msrb.gmra.mxu2 %vm646_vm2, %v1346_v25 }
 0x416   : > { %1852 = vmatmul.msk.f32.gmra.mxu2 %vm646_vm2, %v1348_v26 }
 0x469   : > { %v838_v57 = vpop.f32.mrf.mxu2 }
 0x46a   : > { %v2973_v58 = vadd.f32 %v838_v57, %v811_v47 }
 0x471   : > { %v1000_v1 = vpop.f32.mrf.mxu2 }
 0x472   : > { %v2977_v2 = vadd.f32 %v2085_v61, %v1000_v1 }
 0x473   : > { %v1137_v3 = vpop.f32.mrf.mxu3 }
 0x474   : > { %v1138_v4 = vadd.f32 %v2086_v62, %v1137_v3  ;;  %v1006_v5 = vsel %vm682_vm3, %v2977_v2, -inf }
 0x475   : > { %1007 = vmax.xlane.f32.xlu1 %v1006_v5 }
 0x476   : > { %v1143_v6 = vsel %vm682_vm3, %v1138_v4, -inf }
 0x477   : > { %1144 = vmax.xlane.f32.xlu0 %v1143_v6 }
 0x479   : > { %v1003_v7 = vpop.f32.mrf.mxu2 }
 0x47a   : > { %v2986_v18 = vadd.f32 %v2085_v61, %v1003_v7 }
 0x47b   : > { %v1140_v9 = vpop.f32.mrf.mxu3 }
 0x47c   : > { %v2982_v10 = vadd.f32 %v2086_v62, %v1140_v9  ;;  %v1009_v24 = vsel %vm682_vm3, %v2986_v18, -inf }
 0x47e   : > { %v1146_v12 = vsel %vm682_vm3, %v2982_v10, -inf }
 0x47f   : > { %1147 = vmax.xlane.f32.xlu2 %v1146_v12 }
 0x481   : > { %v1243_v17 = vpop.f32.mrf.mxu2 }
 0x482   : > { %v2988_v19 = vadd.f32 %v2087_v14, %v1243_v17 }
 0x483   : > { %v1380_v30 = vpop.f32.mrf.mxu3 }
 0x484   : > { %v1249_v20 = vsel %vm682_vm3, %v2988_v19, -inf  ;;  %v2994_v31 = vadd.f32 %v2088_v23, %v1380_v30 }
 0x485   : > { %1250 = vmax.xlane.f32.xlu1 %v1249_v20 }
 0x486   : > { %v1386_v33 = vsel %vm682_vm3, %v2994_v31, -inf }
 0x487   : > { %1010 = vmax.xlane.f32.xlu2 %v1009_v24 }
 0x489   : > { %v1246_v32 = vpop.f32.mrf.mxu2 }
 0x48a   : > { %v2999_v34 = vadd.f32 %v2087_v14, %v1246_v32 }
 0x48b   : > { %2067 = vrot.lane.b32.xlu0 %v2056_v50, %s2498_s23 }
 0x48c   : > { %v1252_v37 = vsel %vm682_vm3, %v2999_v34, -inf }
 0x48f   : > { %1387 = vmax.xlane.f32.xlu2 %v1386_v33 }
 0x491   : > { %v1486_v35 = vpop.f32.mrf.mxu2 }
 0x492   : > { %v3005_v38 = vadd.f32 %v2089_v36, %v1486_v35 }
 0x493   : > { %2072 = vrot.lane.b32.xlu0 %v2844_v29, %s2499_s16 }
 0x494   : > { %v1492_v39 = vsel %vm682_vm3, %v3005_v38, -inf }
 0x497   : > { %1253 = vmax.xlane.f32.xlu2 %v1252_v37 }
 0x499   : > { %v1489_v21 = vpop.f32.mrf.mxu2 }
 0x49a   : > { %v3012_v40 = vadd.f32 %v2089_v36, %v1489_v21 }
 0x49b   : > { %2077 = vrot.lane.b32.xlu0 %v2056_v50, %s2499_s16  ;;  %v908_v50 = vmul.f32 1.442695, %v906_v49 }
 0x49c   : > { %v1495_v41 = vsel %vm682_vm3, %v3012_v40, -inf }
 0x49d   : > { %2111 = vpow2.f32 %v908_v50 }
 0x49e   : > { %2062 = vrot.lane.b32.xlu1 %v2844_v29, %s2498_s23  ;;  %v1383_v29 = vpop.f32.mrf.mxu3 }
 0x49f   : > { %1493 = vmax.xlane.f32.xlu2 %v1492_v39  ;;  %v3018_v47 = vadd.f32 %v2088_v23, %v1383_v29 }
 0x4a1   : > { %v1389_v48 = vsel %vm682_vm3, %v3018_v47, -inf }
 0x4a3   : > { %v2112_v1 = vpop.eup %2111 }
 0x4a4   : > { %v3029_v3 = vmul.f32 0.0, %v2112_v1 }
 0x4a7   : > { %1496 = vmax.xlane.f32.xlu2 %v1495_v41 }
 0x4af   : > { %921 = vadd.xlane.f32.xlu2 %v920_v45 }
 0x4c8   : > { %1390 = vmax.xlane.f32.xlu1 %v1389_v48 }
 0x4e8   : > { %v1008_v51 = vpop.xlane.xlu1 %1007 }
 0x4e9   : > { %v1012_v52 = vmax.f32 %v2904_v8, %v1008_v51 }
 0x4ea   : > { %v3024_v25 = vpop.xlane.xlu0 %1144 }
 0x4eb   : > { %v1014_v55 = vsub.f32 %v2904_v8, %v1012_v52  ;;  %v1020_v13 = vsub.f32 %v2977_v2, %v1012_v52  ;;  %v1155_v26 = vsub.f32 %v1138_v4, %v3024_v25  ;;  %v965_v8 = vadd.f32 %v2971_v56, %v3029_v3 }
 0x4ed   : > { %v1016_v57 = vmul.f32 1.442695, %v1014_v55  ;;  %v1022_v61 = vmul.f32 1.442695, %v1020_v13  ;;  %v1157_v62 = vmul.f32 1.442695, %v1155_v26 }
 0x4ef   : > { %2113 = vpow2.f32 %v1016_v57 }
 0x4f0   : > { %2115 = vpow2.f32 %v1022_v61 }
 0x4f1   : > { %2117 = vpow2.f32 %v1157_v62 }
 0x4f2   : > { %v3031_v5 = vpop.xlane.xlu2 %1147 }
 0x4f3   : > { %v1156_v6 = vsub.f32 %v2982_v10, %v3031_v5 }
 0x4f5   : > { %v3037_v2 = vpop.eup %2113  ;;  %v1159_v4 = vmul.f32 1.442695, %v1156_v6 }
 0x4f6   : > { %v3039_v7 = vpop.eup %2115  ;;  %v3042_v9 = vmul.f32 %v3037_v2, %v965_v8 }
 0x4f7   : > { %v2118_v12 = vpop.eup %2117  ;;  %2119 = vpow2.f32 %v1159_v4  ;;  %1829 = vmatmul.msk.f32.vlgmr.msra.gmra.mxu1 %vm682_vm3, %v3039_v7 }
 0x4f8   : > { %v1251_v14 = vpop.xlane.xlu1 %1250  ;;  %v1163_v17 = vsel %vm682_vm3, %v2118_v12, 0.0 }
 0x4f9   : > { %v3048_v10 = vmax.f32 %v3024_v25, %v1251_v14  ;;  %1164 = vadd.xlane.f32.xlu0 %v1163_v17  ;;  %v923_v17 = vsel %vm682_vm3, %v2914_v16, 0.0  ;;  %v802_v16 = vsel %vm682_vm3, %v2897_v63, 0.0 }
 0x4fa   : > { %v1011_v56 = vpop.xlane.xlu2 %1010 }
 0x4fb   : > { %v1257_v20 = vsub.f32 %v3024_v25, %v3048_v10  ;;  %v3053_v23 = vmax.f32 %v2907_v11, %v1011_v56  ;;  %v1263_v39 = vsub.f32 %v2988_v19, %v3048_v10 }
 0x4fd   : > { %v2120_v24 = vpop.eup %2119  ;;  %v1021_v30 = vsub.f32 %v2986_v18, %v3053_v23  ;;  %v2068_v32 = vpop.permute.xlu0 %2067  ;;  %v1265_v42 = vmul.f32 1.442695, %v1263_v39 }
 0x4fe   : > { %v1166_v33 = vsel %vm682_vm3, %v2120_v24, 0.0  ;;  %v2070_v35 = vunpack.i.h.bf16 %v2068_v32  ;;  %v2069_v36 = vunpack.i.l.bf16 %v2068_v32 }
 0x4ff   : > { %v1024_v37 = vmul.f32 1.442695, %v1021_v30  ;;  %1167 = vadd.xlane.f32.xlu1 %v1166_v33  ;;  %v703_v33 = vsel %vm682_vm3, %v2879_v54, 0.0 }
 0x500   : > { %1309 = vmatpush.msrb.mxu1 %v2069_v36 }
 0x501   : > { %2121 = vpow2.f32 %v1024_v37 }
 0x502   : > { %v3060_v21 = vpop.xlane.xlu2 %1387  ;;  %1310 = vmatpush.msrb.mxu1 %v2070_v35  ;;  %v805_v35 = vsel %vm682_vm3, %v2945_v46, 0.0 }
 0x503   : > { %v1398_v41 = vsub.f32 %v2994_v31, %v3060_v21 }
 0x505   : > { %v1400_v0 = vmul.f32 1.442695, %v1398_v41  ;;  %v2073_v18 = vpop.permute.xlu0 %2072 }
 0x506   : > { %v2074_v6 = vunpack.i.l.bf16 %v2073_v18  ;;  %v2075_v14 = vunpack.i.h.bf16 %v2073_v18 }
 0x507   : > { %2123 = vpow2.f32 %v1400_v0  ;;  %v2122_v43 = vpop.eup %2121 }
 0x508   : > { %1830 = vmatmul.msk.f32.gmra.mxu1 %vm682_vm3, %v2122_v43  ;;  %v1031_v45 = vsel %vm682_vm3, %v2122_v43, 0.0  ;;  %2125 = vpow2.f32 %v1265_v42  ;;  %v1028_v42 = vsel %vm682_vm3, %v3039_v7, 0.0  ;;  %v706_v7 = vsel %vm682_vm3, %v2891_v59, 0.0 }
 0x509   : > { %1032 = vadd.xlane.f32.xlu1 %v1031_v45  ;;  %v1392_v59 = vsub.f32 -inf, %v3060_v21 }
 0x50a   : > { %v1254_v29 = vpop.xlane.xlu2 %1253 }
 0x50b   : > { %v3067_v19 = vmax.f32 %v3031_v5, %v1254_v29 }
 0x50d   : > { %v2124_v48 = vpop.eup %2123  ;;  %v1258_v49 = vsub.f32 %v3031_v5, %v3067_v19  ;;  %v1264_v31 = vsub.f32 %v2999_v34, %v3067_v19  ;;  %v2078_v50 = vpop.permute.xlu0 %2077 }
 0x50e   : > { %v1406_v51 = vsel %vm682_vm3, %v2124_v48, 0.0  ;;  %v2080_v52 = vunpack.i.h.bf16 %v2078_v50  ;;  %v2079_v55 = vunpack.i.l.bf16 %v2078_v50  ;;  %v2126_v26 = vpop.eup %2125  ;;  %v1259_v50 = vmul.f32 1.442695, %v1257_v20 }
 0x50f   : > { %v1267_v13 = vmul.f32 1.442695, %v1264_v31  ;;  %1407 = vadd.xlane.f32.xlu2 %v1406_v51  ;;  %v1271_v43 = vsel %vm682_vm3, %v2126_v26, 0.0 }
 0x510   : > { %v2063_v57 = vpop.permute.xlu1 %2062  ;;  %1552 = vmatpush.msra.mxu1 %v2079_v55 }
 0x511   : > { %v2064_v61 = vunpack.i.l.bf16 %v2063_v57  ;;  %1841 = vmatmul.msk.f32.vlgmr.msrb.gmra.mxu1 %vm682_vm3, %v2126_v26  ;;  %2127 = vpow2.f32 %v1267_v13  ;;  %v2065_v1 = vunpack.i.h.bf16 %v2063_v57 }
 0x512   : > { %v1494_v62 = vpop.xlane.xlu2 %1493  ;;  %1553 = vmatpush.msra.mxu1 %v2080_v52  ;;  %v1261_v52 = vmul.f32 1.442695, %v1258_v49  ;;  %v1394_v49 = vmul.f32 1.442695, %v1392_v59 }
 0x513   : > { %1199 = vmatpush.msra.mxu0 %v2064_v61  ;;  %v3076_v34 = vmax.f32 %v3060_v21, %v1494_v62 }
 0x515   : > { %v1500_v8 = vsub.f32 %v3060_v21, %v3076_v34  ;;  %v1506_v4 = vsub.f32 %v3005_v38, %v3076_v34  ;;  %1200 = vmatpush.msra.mxu0 %v2065_v1 }
 0x516   : > { %1835 = vmatmul.msk.f32.vlgmr.msra.gmra.mxu0 %vm682_vm3, %v2118_v12 }
 0x517   : > { %v1508_v56 = vmul.f32 1.442695, %v1506_v4  ;;  %924 = vadd.xlane.f32.xlu2 %v923_v17  ;;  %1442 = vmatpush.msrb.mxu0 %v2074_v6  ;;  %v2128_v30 = vpop.eup %2127 }
 0x518   : > { %v1274_v32 = vsel %vm682_vm3, %v2128_v30, 0.0 }
 0x519   : > { %1842 = vmatmul.msk.f32.gmra.mxu1 %vm682_vm3, %v2128_v30  ;;  %1443 = vmatpush.msrb.mxu0 %v2075_v14  ;;  %2129 = vpow2.f32 %v1508_v56  ;;  %v1502_v30 = vmul.f32 1.442695, %v1500_v8 }
 0x51a   : > { %1275 = vadd.xlane.f32.xlu0 %v1274_v32 }
 0x51e   : > { %1836 = vmatmul.msk.f32.gmra.mxu0 %vm682_vm3, %v2120_v24  ;;  %v1497_v24 = vpop.xlane.xlu2 %1496 }
 0x51f   : > { %v2130_v38 = vpop.eup %2129 }
 0x520   : > { %v1514_v12 = vsel %vm682_vm3, %v2130_v38, 0.0 }
 0x521   : > { %1853 = vmatmul.msk.f32.vlgmr.msra.gmra.mxu1 %vm682_vm3, %v2130_v38  ;;  %1515 = vadd.xlane.f32.xlu1 %v1514_v12 }
 0x522   : > { %803 = vadd.xlane.f32.xlu0 %v802_v16 }
 0x526   : > { %1847 = vmatmul.msk.f32.vlgmr.msrb.gmra.mxu0 %vm682_vm3, %v2124_v48  ;;  %v1150_v48 = vsub.f32 -inf, %v3031_v5  ;;  %v1015_v5 = vsub.f32 %v2907_v11, %v3053_v23  ;;  %v3137_v32 = vpop.xlane.xlu2 %921 }
 0x528   : > { %v1153_v31 = vmul.f32 1.442695, %v1150_v48  ;;  %v1018_v56 = vmul.f32 1.442695, %v1015_v5 }
 0x529   : > { %704 = vadd.xlane.f32.xlu1 %v703_v33 }
 0x531   : > { %806 = vadd.xlane.f32.xlu1 %v805_v35 }
 0x53b   : > { %v3097_v36 = vpop.xlane.xlu1 %1390 }
 0x53c   : > { %v1399_v37 = vsub.f32 %v3018_v47, %v3097_v36  ;;  %v3102_v63 = vmax.f32 %v3097_v36, %v1497_v24 }
 0x53e   : > { %v1402_v39 = vmul.f32 1.442695, %v1399_v37  ;;  %v1501_v41 = vsub.f32 %v3097_v36, %v3102_v63  ;;  %v1507_v54 = vsub.f32 %v3012_v40, %v3102_v63  ;;  %v1149_v40 = vsub.f32 -inf, %v3024_v25 }
 0x53f   : > { %v907_v25 = vsub.f32 -inf, %v2907_v11 }
 0x540   : > { %2131 = vpow2.f32 %v1402_v39  ;;  %v1510_v0 = vmul.f32 1.442695, %v1507_v54  ;;  %v1151_v45 = vmul.f32 1.442695, %v1149_v40 }
 0x541   : > { %v910_v1 = vmul.f32 1.442695, %v907_v25 }
 0x542   : > { %2133 = vpow2.f32 %v1510_v0 }
 0x543   : > { %2135 = vpow2.f32 %v1151_v45 }
 0x544   : > { %2137 = vpow2.f32 %v1153_v31 }
 0x545   : > { %2139 = vpow2.f32 %v1259_v50 }
 0x546   : > { %v2132_v46 = vpop.eup %2131  ;;  %2141 = vpow2.f32 %v1261_v52 }
 0x547   : > { %1848 = vmatmul.msk.f32.gmra.mxu0 %vm682_vm3, %v2132_v46  ;;  %v1409_v18 = vsel %vm682_vm3, %v2132_v46, 0.0  ;;  %2143 = vpow2.f32 %v910_v1 }
 0x548   : > { %1410 = vadd.xlane.f32.xlu2 %v1409_v18  ;;  %v2134_v47 = vpop.eup %2133  ;;  %2145 = vpow2.f32 %v1394_v49 }
 0x549   : > { %1854 = vmatmul.msk.f32.gmra.mxu1 %vm682_vm3, %v2134_v47  ;;  %v1517_v29 = vsel %vm682_vm3, %v2134_v47, 0.0  ;;  %v2136_v51 = vpop.eup %2135  ;;  %2147 = vpow2.f32 %v1018_v56 }
 0x54a   : > { %v1161_v55 = vmul.f32 0.0, %v2136_v51  ;;  %v2138_v26 = vpop.eup %2137  ;;  %2149 = vpow2.f32 %v1502_v30 }
 0x54b   : > { %v2140_v61 = vpop.eup %2139  ;;  %v1162_v20 = vmul.f32 0.0, %v2138_v26 }
 0x54c   : > { %v2142_v4 = vpop.eup %2141 }
 0x54d   : > { %v2144_v38 = vpop.eup %2143 }
 0x54e   : > { %v2146_v12 = vpop.eup %2145  ;;  %v919_v11 = vmul.f32 0.0, %v2144_v38 }
 0x54f   : > { %v1404_v23 = vmul.f32 0.0, %v2146_v12  ;;  %v2148_v16 = vpop.eup %2147  ;;  %v1504_v12 = vmul.f32 1.442695, %v1501_v41 }
 0x550   : > { %1029 = vadd.xlane.f32.xlu2 %v1028_v42  ;;  %v2150_v24 = vpop.eup %2149 }
 0x558   : > { %1272 = vadd.xlane.f32.xlu2 %v1271_v43 }
 0x560   : > { %1518 = vadd.xlane.f32.xlu2 %v1517_v29 }
 0x568   : > { %707 = vadd.xlane.f32.xlu2 %v706_v7 }
 0x56c   : > { %v1165_v13 = vpop.xlane.xlu0 %1164 }
 0x56d   : > { %v1169_v57 = vadd.f32 %v1165_v13, %v1161_v55 }
 0x56f   : > { %v3126_v10 = vmul.f32 %v2140_v61, %v1169_v57 }
 0x572   : > { %v1168_v62 = vpop.xlane.xlu1 %1167 }
 0x573   : > { %v1170_v6 = vadd.f32 %v1168_v62, %v1162_v20 }
 0x574   : > { %v1069_v19 = vpop.f32.mrf.mxu1 }
 0x575   : > { %v3132_v14 = vadd.f32 %v1069_v19, %v3042_v9  ;;  %v1270_v17 = vmul.f32 %v2142_v4, %v1170_v6  ;;  %v966_v9 = vadd.f32 %v2975_v60, %v919_v11 }
 0x577   : > { %v1037_v37 = vmul.f32 %v2148_v16, %v966_v9 }
 0x57c   : > { %v1033_v8 = vpop.xlane.xlu1 %1032 }
 0x582   : > { %v1408_v33 = vpop.xlane.xlu2 %1407 }
 0x583   : > { %v1412_v35 = vadd.f32 %v1408_v33, %v1404_v23  ;;  %v926_v33 = vadd.f32 %v3137_v32, %v3029_v3 }
 0x585   : > { %v1512_v39 = vmul.f32 %v2150_v24, %v1412_v35  ;;  %v1072_v54 = vpop.f32.mrf.mxu1  ;;  %v1026_v35 = vmul.f32 %v3037_v2, %v926_v33 }
 0x586   : > { %v1076_v0 = vadd.f32 %v1072_v54, %v1037_v37 }
 0x58a   : > { %v925_v21 = vpop.xlane.xlu2 %924 }
 0x58b   : > { %v927_v34 = vadd.f32 %v925_v21, %v919_v11 }
 0x58d   : > { %v1027_v46 = vmul.f32 %v2148_v16, %v927_v34  ;;  %v1276_v43 = vpop.xlane.xlu0 %1275 }
 0x58e   : > { %v1312_v47 = vpop.f32.mrf.mxu1  ;;  %v1278_v60 = vadd.f32 %v1276_v43, %v1270_v17 }
 0x58f   : > { %v1035_v18 = vadd.f32 %v1033_v8, %v1027_v46 }
 0x591   : > { %2151 = vrcp.f32 %v1035_v18 }
 0x592   : > { %2153 = vrcp.f32 %v1278_v60  ;;  %v1595_v60 = vld [vmem:[#allocation15 + $0x78] sm:$0xff] }
 0x593   : > { %v1202_v42 = vpop.f32.mrf.mxu0  ;;  %1600 = vmatpush.msrb.mxu3 %v1595_v60 }
 0x594   : > { %v1208_v40 = vadd.f32 %v1202_v42, %v1161_v55  ;;  %v1516_v45 = vpop.xlane.xlu1 %1515 }
 0x595   : > { %v1520_v57 = vadd.f32 %v1516_v45, %v1512_v39  ;;  %v804_v1 = vpop.xlane.xlu0 %803 }
 0x596   : > { %v1279_v29 = vmul.f32 %v2140_v61, %v1208_v40  ;;  %v1315_v51 = vpop.f32.mrf.mxu1 }
 0x597   : > { %v2152_v48 = vpop.eup %2151  ;;  %2155 = vrcp.f32 %v1520_v57  ;;  %v1584_v57 = vld [vmem:[#allocation15 + $0x20] sm:$0xff] }
 0x598   : > { %v1080_v31 = vmul.f32 %v2152_v48, %v1076_v0  ;;  %v2154_v62 = vpop.eup %2153  ;;  %v1318_v34 = vadd.f32 %v1312_v47, %v1279_v29 }
 0x59b   : > { %v1205_v50 = vpop.f32.mrf.mxu0 }
 0x59c   : > { %v1209_v7 = vadd.f32 %v1205_v50, %v1162_v20  ;;  %v705_v52 = vpop.xlane.xlu1 %704  ;;  %v1593_v50 = vld [vmem:[#allocation15 + $0x68] sm:$0xff] }
 0x59d   : > { %v709_v26 = vadd.f32 %v705_v52, %v2918_v22  ;;  %v2156_v17 = vpop.eup %2155  ;;  %v1393_v22 = vsub.f32 -inf, %v3097_v36  ;;  %v1588_v52 = vld [vmem:[#allocation15 + $0x40] sm:$0xff] }
 0x59e   : > { %v1280_v13 = vmul.f32 %v2142_v4, %v1209_v7  ;;  %v1555_v49 = vpop.f32.mrf.mxu1  ;;  %v841_v4 = vadd.f32 %v2969_v53, %v2924_v28  ;;  %v1590_v7 = vld [vmem:[#allocation15 + $0x50] sm:$0xff] }
 0x59f   : > { %v800_v59 = vmul.f32 %v2921_v27, %v709_v26  ;;  %v1396_v38 = vmul.f32 1.442695, %v1393_v22  ;;  %v1585_v26 = vld [vmem:[#allocation15 + $0x28] sm:$0xff] }
 0x5a0   : > { %v1319_v25 = vadd.f32 %v1315_v51, %v1280_v13  ;;  %v1589_v51 = vld [vmem:[#allocation15 + $0x48] sm:$0xff]  ;;  %v1587_v13 = vld [vmem:[#allocation15 + $0x38] sm:$0xff] }
 0x5a1   : > { %v808_v55 = vadd.f32 %v804_v1, %v800_v59  ;;  %v1582_v59 = vld [vmem:[#allocation15 + $0x10] sm:$0xff]  ;;  %v1580_v1 = vld [vmem:[#allocation15] sm:$0xff] }
 0x5a2   : > { %v1323_v6 = vmul.f32 %v2154_v62, %v1319_v25  ;;  %v1583_v25 = vld [vmem:[#allocation15 + $0x18] sm:$0xff]  ;;  %v1581_v62 = vld [vmem:[#allocation15 + $0x8] sm:$0xff] }
 0x5a3   : > { %v1445_v61 = vpop.f32.mrf.mxu0  ;;  %2157 = vrcp.f32 %v808_v55 }
 0x5a4   : > { %v1451_v5 = vadd.f32 %v1445_v61, %v1404_v23  ;;  %2159 = vpow2.f32 %v1396_v38  ;;  %v807_v45 = vpop.xlane.xlu1 %806 }
 0x5a5   : > { %2161 = vpow2.f32 %v1504_v12 }
 0x5a6   : > { %v1522_v19 = vmul.f32 %v2150_v24, %v1451_v5 }
 0x5a8   : > { %v1561_v20 = vadd.f32 %v1555_v49, %v1522_v19 }
 0x5a9   : > { %v2158_v56 = vpop.eup %2157 }
 0x5aa   : > { %v1565_v30 = vmul.f32 %v2156_v17, %v1561_v20  ;;  %v845_v27 = vmul.f32 %v2158_v56, %v841_v4  ;;  %v2160_v11 = vpop.eup %2159  ;;  %v2090_v4 = vld [vmem:[%s3278_s25] ss:$0 sm:$0xff] }
 0x5ab   : > { %v1405_v23 = vmul.f32 0.0, %v2160_v11  ;;  %v2162_v53 = vpop.eup %2161 }
 0x5ac   : > { %1569 = vrot.lane.b32.xlu1 %v1565_v30, %s2497_s1  ;;  %847 = vst.msk [vmem:[#allocation4] sm:$0xff] %vm646_vm2, %v845_v27 }
 0x5bb   : > { %v1411_v16 = vpop.xlane.xlu2 %1410 }
 0x5bc   : > { %v1413_v28 = vadd.f32 %v1411_v16, %v1405_v23 }
 0x5be   : > { %v1513_v9 = vmul.f32 %v2162_v53, %v1413_v28 }
 0x5c3   : > { %v1030_v24 = vpop.xlane.xlu2 %1029 }
 0x5c4   : > { %v1034_v37 = vadd.f32 %v1030_v24, %v1026_v35  ;;  %v1448_v39 = vpop.f32.mrf.mxu0 }
 0x5c5   : > { %v1452_v54 = vadd.f32 %v1448_v39, %v1405_v23 }
 0x5c6   : > { %2163 = vrcp.f32 %v1034_v37  ;;  %v1558_v46 = vpop.f32.mrf.mxu1 }
 0x5c7   : > { %v1523_v0 = vmul.f32 %v2162_v53, %v1452_v54 }
 0x5c9   : > { %v1562_v18 = vadd.f32 %v1558_v46, %v1523_v0 }
 0x5cb   : > { %v1273_v36 = vpop.xlane.xlu2 %1272 }
 0x5cc   : > { %v2164_v63 = vpop.eup %2163  ;;  %v1277_v41 = vadd.f32 %v1273_v36, %v3126_v10 }
 0x5cd   : > { %v1079_v21 = vmul.f32 %v2164_v63, %v3132_v14 }
 0x5ce   : > { %2165 = vrcp.f32 %v1277_v41 }
 0x5cf   : > { %1083 = vrot.lane.b32.xlu0 %v1079_v21, %s2499_s16 }
 0x5d3   : > { %v1519_v3 = vpop.xlane.xlu2 %1518 }
 0x5d4   : > { %v2166_v32 = vpop.eup %2165  ;;  %v1521_v8 = vadd.f32 %v1519_v3, %v1513_v9 }
 0x5d5   : > { %v1322_v2 = vmul.f32 %v2166_v32, %v1318_v34 }
 0x5d6   : > { %2167 = vrcp.f32 %v1521_v8 }
 0x5d7   : > { %1326 = vrot.lane.b32.xlu2 %v1322_v2, %s2498_s23  ;;  %1085 = vrot.lane.b32.xlu0 %v1080_v31, %s2499_s16  ;;  %v1594_v31 = vld [vmem:[#allocation15 + $0x70] sm:$0xff]  ;;  %s1642_s16 = sshll.u32 %s1639_s15, 4  ;;  %s1643_s16 = int_to_ptr.hbm [resolvable:$true] %s1642_s16 }
 0x5d8   : > { %1601 = vmatpush.msrb.mxu3 %v1594_v31  ;;  %s2365_s29 = sshra.s32 %s1643_s16, 4  ;;  %s2366_s29 = int_to_ptr.hbm [resolvable:$true] %s2365_s29 }
 0x5d9   : > { %s2367_s20 = scalar_lea.hbm %s2366_s29, 16  ;;  %p2372_p2 = scmp.lt.s32.totalorder %s2366_s29, %s3280_s4 }
 0x5da   : > { %1602 = vmatpush.msrb.mxu3 %v1593_v50  ;;  %p2368_p1 = scmp.ne.s32.totalorder %s2366_s29, %s2367_s20  ;;  %p2373_p10 = scmp.lt.s32.totalorder %s2371_s28, %s2367_s20 }
 0x5db   : > { %v708_v42 = vpop.xlane.xlu2 %707 }
 0x5dc   : > { %v2168_v43 = vpop.eup %2167  ;;  %v710_v10 = vadd.f32 %v708_v42, %v2940_v15  ;;  %v1592_v15 = vld [vmem:[#allocation15 + $0x60] sm:$0xff]  ;;  %p2369_p4 = pnand %p2368_p1, %p2729_p11  ;;  %p2374_p12 = por %p2373_p10, %p2372_p2 }
 0x5dd   : > { %v1566_v14 = vmul.f32 %v2168_v43, %v1562_v18  ;;  %1603 = vmatpush.msrb.mxu3 %v1592_v15 }
 0x5de   : > { %v801_v40 = vmul.f32 %v2943_v44, %v710_v10  ;;  %v1591_v44 = vld [vmem:[#allocation15 + $0x58] sm:$0xff]  ;;  %p2370_p9 = pneg %p2369_p4 }
 0x5df   : > { %1328 = vrot.lane.b32.xlu2 %v1323_v6, %s2498_s23  ;;  %1571 = vrot.lane.b32.xlu0 %v1566_v14, %s2497_s1  ;;  %s1640_s23 = sshll.u32 %s2785_s5, 4  ;;  %s1641_s23 = int_to_ptr.vmem [resolvable:$true] %s1640_s23 }
 0x5e0   : > { %v809_v47 = vadd.f32 %v807_v45, %v801_v40  ;;  %1604 = vmatpush.msrb.mxu3 %v1591_v44  ;;  %p2375_p13 = pnand %p2374_p12, %p2370_p9 }
 0x5e2   : > { %2169 = vrcp.f32 %v809_v47  ;;  %1605 = vmatpush.msrb.mxu3 %v1590_v7 }
 0x5e4   : > { %1606 = vmatpush.msrb.mxu3 %v1589_v51 }
 0x5e6   : > { %1607 = vmatpush.msrb.mxu3 %v1588_v52 }
 0x5e8   : > { %v2170_v29 = vpop.eup %2169  ;;  %1608 = vmatpush.msrb.mxu3 %v1587_v13 }
 0x5e9   : > { %v846_v48 = vmul.f32 %v2170_v29, %v2973_v58  ;;  %v1586_v58 = vld [vmem:[#allocation15 + $0x30] sm:$0xff] }
 0x5ea   : > { %1609 = vmatpush.msrb.mxu3 %v1586_v58 }
 0x5eb   : > { %848 = vst.msk [vmem:[#allocation4 + $0x8] sm:$0xff] %vm646_vm2, %v846_v48 }
 0x5ec   : > { %1610 = vmatpush.msrb.mxu3 %v1585_v26 }
 0x5ee   : > { %1611 = vmatpush.msrb.mxu3 %v1584_v57 }
 0x5f0   : > { %1612 = vmatpush.msrb.mxu3 %v1583_v25 }
 0x5f2   : > { %1613 = vmatpush.msrb.mxu3 %v1582_v59 }
 0x5f4   : > { %1614 = vmatpush.msrb.mxu3 %v1581_v62 }
 0x5f6   : > { %1615 = vmatpush.msrb.mxu3 %v1580_v1 }
 0x61e   : > { %v1570_v61 = vpop.permute.xlu1 %1569 }
 0x631   : > { %v1327_v55 = vpop.permute.xlu2 %1326 }
 0x639   : > { %v1329_v19 = vpop.permute.xlu2 %1328 }
 0x641   : > { %v1084_v6 = vpop.permute.xlu0 %1083 }
 0x642   : > { %1090 = vst.msk [vmem:[#allocation4] sm:$0xff] %vm1089_vm4, %v1084_v6 }
 0x643   : > { %1333 = vst.msk [vmem:[#allocation4] sm:$0xff] %vm1332_vm5, %v1327_v55 }
 0x644   : > { %1576 = vst.msk [vmem:[#allocation4] sm:$0xff] %vm1575_vm6, %v1570_v61 }
 0x649   : > { %v1086_v5 = vpop.permute.xlu0 %1085 }
 0x64a   : > { %1091 = vst.msk [vmem:[#allocation4 + $0x8] sm:$0xff] %vm1089_vm4, %v1086_v5 }
 0x64b   : > { %1334 = vst.msk [vmem:[#allocation4 + $0x8] sm:$0xff] %vm1332_vm5, %v1329_v19  ;;  %v1578_v49 = vld [vmem:[#allocation4] sm:$0xff] }
 0x64c   : > { %1616 = vmatmul.f32.vlgmr.msrb.gmra.mxu3 %v1578_v49 }
 0x651   : > { %v1572_v20 = vpop.permute.xlu0 %1571 }
 0x652   : > { %1577 = vst.msk [vmem:[#allocation4 + $0x8] sm:$0xff] %vm1575_vm6, %v1572_v20 }
 0x659   : > { %v1579_v17 = vld [vmem:[#allocation4 + $0x8] sm:$0xff] }
 0x65a   : > { %1619 = vmatmul.f32.gmra.mxu3 %v1579_v17 }
 0x6cf   : > { %v1617_v22 = vpop.f32.mrf.mxu3 }
 0x6d0   : > { %v1618_v56 = vadd.f32 %v2090_v4, %v1617_v22 }
 0x6d2   : > { %1623 = vst [vmem:[%s2785_s5] sm:$0xff] %v1618_v56 }
 0x6dd   : > { %v1620_v30 = vpop.f32.mrf.mxu3 }
 0x6de   : > { %v1621_v27 = vadd.f32 %v2090_v4, %v1620_v30 }
 0x6e0   : > { %1624 = vst [vmem:[%s2785_s5 + $0x8] sm:$0xff] %v1621_v27 }
 0x6e1   : > { %2378 = shalt.err (!%p2375_p13)
}
 0x6e2   : > { %s2500_s22 = smov 128   ;;  %s2501_s5 = smov 8  }
 0x6e3   : > { %1914 = dma.vmem_to_hbm [thread:$0]  (%p2729_p11), %s1641_s23, 256, %s1643_s16, %s1626_s9, %s2500_s22, %s2500_s22, %s2501_s5  }
 0x6e4 PF: > { %p1947_p0 = scmp.ge.s32.totalorder %s2485_s19, 2  ;;  %s1657_s27 = sand.u32 1, %s2457_s12  }
 0x6e5   : > { %s1658_s8 = scalar_lea.sflag [#allocation8], %s1657_s27 }
 0x6e6   : > { %p1937_p3 = pnand %p1947_p0, %p2735_p7 }
 0x6e8   : > { %p1938_p8 = pneg %p1937_p3 }
 0x6ea   : > { %2440 = dma.done.wait (%p1938_p8), %s1658_s8, 256  }
 0x6eb   : > { %2442 = vsyncadd (%p1938_p8), %s1658_s8, 4294967040  ;;  %s28_s19 = sadd.s32 1, %s2485_s19   ;;  %s3281_s1 = sld [smem:[#allocation23_spill]] }
 0x6ec   : > { %p25_p6 = scmp.ge.s32.totalorder %s28_s19, 6   ;;  %s3282_s3 = smov %s2743_s30 }
 0x6ed   : > { %s3283_s23 = sld [smem:[#allocation27_spill]]  ;;  %s3285_s10 = smov %s2453_s11 }
 0x6ee   : > { %s3286_s11 = smov %s2740_s26  ;;  %s3287_s12 = smov %s2461_s13 }
 0x6ef   : > { %s3288_s13 = smov %s2465_s14  ;;  %s3289_s14 = smov %s3282_s3 }
 0x6f0   : > { %s3290_s15 = smov %s2477_s17  ;;  %s3291_s16 = smov %s2481_s18 }
 0x6f1   : > { %s3284_s30 = smov %s3281_s1  ;;  %s3292_s17 = smov %s3295_s6 }
 0x6f2   :  { %27 = sbr.rel (!%p25_p6) target bundleno = 22 (0x16), region = 129 }
 0x6f3   : > { %s3293_s18 = smov %s3283_s23 }
 0x6f7   :  { %1664 = vsyncpa [#allocation7], 1 }
 0x6f8   :  { %1666 = vsyncpa [#allocation7 + $0x1], 1 }
 0x6f9   :  { %1667 = vsyncpa [#allocation10], 1 }
 0x6fa   :  { %1668 = vsyncpa [#allocation13], 1 }
 0x6fb   :  { %1669 = vsyncpa [#allocation16], 1 }
 0x6fc   :  { %1670 = vsyncpa [#allocation8], 1 }
 0x6fd   :  { %1672 = vsyncpa [#allocation8 + $0x1], 1 }

// kernel: tpu_custom_call.1
= control target key start
LH: loop header
LB: loop body
LE: loop exit
PB: predicated region body
PF: predicated region fallthrough
CT: control target
= control target key end

     0   :  { %s3281_s0 = inlined_call_operand.hbm [shape: f32[2,32,128], index: 0, kind: input, shape index: {}]   ;;  %s3282_s1 = inlined_call_operand.hbm [shape: f32[2,32,128], index: 1, kind: input, shape index: {}]   ;;  %s3283_s2 = inlined_call_operand.hbm [shape: f32[2,2,16], index: 2, kind: input, shape index: {}]   ;;  %s3284_s3 = inlined_call_operand.hbm [shape: f32[128,128], index: 3, kind: input, shape index: {}]   ;;  %s3285_s4 = inlined_call_operand.vmem [shape: f32[1,128], index: 4, kind: input, shape index: {}]   ;;  %s3286_s5 = inlined_call_operand.hbm [shape: f32[128,256], index: 5, kind: input, shape index: {}]   ;;  %s3287_s6 = inlined_call_operand.vmem [shape: f32[1,256], index: 6, kind: input, shape index: {}]   ;;  %s3288_s7 = inlined_call_operand.hbm [shape: f32[128,128], index: 7, kind: input, shape index: {}]   ;;  %s3289_s8 = inlined_call_operand.vmem [shape: f32[1,128], index: 8, kind: input, shape index: {}]   ;;  %s3290_s9 = inlined_call_operand.hbm [shape: f32[2,32,128], index: 9, kind: output, shape index: {}]  }
   0x1   :  { %3309 = sst [smem:[#allocation34_spill]] %s3282_s1 }
   0x2   :  { %3310 = sst [smem:[#allocation35_spill]] %s3284_s3 }
   0x3   :  { %3311 = sst [smem:[#allocation36_spill]] %s3285_s4 }
   0x4   :  { %3312 = sst [smem:[#allocation37_spill]] %s3286_s5 }
   0x5   :  { %3313 = sst [smem:[#allocation38_spill]] %s3287_s6 }
   0x6   :  { %3314 = sst [smem:[#allocation39_spill]] %s3288_s7 }
   0x7   :  { %3315 = sst [smem:[#allocation40_spill]] %s3289_s8 }
   0x8   :  { %3316 = sst [smem:[#allocation41_spill]] %s3290_s9 }
   0x9   :  { %14 = vsyncpa [#allocation7], 0 }
   0xa   :  { %16 = vsyncpa [#allocation7 + $0x1], 0 }
   0xb   :  { %17 = vsyncpa [#allocation10], 0 }
   0xc   :  { %19 = vsyncpa [#allocation10 + $0x1], 0 }
   0xd   :  { %20 = vsyncpa [#allocation13], 0 }
   0xe   :  { %21 = vsyncpa [#allocation16], 0 }
   0xf   :  { %22 = vsyncpa [#allocation8], 0 }
  0x10   :  { %24 = vsyncpa [#allocation8 + $0x1], 0  ;;  %s2604_s30 = smov 0   ;;  %s2606_s10 = smov 0  }
  0x11   :  { %s2608_s11 = smov 0   ;;  %s2610_s12 = smov 0  }
  0x12   :  { %s2612_s13 = smov 0   ;;  %s2614_s14 = smov 0  }
  0x13   :  { %s2616_s15 = smov 0   ;;  %s2618_s16 = smov 0  }
  0x14   :  { %s2620_s17 = smov 0   ;;  %s2622_s18 = smov 0  }
  0x15   :  { %s2624_s19 = smov 0  }
  0x16 LB: > { %3317 = sst [smem:[#allocation23_spill]] %s2503_s10  ;;  %s2660_s20 = sadd.s32 4294967295, %s2539_s19   ;;  %s2539_s19 = sphi %s2624_s19, %s30_s19   ;;  %s2535_s18 = sphi %s2622_s18, %s3368_s18   ;;  %s2531_s17 = sphi %s2620_s17, %s3360_s17   ;;  %s2527_s16 = sphi %s2618_s16, %s3367_s16   ;;  %s2523_s15 = sphi %s2616_s15, %s3359_s15   ;;  %s2519_s14 = sphi %s2614_s14, %s3366_s14   ;;  %s2515_s13 = sphi %s2612_s13, %s3365_s13   ;;  %s2511_s12 = sphi %s2610_s12, %s3364_s12   ;;  %s2507_s11 = sphi %s2608_s11, %s3363_s11   ;;  %s2503_s10 = sphi %s2606_s10, %s3362_s10   ;;  %s2499_s30 = sphi %s2604_s30, %s3358_s30  }
  0x17   : > { %3318 = sst [smem:[#allocation24_spill]] %s2511_s12  ;;  %p1840_p0 = scmp.ge.s32.totalorder %s2539_s19, 1 }
  0x18   : > { %3319 = sst [smem:[#allocation25_spill]] %s2523_s15  ;;  %p65_p1 = scmp.eq.s32.totalorder %s2660_s20, 0 }
  0x19   : > { %3320 = sst [smem:[#allocation26_spill]] %s2527_s16  ;;  %p268_p2 = scmp.eq.s32.totalorder %s2660_s20, 3 }
  0x1a   : > { %3321 = sst [smem:[#allocation27_spill]] %s2531_s17  ;;  %p281_p3 = scmp.lt.s32.totalorder %s2539_s19, 5 }
  0x1b   : > { %3322 = sst [smem:[#allocation28_spill]] %s2660_s20  ;;  %s2541_s25 = smov [#allocation12]  }
  0x1c   : > { %s3323_s3 = sld [smem:[#allocation35_spill]]  ;;  %p2669_p4 = pnand %p1840_p0, %p281_p3 }
  0x1d   : > { %s294_s26 = sshll.u32 %s2541_s25, 4  ;;  %s3292_s28 = smov 128   ;;  %s295_s26 = int_to_ptr.vmem [resolvable:$true] %s294_s26 }
  0x1e   : > { %p1972_p5 = pneg %p2669_p4  ;;  %s3294_s29 = smov 8  }
  0x1f   : > { %p59_p7 = scmp.eq.s32.totalorder %s2539_s19, 0  ;;  %p84_p8 = scmp.ne.s32.totalorder %s2507_s11, %s2503_s10 }
  0x20   : > { %p2677_p6 = pnand %p1972_p5, %p65_p1  ;;  %p90_p9 = scmp.ne.s32.totalorder %s2503_s10, %s2499_s30 }
  0x21   : > { %p1999_p10 = scmp.lt.s32.totalorder %s2539_s19, 4  ;;  %s369_s22 = sand.u32 1, %s2539_s19  }
  0x22   : > { %s292_s23 = sshll.u32 %s3323_s3, 4  ;;  %p86_p11 = por %p84_p8, %p59_p7  ;;  %s293_s23 = int_to_ptr.hbm [resolvable:$true] %s292_s23 }
  0x23   : > { %1975 = dma.hbm_to_vmem [thread:$0]  (!%p2677_p6), %s293_s23, 2048, %s295_s26, [#allocation13], %s3292_s28, %s3292_s28, %s3294_s29  }
  0x24   : > { %p2698_p12 = por %p90_p9, %p65_p1  ;;  %s3296_s3 = sand.u32 1, %s2507_s11  }
  0x25   : > { %s1849_s9 = sshll.u32 %s3296_s3, 5  ;;  %s1917_s8 = sshll.u32 %s2535_s18, 5 }
  0x26   : > { %s3326_s25 = scalar_select %p2698_p12, 1, 0 }
  0x27   : > { %s3328_s1 = sld [smem:[#allocation34_spill]]  ;;  %s373_s30 = scalar_lea.vmem [#allocation9], %s1849_s9 }
  0x28   : > { %3327 = sst [smem:[#allocation29_spill]] %s3326_s25  ;;  %s381_s28 = sshll.u32 %s373_s30, 4  ;;  %s382_s28 = int_to_ptr.vmem [resolvable:$true] %s381_s28 }
  0x29   : > { %p2711_p13 = pnand %p1999_p10, %p86_p11  ;;  %s3330_s5 = sld [smem:[#allocation37_spill]] }
  0x2a   : > { %s2718_s9 = scalar_lea.sflag [#allocation10], %s369_s22  ;;  %s3331_s23 = smov 8  }
  0x2b   : > { %s3333_s7 = sld [smem:[#allocation39_spill]]  ;;  %s2547_s22 = smov [#allocation15]  }
  0x2c   : > { %s39_s4 = sadd.s32 1, %s2531_s17  ;;  %s42_s6 = sadd.s32 1, %s2535_s18 }
  0x2d   : > { %s378_s26 = scalar_lea.hbm %s3328_s1, %s1917_s8  ;;  %s2544_s8 = smov [#allocation14]  }
  0x2e   : > { %s379_s21 = sshll.u32 %s378_s26, 4  ;;  %s311_s16 = sshll.u32 %s2544_s8, 4  ;;  %s380_s21 = int_to_ptr.hbm [resolvable:$true] %s379_s21  ;;  %s312_s16 = int_to_ptr.vmem [resolvable:$true] %s311_s16 }
  0x2f   : > { %s309_s3 = sshll.u32 %s3330_s5, 4  ;;  %s3332_s26 = smov 128   ;;  %s310_s3 = int_to_ptr.hbm [resolvable:$true] %s309_s3 }
  0x30   : > { %1988 = dma.hbm_to_vmem [thread:$0]  (!%p2711_p13), %s380_s21, 512, %s382_s28, %s2718_s9, %s3332_s26, %s3332_s26, %s3331_s23  }
  0x31   : > { %s326_s30 = sshll.u32 %s3333_s7, 4  ;;  %s2545_s1 = smov 256   ;;  %s327_s30 = int_to_ptr.hbm [resolvable:$true] %s326_s30 }
  0x32   : > { %s2546_s8 = smov 16   ;;  %s328_s28 = sshll.u32 %s2547_s22, 4  ;;  %s329_s28 = int_to_ptr.vmem [resolvable:$true] %s328_s28 }
  0x33   : > { %1978 = dma.hbm_to_vmem [thread:$0]  (!%p2677_p6), %s310_s3, 4096, %s312_s16, [#allocation13], %s2545_s1, %s2545_s1, %s2546_s8  }
  0x34   : > { %1981 = dma.hbm_to_vmem [thread:$0]  (!%p2677_p6), %s327_s30, 2048, %s329_s28, [#allocation16], %s3332_s26, %s3332_s26, %s3331_s23  }
  0x35   : > { %s1839_s21 = sadd.s32 4294967294, %s2539_s19   ;;  %p40_p0 = scmp.ge.s32.totalorder %s39_s4, 2 }
  0x36   : > { %s51_s1 = sadd.s32 1, %s2519_s14  ;;  %p58_p3 = scmp.ne.s32.totalorder %s2519_s14, %s2515_s13 }
  0x37   : > { %s3370_s4 = smov (%p40_p0, %s39_s4), 0  ;;  %s3372_s6 = smov (!%p40_p0, %s42_s6), %s2535_s18 }
  0x38   : > { %3334 = sst [smem:[#allocation30_spill]] %s3370_s4  ;;  %s47_s3 = ssub.s32 %s2531_s17, %s3370_s4 }
  0x39   : > { %p2749_p5 = por %p59_p7, %p58_p3  ;;  %p44_p6 = scmp.ge.s32.totalorder %s3372_s6, 2 }
  0x3a   : > { %p64_p8 = scmp.ne.s32.totalorder %s2515_s13, %s2511_s12  ;;  %p2757_p9 = por %p268_p2, %p58_p3 }
  0x3b   : > { %p274_p11 = scmp.eq.s32.totalorder %s1839_s21, 3  ;;  %s3374_s6 = smov (%p44_p6, %s3372_s6), 0 }
  0x3c   : > { %s3336_s16 = scalar_select %p2757_p9, 1, 0 }
  0x3d   : > { %3338 = sst [smem:[#allocation32_spill]] %s3374_s6  ;;  %p2765_p0 = por %p65_p1, %p64_p8 }
  0x3e   : > { %3337 = sst [smem:[#allocation31_spill]] %s3336_s16  ;;  %p2769_p7 = por %p274_p11, %p64_p8 }
  0x3f   : > { %s46_s22 = ssub.s32 %s2535_s18, %s3374_s6  ;;  %s345_s28 = sand.u32 1, %s2519_s14  }
  0x40   : > { %s3340_s8 = scalar_select %p2769_p7, 1, 0 }
  0x41   : > { %s48_s5 = sor.u32 %s47_s3, %s46_s22  ;;  %p75_p2 = scmp.eq.s32.totalorder %s46_s22, 0 }
  0x42   : > { %3341 = sst [smem:[#allocation33_spill]] %s3340_s8  ;;  %p49_p3 = scmp.eq.s32.totalorder %s48_s5, 0 }
  0x43   : > { %s3342_s21 = sadd.s32 1, %s2507_s11  ;;  %s1845_s12 = sshll.u32 %s345_s28, 4 }
  0x44   : > { %s2779_s7 = scalar_select %p75_p2, %s2507_s11, %s3342_s21  }
  0x45   : > { %s2782_s4 = scalar_select %p49_p3, %s2519_s14, %s51_s1  }
  0x46   : > { %s1846_s16 = sshll.u32 %s2531_s17, 1  ;;  %s1847_s15 = sshll.u32 %s2535_s18, 2 }
  0x47   : > { %s354_s25 = sadd.s32 %s1847_s15, %s1846_s16  ;;  %s349_s10 = scalar_lea.vmem [#allocation6], %s1845_s12 }
  0x48   : > { %s359_s8 = sshll.u32 %s349_s10, 4  ;;  %s1848_s6 = sshll.u32 %s354_s25, 3  ;;  %s360_s8 = int_to_ptr.vmem [resolvable:$true] %s359_s8 }
  0x49   : > { %s356_s5 = scalar_lea.hbm %s3281_s0, %s1848_s6  ;;  %p1983_p6 = pnand %p1999_p10, %p2749_p5 }
  0x4a   : > { %s357_s1 = sshll.u32 %s356_s5, 4  ;;  %s3343_s22 = sand.u32 1, %s2507_s11   ;;  %s358_s1 = int_to_ptr.hbm [resolvable:$true] %s357_s1 }
  0x4b   : > { %s1852_s21 = sshll.u32 %s3343_s22, 1  ;;  %s346_s17 = scalar_lea.sflag [#allocation7], %s345_s28 }
  0x4c   : > { %1985 = dma.hbm_to_vmem [thread:$0]  (!%p1983_p6), %s358_s1, 256, %s360_s8, %s346_s17, %s3332_s26, %s3332_s26, %s3331_s23  }
  0x4d   : > { %s1853_s10 = sshll.u32 %s2535_s18, 1  ;;  %s395_s16 = scalar_lea.vmem [#allocation11], %s1852_s21 }
  0x4e   : > { %s399_s25 = scalar_lea.hbm %s3283_s2, %s1853_s10  ;;  %s403_s20 = sshll.u32 %s395_s16, 4  ;;  %s404_s20 = int_to_ptr.vmem [resolvable:$true] %s403_s20 }
  0x4f   : > { %s401_s6 = sshll.u32 %s399_s25, 4  ;;  %412 = sbr.rel (%p2669_p4) target bundleno = 1755 (0x6db), region = 56  ;;  %s402_s6 = int_to_ptr.hbm [resolvable:$true] %s401_s6 }
  0x50   : > { %1991 = dma.hbm_to_vmem [thread:$0]  (!%p2711_p13), %s402_s6, 32, %s404_s20, %s2718_s9  }
  0x51   : > { %s2808_s27 = sand.u32 (!%p2669_p4), 1, %s2515_s13  }
  0x52   : > { %s1855_s17 = sshll.u32 (!%p2669_p4), %s2808_s27, 4  ;;  %s415_s23 = scalar_lea.sflag (!%p2669_p4), [#allocation7], %s2808_s27 }
  0x53   : > { %s2812_s26 = scalar_lea.vmem (!%p2669_p4), [#allocation6], %s1855_s17 }
  0x54   : > { %2478 = dma.done.wait (%p2765_p0), %s415_s23, 256  }
  0x55   : > { %2480 = vsyncadd (%p2765_p0), %s415_s23, 4294967040  ;;  %s3344_s29 = sld [smem:[#allocation28_spill]] }
  0x56   : > { %s3345_s9 = sld [smem:[#allocation23_spill]] }
  0x5b   : > { %s424_s24 = sand.u32 1, %s3344_s29  }
  0x5c   : > { %s426_s28 = sand.u32 1, %s3345_s9   ;;  %s425_s5 = scalar_lea.sflag [#allocation10], %s424_s24 }
  0x5d   : > { %s1856_s3 = sshll.u32 %s426_s28, 5 }
  0x5e   : > { %s2820_s1 = scalar_lea.vmem [#allocation9], %s1856_s3 }
  0x5f   : > { %2482 = dma.done.wait (%p2698_p12), %s425_s5, 544  }
  0x60   : > { %2484 = vsyncadd (%p2698_p12), %s425_s5, 4294966752  ;;  %s2826_s22 = sshll.u32 %s426_s28, 1 }
  0x61   : > { %s438_s30 = scalar_lea.vmem [#allocation11], %s2826_s22 }
  0x62   : > { %2486 = dma.done.wait (%p65_p1), [#allocation13], 6144  }
  0x63   : > { %2488 = vsyncadd (%p65_p1), [#allocation13], 4294961152 }
  0x64   : > { %2490 = dma.done.wait (%p65_p1), [#allocation16], 2048  }
  0x65   : > { %2492 = vsyncadd (%p65_p1), [#allocation16], 4294965248  ;;  %s2837_s21 = scalar_lea.vmem [#allocation17], %s1855_s17  ;;  %s3347_s10 = sld [smem:[#allocation25_spill]] }
  0x6b   : > { %p1862_p4 = scmp.ne.s32.totalorder %s3347_s10, 0 }
  0x6c   : > { %s3348_s25 = sld [smem:[#allocation38_spill]] (!%p1862_p4) }
  0x6d   : > { %504 = sbr.rel (%p1862_p4) target bundleno = 290 (0x122), region = 84 }
  0x72   : > { %v539_v0 = vld [vmem:[#allocation14 + $0xf0] sm:$0xff]  ;;  %v540_v1 = vld [vmem:[#allocation14 + $0xf8] sm:$0xff]  ;;  %v537_v2 = vld [vmem:[#allocation14 + $0xe0] sm:$0xff]  ;;  %v2548_v37 = vmov -1e+09   ;;  %vm616_vm1 = vcmask 123904  }
  0x73   : > { %1918 = vmatpush.msra.mxu2 %v539_v0  ;;  %1934 = vmatpush.msra.mxu3 %v540_v1  ;;  %v538_v3 = vld [vmem:[#allocation14 + $0xe8] sm:$0xff]  ;;  %v535_v4 = vld [vmem:[#allocation14 + $0xd0] sm:$0xff]  ;;  %v536_v5 = vld [vmem:[#allocation14 + $0xd8] sm:$0xff] }
  0x74   : > { %547 = vmatpush.msra.mxu0 %v539_v0  ;;  %576 = vmatpush.msra.mxu1 %v540_v1  ;;  %v533_v6 = vld [vmem:[#allocation14 + $0xc0] sm:$0xff]  ;;  %v534_v7 = vld [vmem:[#allocation14 + $0xc8] sm:$0xff]  ;;  %v531_v8 = vld [vmem:[#allocation14 + $0xb0] sm:$0xff] }
  0x75   : > { %1919 = vmatpush.msra.mxu2 %v537_v2  ;;  %1935 = vmatpush.msra.mxu3 %v538_v3  ;;  %v532_v9 = vld [vmem:[#allocation14 + $0xb8] sm:$0xff]  ;;  %v529_v10 = vld [vmem:[#allocation14 + $0xa0] sm:$0xff]  ;;  %v530_v11 = vld [vmem:[#allocation14 + $0xa8] sm:$0xff] }
  0x76   : > { %548 = vmatpush.msra.mxu0 %v537_v2  ;;  %577 = vmatpush.msra.mxu1 %v538_v3  ;;  %v527_v12 = vld [vmem:[#allocation14 + $0x90] sm:$0xff]  ;;  %v528_v13 = vld [vmem:[#allocation14 + $0x98] sm:$0xff]  ;;  %v525_v14 = vld [vmem:[#allocation14 + $0x80] sm:$0xff] }
  0x77   : > { %1920 = vmatpush.msra.mxu2 %v535_v4  ;;  %1936 = vmatpush.msra.mxu3 %v536_v5  ;;  %v526_v15 = vld [vmem:[#allocation14 + $0x88] sm:$0xff]  ;;  %v523_v16 = vld [vmem:[#allocation14 + $0x70] sm:$0xff]  ;;  %v524_v17 = vld [vmem:[#allocation14 + $0x78] sm:$0xff] }
  0x78   : > { %549 = vmatpush.msra.mxu0 %v535_v4  ;;  %578 = vmatpush.msra.mxu1 %v536_v5  ;;  %v521_v18 = vld [vmem:[#allocation14 + $0x60] sm:$0xff]  ;;  %v522_v19 = vld [vmem:[#allocation14 + $0x68] sm:$0xff]  ;;  %v519_v20 = vld [vmem:[#allocation14 + $0x50] sm:$0xff] }
  0x79   : > { %1921 = vmatpush.msra.mxu2 %v533_v6  ;;  %1937 = vmatpush.msra.mxu3 %v534_v7  ;;  %v520_v21 = vld [vmem:[#allocation14 + $0x58] sm:$0xff]  ;;  %v517_v22 = vld [vmem:[#allocation14 + $0x40] sm:$0xff]  ;;  %v518_v23 = vld [vmem:[#allocation14 + $0x48] sm:$0xff] }
  0x7a   : > { %550 = vmatpush.msra.mxu0 %v533_v6  ;;  %579 = vmatpush.msra.mxu1 %v534_v7  ;;  %v515_v24 = vld [vmem:[#allocation14 + $0x30] sm:$0xff]  ;;  %v516_v25 = vld [vmem:[#allocation14 + $0x38] sm:$0xff]  ;;  %v513_v26 = vld [vmem:[#allocation14 + $0x20] sm:$0xff] }
  0x7b   : > { %1922 = vmatpush.msra.mxu2 %v531_v8  ;;  %1938 = vmatpush.msra.mxu3 %v532_v9  ;;  %v514_v27 = vld [vmem:[#allocation14 + $0x28] sm:$0xff]  ;;  %v511_v28 = vld [vmem:[#allocation14 + $0x10] sm:$0xff]  ;;  %v512_v29 = vld [vmem:[#allocation14 + $0x18] sm:$0xff] }
  0x7c   : > { %551 = vmatpush.msra.mxu0 %v531_v8  ;;  %580 = vmatpush.msra.mxu1 %v532_v9  ;;  %v509_v30 = vld [vmem:[#allocation14] sm:$0xff]  ;;  %v510_v31 = vld [vmem:[#allocation14 + $0x8] sm:$0xff]  ;;  %v508_v34 = vld [vmem:[%s2820_s1 + $0x18] sm:$0xff] }
  0x7d   : > { %1923 = vmatpush.msra.mxu2 %v529_v10  ;;  %1939 = vmatpush.msra.mxu3 %v530_v11  ;;  %v507_v32 = vld [vmem:[%s2820_s1 + $0x10] sm:$0xff]  ;;  %v505_v33 = vld [vmem:[%s2820_s1] sm:$0xff]  ;;  %v506_v35 = vld [vmem:[%s2820_s1 + $0x8] sm:$0xff] }
  0x7e   : > { %552 = vmatpush.msra.mxu0 %v529_v10  ;;  %581 = vmatpush.msra.mxu1 %v530_v11  ;;  %v613_v36 = vld [vmem:[%s438_s30] sm:$0x3]  ;;  %v541_v39 = vld [vmem:[%s3348_s25] sm:$0x3] }
  0x7f   : > { %1924 = vmatpush.msra.mxu2 %v527_v12  ;;  %1940 = vmatpush.msra.mxu3 %v528_v13  ;;  %vm614_vm0 = vcmp.gt.f32.partialorder %v613_v36, 0.0  ;;  %v543_v40 = vperm.slane %v541_v39, 0  ;;  %v544_v41 = vperm.slane %v541_v39, 1 }
  0x80   : > { %553 = vmatpush.msra.mxu0 %v527_v12  ;;  %582 = vmatpush.msra.mxu1 %v528_v13  ;;  %v615_v38 = vsel %vm614_vm0, 0.0, %v2548_v37 }
  0x81   : > { %1925 = vmatpush.msra.mxu2 %v525_v14  ;;  %1941 = vmatpush.msra.mxu3 %v526_v15  ;;  %617 = vst.msk [vmem:[#allocation5] sm:$0x3] %vm616_vm1, %v615_v38 }
  0x82   : > { %554 = vmatpush.msra.mxu0 %v525_v14  ;;  %583 = vmatpush.msra.mxu1 %v526_v15 }
  0x83   : > { %1926 = vmatpush.msra.mxu2 %v523_v16  ;;  %1942 = vmatpush.msra.mxu3 %v524_v17 }
  0x84   : > { %555 = vmatpush.msra.mxu0 %v523_v16  ;;  %584 = vmatpush.msra.mxu1 %v524_v17 }
  0x85   : > { %1927 = vmatpush.msra.mxu2 %v521_v18  ;;  %1943 = vmatpush.msra.mxu3 %v522_v19 }
  0x86   : > { %556 = vmatpush.msra.mxu0 %v521_v18  ;;  %585 = vmatpush.msra.mxu1 %v522_v19 }
  0x87   : > { %1928 = vmatpush.msra.mxu2 %v519_v20  ;;  %1944 = vmatpush.msra.mxu3 %v520_v21 }
  0x88   : > { %557 = vmatpush.msra.mxu0 %v519_v20  ;;  %586 = vmatpush.msra.mxu1 %v520_v21 }
  0x89   : > { %1929 = vmatpush.msra.mxu2 %v517_v22  ;;  %1945 = vmatpush.msra.mxu3 %v518_v23 }
  0x8a   : > { %558 = vmatpush.msra.mxu0 %v517_v22  ;;  %587 = vmatpush.msra.mxu1 %v518_v23 }
  0x8b   : > { %1930 = vmatpush.msra.mxu2 %v515_v24  ;;  %1946 = vmatpush.msra.mxu3 %v516_v25 }
  0x8c   : > { %559 = vmatpush.msra.mxu0 %v515_v24  ;;  %588 = vmatpush.msra.mxu1 %v516_v25 }
  0x8d   : > { %1931 = vmatpush.msra.mxu2 %v513_v26  ;;  %1947 = vmatpush.msra.mxu3 %v514_v27 }
  0x8e   : > { %560 = vmatpush.msra.mxu0 %v513_v26  ;;  %589 = vmatpush.msra.mxu1 %v514_v27 }
  0x8f   : > { %1932 = vmatpush.msra.mxu2 %v511_v28  ;;  %1948 = vmatpush.msra.mxu3 %v512_v29 }
  0x90   : > { %561 = vmatpush.msra.mxu0 %v511_v28  ;;  %590 = vmatpush.msra.mxu1 %v512_v29 }
  0x91   : > { %1933 = vmatpush.msra.mxu2 %v509_v30  ;;  %1949 = vmatpush.msra.mxu3 %v510_v31 }
  0x92   : > { %569 = vmatmul.f32.vlgmr.msra.gmra.mxu2 %v507_v32  ;;  %598 = vmatmul.f32.vlgmr.msra.gmra.mxu3 %v507_v32 }
  0x93   : > { %562 = vmatpush.msra.mxu0 %v509_v30  ;;  %591 = vmatpush.msra.mxu1 %v510_v31 }
  0x94   : > { %563 = vmatmul.f32.vlgmr.msra.gmra.mxu0 %v505_v33  ;;  %592 = vmatmul.f32.vlgmr.msra.gmra.mxu1 %v505_v33 }
  0x9a   : > { %572 = vmatmul.f32.gmra.mxu2 %v508_v34  ;;  %601 = vmatmul.f32.gmra.mxu3 %v508_v34 }
  0x9c   : > { %566 = vmatmul.f32.gmra.mxu0 %v506_v35  ;;  %595 = vmatmul.f32.gmra.mxu1 %v506_v35 }
 0x111   : > { %v564_v42 = vpop.f32.mrf.mxu0  ;;  %v593_v43 = vpop.f32.mrf.mxu1 }
 0x112   : > { %v565_v44 = vadd.f32 %v564_v42, %v543_v40  ;;  %v594_v45 = vadd.f32 %v593_v43, %v544_v41 }
 0x114   : > { %605 = vst [vmem:[#allocation3 + $0x30] sm:$0xff] %v565_v44 }
 0x115   : > { %v570_v46 = vpop.f32.mrf.mxu2  ;;  %606 = vst [vmem:[#allocation3] sm:$0xff] %v594_v45  ;;  %v599_v47 = vpop.f32.mrf.mxu3 }
 0x116   : > { %v571_v48 = vadd.f32 %v570_v46, %v543_v40  ;;  %v600_v49 = vadd.f32 %v599_v47, %v544_v41 }
 0x118   : > { %609 = vst [vmem:[#allocation3 + $0x8] sm:$0xff] %v571_v48 }
 0x119   : > { %610 = vst [vmem:[#allocation3 + $0x20] sm:$0xff] %v600_v49  ;;  %v567_v50 = vpop.f32.mrf.mxu0  ;;  %v596_v51 = vpop.f32.mrf.mxu1 }
 0x11a   : > { %v568_v52 = vadd.f32 %v567_v50, %v543_v40  ;;  %v597_v53 = vadd.f32 %v596_v51, %v544_v41 }
 0x11c   : > { %607 = vst [vmem:[#allocation3 + $0x18] sm:$0xff] %v568_v52 }
 0x11d   : > { %v573_v54 = vpop.f32.mrf.mxu2  ;;  %608 = vst [vmem:[#allocation3 + $0x10] sm:$0xff] %v597_v53  ;;  %v602_v55 = vpop.f32.mrf.mxu3 }
 0x11e   : > { %v574_v56 = vadd.f32 %v573_v54, %v543_v40  ;;  %v603_v57 = vadd.f32 %v602_v55, %v544_v41 }
 0x120   : > { %611 = vst [vmem:[#allocation3 + $0x28] sm:$0xff] %v574_v56 }
 0x121   : > { %612 = vst [vmem:[#allocation3 + $0x38] sm:$0xff] %v603_v57 }
 0x122 PF: > { %v635_v58 = vld [vmem:[#allocation12 + $0x78] sm:$0xff]  ;;  %v634_v59 = vld [vmem:[#allocation12 + $0x70] sm:$0xff]  ;;  %v633_v60 = vld [vmem:[#allocation12 + $0x68] sm:$0xff]  ;;  %vm678_vm2 = vcmask 261120   ;;  %s2549_s16 = smov 96   ;;  %s3349_s17 = sld [smem:[#allocation36_spill]] }
 0x123   : > { %640 = vmatpush.msra.mxu0 %v635_v58  ;;  %v632_v61 = vld [vmem:[#allocation12 + $0x60] sm:$0xff]  ;;  %v631_v62 = vld [vmem:[#allocation12 + $0x58] sm:$0xff]  ;;  %v630_v63 = vld [vmem:[#allocation12 + $0x50] sm:$0xff]  ;;  %s2550_s23 = smov 64   ;;  %vm714_vm3 = vcmask 130048   ;;  %vm1121_vm4 = vcmask 523520  }
 0x124   : > { %v2849_v0 = vld [vmem:[#allocation3 + $0x18] sm:$0xff]  ;;  %v2855_v3 = vld [vmem:[#allocation3 + $0x30] sm:$0xff]  ;;  %v626_v5 = vld [vmem:[#allocation12 + $0x30] sm:$0xff]  ;;  %vm1364_vm5 = vcmask 785920   ;;  %vm1607_vm6 = vcmask 1048320   ;;  %s3350_s29 = sld [smem:[#allocation25_spill]] }
 0x125   : > { %641 = vmatpush.msra.mxu0 %v634_v59  ;;  %899 = vrot.lane.b32.xlu1 %v2849_v0, %s2549_s16  ;;  %v629_v1 = vld [vmem:[#allocation12 + $0x48] sm:$0xff]  ;;  %v628_v2 = vld [vmem:[#allocation12 + $0x40] sm:$0xff]  ;;  %v627_v4 = vld [vmem:[#allocation12 + $0x38] sm:$0xff]  ;;  %s3351_s9 = sld [smem:[#allocation26_spill]]  ;;  %s1672_s20 = sshll.u32 %s2837_s21, 4  ;;  %s1673_s20 = int_to_ptr.vmem [resolvable:$true] %s1672_s20 }
 0x126   : > { %1863 = vmatpush.xpose.msk.msra.mxu1 %vm678_vm2, %v2849_v0  ;;  %v625_v6 = vld [vmem:[#allocation12 + $0x28] sm:$0xff]  ;;  %v624_v7 = vld [vmem:[#allocation12 + $0x20] sm:$0xff]  ;;  %v623_v8 = vld [vmem:[#allocation12 + $0x18] sm:$0xff]  ;;  %s3352_s28 = sld [smem:[#allocation40_spill]] }
 0x127   : > { %642 = vmatpush.msra.mxu0 %v633_v60  ;;  %v622_v9 = vld [vmem:[#allocation12 + $0x10] sm:$0xff]  ;;  %v621_v10 = vld [vmem:[#allocation12 + $0x8] sm:$0xff]  ;;  %v620_v11 = vld [vmem:[#allocation12] sm:$0xff]  ;;  %s3354_s15 = sld [smem:[#allocation41_spill]] }
 0x128   : > { %v618_v12 = vld [vmem:[%s2812_s26] sm:$0xff]  ;;  %v619_v14 = vld [vmem:[%s2812_s26 + $0x8] sm:$0xff]  ;;  %s2551_s26 = smov 32  }
 0x129   : > { %643 = vmatpush.msra.mxu0 %v632_v61  ;;  %v2862_v13 = vld [vmem:[#allocation3 + $0x28] sm:$0xff]  ;;  %v2135_v18 = vld [vmem:[%s3349_s17] ss:$0 sm:$0xff]  ;;  %v886_v28 = vld [vmem:[#allocation3 + $0x10] sm:$0xff]  ;;  %s1658_s17 = scalar_lea.sflag [#allocation8], %s2808_s27 }
 0x12a   : > { %1864 = vmatpush.xpose.msk.msra.mxu1 %vm678_vm2, %v2855_v3  ;;  %v2867_v15 = vld [vmem:[#allocation3 + $0x8] sm:$0xff]  ;;  %v885_v27 = vld [vmem:[#allocation3] sm:$0xff]  ;;  %763 = vmatpush.msra.mxu2 %v886_v28  ;;  %v2136_v30 = vld [vmem:[#allocation5] ss:$0 sm:$0xff]  ;;  %s1912_s3 = sshll.u32 %s3350_s29, 1 }
 0x12b   : > { %644 = vmatpush.msra.mxu0 %v631_v62  ;;  %v2902_v29 = vpack.i.bf16 %v885_v27, %v886_v28  ;;  %v2915_v36 = vld [vmem:[#allocation5 + $0x1] ss:$0 sm:$0xff]  ;;  %v2138_v41 = vld [vmem:[#allocation5] ss:$0 sm:$0xff]  ;;  %v2935_v53 = vld [vmem:[#allocation3 + $0x38] sm:$0xff]  ;;  %s1913_s5 = sshll.u32 %s3351_s9, 2 }
 0x12c   : > { %764 = vmatpush.msra.mxu2 %v885_v27  ;;  %v2943_v56 = vld [vmem:[#allocation3 + $0x20] sm:$0xff]  ;;  %s1669_s1 = sadd.s32 %s1913_s5, %s1912_s3 }
 0x12d   : > { %645 = vmatpush.msra.mxu0 %v630_v63  ;;  %897 = vrot.lane.b32.xlu1 %v2855_v3, %s2549_s16  ;;  %s1914_s30 = sshll.u32 %s1669_s1, 3  ;;  %s3355_s25 = smov %s3354_s15 }
 0x12e   : > { %1950 = vmatpush.xpose.msk.msrb.mxu2 %vm678_vm2, %v2862_v13  ;;  %s2425_s8 = scalar_lea.hbm %s3355_s25, 64 }
 0x12f   : > { %646 = vmatpush.msra.mxu0 %v629_v1 }
 0x131   : > { %647 = vmatpush.msra.mxu0 %v628_v2 }
 0x132   : > { %1951 = vmatpush.xpose.msk.msrb.mxu2 %vm678_vm2, %v2867_v15 }
 0x133   : > { %648 = vmatpush.msra.mxu0 %v627_v4 }
 0x135   : > { %649 = vmatpush.msra.mxu0 %v626_v5  ;;  %1007 = vrot.lane.b32.xlu1 %v2867_v15, %s2549_s16 }
 0x137   : > { %650 = vmatpush.msra.mxu0 %v625_v6 }
 0x139   : > { %651 = vmatpush.msra.mxu0 %v624_v7 }
 0x13b   : > { %652 = vmatpush.msra.mxu0 %v623_v8 }
 0x13d   : > { %653 = vmatpush.msra.mxu0 %v622_v9  ;;  %1252 = vrot.lane.b32.xlu1 %v2862_v13, %s2550_s23 }
 0x13f   : > { %654 = vmatpush.msra.mxu0 %v621_v10 }
 0x141   : > { %655 = vmatpush.msra.mxu0 %v620_v11 }
 0x142   : > { %656 = vmatmul.f32.vlgmr.msra.gmra.mxu0 %v618_v12 }
 0x143   : > { %1869 = vmatpush.xpose.msk.msrb.mxu0 %vm678_vm2, %v2862_v13 }
 0x147   : > { %1870 = vmatpush.xpose.msk.msrb.mxu0 %vm678_vm2, %v2867_v15 }
 0x14a   : > { %659 = vmatmul.f32.gmra.mxu0 %v619_v14 }
 0x197   : > { %v900_v16 = vpop.permute.xlu1 %899 }
 0x198   : > { %1875 = vmatpush.xpose.msk.msrb.mxu1 %vm678_vm2, %v900_v16 }
 0x19f   : > { %v898_v17 = vpop.permute.xlu1 %897 }
 0x1a0   : > { %1876 = vmatpush.xpose.msk.msrb.mxu1 %vm678_vm2, %v898_v17 }
 0x1bf   : > { %v657_v19 = vpop.f32.mrf.mxu0 }
 0x1c0   : > { %v658_v20 = vadd.f32 %v2135_v18, %v657_v19 }
 0x1c2   : > { %v2878_v21 = vmul.f32 0.17677669, %v658_v20 }
 0x1c4   : > { %891 = vrot.lane.b32.xlu2 %v2878_v21, %s2549_s16  ;;  %1865 = vmatmul.msk.f32.vlgmr.msra.gmra.mxu1 %vm678_vm2, %v2878_v21 }
 0x1c5   : > { %1871 = vmatmul.msk.f32.vlgmr.msrb.gmra.mxu0 %vm678_vm2, %v2878_v21 }
 0x1c7   : > { %v660_v22 = vpop.f32.mrf.mxu0 }
 0x1c8   : > { %v661_v23 = vadd.f32 %v2135_v18, %v660_v22 }
 0x1ca   : > { %v2886_v24 = vmul.f32 0.17677669, %v661_v23 }
 0x1cc   : > { %893 = vrot.lane.b32.xlu2 %v2886_v24, %s2549_s16  ;;  %1866 = vmatmul.msk.f32.gmra.mxu1 %vm678_vm2, %v2886_v24 }
 0x1d4   : > { %2106 = vrot.lane.b32.xlu2 %v2902_v29, %s2549_s16 }
 0x1dc   : > { %1142 = vrot.lane.b32.xlu2 %v2849_v0, %s2550_s23 }
 0x1e4   : > { %1250 = vrot.lane.b32.xlu2 %v2867_v15, %s2550_s23 }
 0x21e   : > { %v2894_v25 = vpop.permute.xlu2 %891 }
 0x21f   : > { %1877 = vmatmul.msk.f32.vlgmr.msrb.gmra.mxu1 %vm678_vm2, %v2894_v25 }
 0x226   : > { %v2898_v26 = vpop.permute.xlu2 %893 }
 0x227   : > { %1878 = vmatmul.msk.f32.gmra.mxu1 %vm678_vm2, %v2898_v26 }
 0x22e   : > { %v2107_v2 = vpop.permute.xlu2 %2106 }
 0x22f   : > { %v2109_v4 = vunpack.i.h.bf16 %v2107_v2 }
 0x236   : > { %v1143_v5 = vpop.permute.xlu2 %1142 }
 0x23e   : > { %v1251_v7 = vpop.permute.xlu2 %1250 }
 0x241   : > { %v708_v31 = vpop.f32.mrf.mxu1 }
 0x242   : > { %v709_v32 = vadd.f32 %v2136_v30, %v708_v31  ;;  %v806_v38 = vpop.f32.mrf.mxu0 }
 0x243   : > { %v807_v39 = vadd.f32 %v2915_v36, %v806_v38 }
 0x244   : > { %v715_v33 = vsel %vm714_vm3, %v709_v32, -inf }
 0x245   : > { %716 = vmax.xlane.f32.xlu0 %v715_v33  ;;  %v812_v40 = vsel %vm714_vm3, %v807_v39, -inf }
 0x249   : > { %v711_v34 = vpop.f32.mrf.mxu1 }
 0x24a   : > { %v712_v35 = vadd.f32 %v2136_v30, %v711_v34  ;;  %v1008_v34 = vpop.permute.xlu1 %1007 }
 0x24c   : > { %v718_v37 = vsel %vm714_vm3, %v712_v35, -inf }
 0x24d   : > { %719 = vmax.xlane.f32.xlu0 %v718_v37 }
 0x255   : > { %813 = vmax.xlane.f32.xlu0 %v812_v40 }
 0x269   : > { %1009 = vrot.lane.b32.xlu0 %v2862_v13, %s2549_s16 }
 0x271   : > { %1140 = vrot.lane.b32.xlu0 %v2855_v3, %s2550_s23 }
 0x29c   : > { %v926_v42 = vpop.f32.mrf.mxu1 }
 0x29d   : > { %v927_v43 = vadd.f32 %v2138_v41, %v926_v42 }
 0x29f   : > { %v932_v44 = vsel %vm714_vm3, %v927_v43, -inf }
 0x2a0   : > { %933 = vmax.xlane.f32.xlu2 %v932_v44 }
 0x2a4   : > { %v929_v45 = vpop.f32.mrf.mxu1 }
 0x2a5   : > { %v930_v46 = vadd.f32 %v2138_v41, %v929_v45 }
 0x2a7   : > { %v935_v47 = vsel %vm714_vm3, %v930_v46, -inf }
 0x2a8   : > { %936 = vmax.xlane.f32.xlu0 %v935_v47 }
 0x2b8   : > { %1136 = vrot.lane.b32.xlu2 %v2886_v24, %s2550_s23  ;;  %v717_v48 = vpop.xlane.xlu0 %716 }
 0x2b9   : > { %v727_v49 = vsub.f32 %v709_v32, %v717_v48  ;;  %v721_v17 = vsub.f32 -inf, %v717_v48 }
 0x2bb   : > { %v729_v50 = vmul.f32 1.442695, %v727_v49  ;;  %v723_v18 = vmul.f32 1.442695, %v721_v17 }
 0x2bc   : > { %1383 = vrot.lane.b32.xlu0 %v2855_v3, %s2551_s26  ;;  %v2108_v3 = vunpack.i.l.bf16 %v2107_v2 }
 0x2bd   : > { %2145 = vpow2.f32 %v729_v50  ;;  %v2110_v50 = vpack.i.bf16 %v2943_v56, %v2935_v53 }
 0x2be   : > { %988 = vmatpush.msra.mxu3 %v2108_v3 }
 0x2c0   : > { %1495 = vrot.lane.b32.xlu2 %v2862_v13, %s2551_s26  ;;  %v2932_v51 = vpop.xlane.xlu0 %719  ;;  %989 = vmatpush.msra.mxu3 %v2109_v4 }
 0x2c1   : > { %v728_v52 = vsub.f32 %v712_v35, %v2932_v51  ;;  %v1253_v35 = vpop.permute.xlu1 %1252 }
 0x2c2   : > { %1887 = vmatpush.xpose.msk.msrb.mxu3 %vm678_vm2, %v1143_v5 }
 0x2c3   : > { %v2937_v54 = vpop.eup %2145  ;;  %v731_v55 = vmul.f32 1.442695, %v728_v52 }
 0x2c4   : > { %1379 = vrot.lane.b32.xlu0 %v2886_v24, %s2551_s26  ;;  %1867 = vmatmul.msk.f32.vlgmr.msra.gmra.mxu2 %vm714_vm3, %v2937_v54 }
 0x2c5   : > { %2147 = vpow2.f32 %v731_v55  ;;  %864 = vmatpush.msra.mxu2 %v2935_v53 }
 0x2c7   : > { %865 = vmatpush.msra.mxu2 %v2943_v56 }
 0x2c8   : > { %1377 = vrot.lane.b32.xlu2 %v2878_v21, %s2551_s26  ;;  %v814_v57 = vpop.xlane.xlu0 %813 }
 0x2c9   : > { %v818_v58 = vmax.f32 %v717_v48, %v814_v57 }
 0x2cb   : > { %v2949_v59 = vpop.eup %2147  ;;  %v820_v60 = vsub.f32 %v717_v48, %v818_v58  ;;  %v826_v61 = vsub.f32 %v807_v39, %v818_v58 }
 0x2cc   : > { %1868 = vmatmul.msk.f32.gmra.mxu2 %vm714_vm3, %v2949_v59  ;;  %2111 = vrot.lane.b32.xlu0 %v2110_v50, %s2549_s16 }
 0x2cd   : > { %v828_v62 = vmul.f32 1.442695, %v826_v61  ;;  %v822_v19 = vmul.f32 1.442695, %v820_v60  ;;  %v2139_v61 = vld [vmem:[#allocation5 + $0x1] ss:$0 sm:$0xff] }
 0x2cf   : > { %2149 = vpow2.f32 %v828_v62  ;;  %v2140_v62 = vld [vmem:[#allocation5] ss:$0 sm:$0xff] }
 0x2d4   : > { %1872 = vmatmul.msk.f32.vlgmr.msrb.gmra.mxu2 %vm678_vm2, %v2886_v24 }
 0x2d5   : > { %v2955_v63 = vpop.eup %2149 }
 0x2db   : > { %v1010_v1 = vpop.permute.xlu0 %1009 }
 0x2dc   : > { %1873 = vmatmul.msk.f32.vlgmr.msra.gmra.mxu2 %vm714_vm3, %v2955_v63 }
 0x2dd   : > { %1881 = vmatpush.xpose.msk.msrb.mxu2 %vm678_vm2, %v1010_v1 }
 0x2e1   : > { %1882 = vmatpush.xpose.msk.msrb.mxu2 %vm678_vm2, %v1008_v34 }
 0x2e3   : > { %v1141_v6 = vpop.permute.xlu0 %1140 }
 0x2e4   : > { %1888 = vmatpush.xpose.msk.msrb.mxu3 %vm678_vm2, %v1141_v6 }
 0x2e5   : > { %1893 = vmatpush.xpose.msk.msra.mxu2 %vm678_vm2, %v1253_v35 }
 0x2e9   : > { %1894 = vmatpush.xpose.msk.msra.mxu2 %vm678_vm2, %v1251_v7 }
 0x313   : > { %v2962_v8 = vpop.xlane.xlu2 %933 }
 0x314   : > { %v944_v9 = vsub.f32 %v927_v43, %v2962_v8 }
 0x316   : > { %v946_v10 = vmul.f32 1.442695, %v944_v9 }
 0x318   : > { %2151 = vpow2.f32 %v946_v10 }
 0x31b   : > { %v2965_v11 = vpop.xlane.xlu0 %936  ;;  %v1137_v45 = vpop.permute.xlu2 %1136 }
 0x31c   : > { %v945_v12 = vsub.f32 %v930_v46, %v2965_v11 }
 0x31e   : > { %v2968_v13 = vpop.eup %2151  ;;  %v948_v14 = vmul.f32 1.442695, %v945_v12 }
 0x31f   : > { %1879 = vmatmul.msk.f32.vlgmr.msra.gmra.mxu3 %vm714_vm3, %v2968_v13 }
 0x320   : > { %2153 = vpow2.f32 %v948_v14  ;;  %v2141_v14 = vld [vmem:[#allocation5 + $0x1] ss:$0 sm:$0xff] }
 0x321   : > { %2155 = vpow2.f32 %v723_v18 }
 0x322   : > { %2157 = vpow2.f32 %v822_v19 }
 0x323   : > { %v1496_v48 = vpop.permute.xlu2 %1495 }
 0x326   : > { %v2972_v16 = vpop.eup %2153 }
 0x327   : > { %1880 = vmatmul.msk.f32.gmra.mxu3 %vm714_vm3, %v2972_v16  ;;  %v2156_v20 = vpop.eup %2155 }
 0x328   : > { %v2976_v22 = vmul.f32 0.0, %v2156_v20  ;;  %v2979_v27 = vpop.eup %2157 }
 0x32e   : > { %v1384_v52 = vpop.permute.xlu0 %1383 }
 0x347   : > { %v766_v23 = vpop.f32.mrf.mxu2 }
 0x348   : > { %v772_v24 = vadd.f32 %v766_v23, %v2976_v22  ;;  %v2142_v23 = vld [vmem:[#allocation5] ss:$0 sm:$0xff] }
 0x34a   : > { %v2982_v28 = vmul.f32 %v2979_v27, %v772_v24 }
 0x34f   : > { %v769_v30 = vpop.f32.mrf.mxu2 }
 0x357   : > { %v809_v31 = vpop.f32.mrf.mxu2 }
 0x358   : > { %v810_v32 = vadd.f32 %v2915_v36, %v809_v31  ;;  %v722_v36 = vsub.f32 -inf, %v2932_v51 }
 0x35a   : > { %v815_v33 = vsel %vm714_vm3, %v810_v32, -inf  ;;  %v725_v37 = vmul.f32 1.442695, %v722_v36  ;;  %v2143_v36 = vld [vmem:[#allocation5 + $0x1] ss:$0 sm:$0xff] }
 0x35b   : > { %816 = vmax.xlane.f32.xlu1 %v815_v33 }
 0x35c   : > { %2159 = vpow2.f32 %v725_v37 }
 0x35f   : > { %v3027_v53 = vpop.f32.mrf.mxu2 }
 0x362   : > { %v2160_v42 = vpop.eup %2159 }
 0x374   : > { %1134 = vrot.lane.b32.xlu1 %v2878_v21, %s2550_s23 }
 0x37c   : > { %1385 = vrot.lane.b32.xlu1 %v2849_v0, %s2551_s26 }
 0x384   : > { %1493 = vrot.lane.b32.xlu1 %v2867_v15, %s2551_s26  ;;  %v2998_v15 = vmul.f32 0.0, %v2160_v42 }
 0x386   : > { %v773_v43 = vadd.f32 %v769_v30, %v2998_v15 }
 0x3a2   : > { %v3029_v56 = vpop.f32.mrf.mxu3 }
 0x3aa   : > { %v3033_v60 = vpop.f32.mrf.mxu3 }
 0x3ce   : > { %v817_v38 = vpop.xlane.xlu1 %816 }
 0x3cf   : > { %v819_v39 = vmax.f32 %v2932_v51, %v817_v38 }
 0x3d1   : > { %v821_v21 = vsub.f32 %v2932_v51, %v819_v39  ;;  %v827_v40 = vsub.f32 %v810_v32, %v819_v39 }
 0x3d3   : > { %v824_v41 = vmul.f32 1.442695, %v821_v21  ;;  %v830_v0 = vmul.f32 1.442695, %v827_v40 }
 0x3d5   : > { %2161 = vpow2.f32 %v824_v41 }
 0x3d6   : > { %2163 = vpow2.f32 %v830_v0 }
 0x3db   : > { %v3001_v44 = vpop.eup %2161 }
 0x3dc   : > { %v3003_v46 = vpop.eup %2163  ;;  %v843_v47 = vmul.f32 %v3001_v44, %v773_v43 }
 0x3dd   : > { %1874 = vmatmul.msk.f32.gmra.mxu2 %vm714_vm3, %v3003_v46 }
 0x3e5   : > { %1883 = vmatmul.msk.f32.vlgmr.msrb.gmra.mxu2 %vm678_vm2, %v2894_v25  ;;  %v1378_v25 = vpop.permute.xlu2 %1377 }
 0x3e6   : > { %v1135_v49 = vpop.permute.xlu1 %1134  ;;  %1905 = vmatpush.xpose.msk.msrb.mxu2 %vm678_vm2, %v1496_v48 }
 0x3e7   : > { %1889 = vmatmul.msk.f32.vlgmr.msrb.gmra.mxu3 %vm678_vm2, %v1135_v49 }
 0x3ed   : > { %1884 = vmatmul.msk.f32.gmra.mxu2 %vm678_vm2, %v2898_v26  ;;  %v1380_v26 = vpop.permute.xlu0 %1379 }
 0x3ee   : > { %v1386_v51 = vpop.permute.xlu1 %1385 }
 0x3ef   : > { %1890 = vmatmul.msk.f32.gmra.mxu3 %vm678_vm2, %v1137_v45 }
 0x3f0   : > { %1899 = vmatpush.xpose.msk.msra.mxu3 %vm678_vm2, %v1386_v51 }
 0x3f4   : > { %1900 = vmatpush.xpose.msk.msra.mxu3 %vm678_vm2, %v1384_v52 }
 0x3f5   : > { %1895 = vmatmul.msk.f32.vlgmr.msra.gmra.mxu2 %vm678_vm2, %v1135_v49  ;;  %v2112_v0 = vpop.permute.xlu0 %2111  ;;  %v938_v49 = vsub.f32 -inf, %v2962_v8 }
 0x3f6   : > { %v1494_v55 = vpop.permute.xlu1 %1493  ;;  %v2114_v42 = vunpack.i.h.bf16 %v2112_v0  ;;  %v2113_v43 = vunpack.i.l.bf16 %v2112_v0 }
 0x3f7   : > { %1901 = vmatmul.msk.f32.vlgmr.msra.gmra.mxu3 %vm678_vm2, %v1378_v25  ;;  %1906 = vmatpush.xpose.msk.msrb.mxu2 %vm678_vm2, %v1494_v55 }
 0x3f8   : > { %1098 = vmatpush.msra.mxu1 %v2113_v43 }
 0x3fa   : > { %1099 = vmatpush.msra.mxu1 %v2114_v42 }
 0x3fd   : > { %1896 = vmatmul.msk.f32.gmra.mxu2 %vm678_vm2, %v1137_v45  ;;  %v952_v45 = vsel %vm714_vm3, %v2968_v13, 0.0 }
 0x3ff   : > { %1902 = vmatmul.msk.f32.gmra.mxu3 %vm678_vm2, %v1380_v26 }
 0x405   : > { %1907 = vmatmul.msk.f32.vlgmr.msrb.gmra.mxu2 %vm678_vm2, %v1378_v25 }
 0x40d   : > { %1908 = vmatmul.msk.f32.gmra.mxu2 %vm678_vm2, %v1380_v26 }
 0x460   : > { %v870_v57 = vpop.f32.mrf.mxu2 }
 0x461   : > { %v3031_v58 = vadd.f32 %v870_v57, %v843_v47 }
 0x468   : > { %v1032_v1 = vpop.f32.mrf.mxu2 }
 0x469   : > { %v3035_v2 = vadd.f32 %v2139_v61, %v1032_v1 }
 0x46a   : > { %v1169_v3 = vpop.f32.mrf.mxu3 }
 0x46b   : > { %v1170_v4 = vadd.f32 %v2140_v62, %v1169_v3  ;;  %v1038_v5 = vsel %vm714_vm3, %v3035_v2, -inf }
 0x46c   : > { %1039 = vmax.xlane.f32.xlu1 %v1038_v5 }
 0x46d   : > { %v1175_v6 = vsel %vm714_vm3, %v1170_v4, -inf }
 0x46e   : > { %1176 = vmax.xlane.f32.xlu0 %v1175_v6 }
 0x470   : > { %v1035_v7 = vpop.f32.mrf.mxu2 }
 0x471   : > { %v3044_v18 = vadd.f32 %v2139_v61, %v1035_v7 }
 0x472   : > { %v1172_v9 = vpop.f32.mrf.mxu3 }
 0x473   : > { %v3040_v10 = vadd.f32 %v2140_v62, %v1172_v9  ;;  %v1041_v24 = vsel %vm714_vm3, %v3044_v18, -inf }
 0x475   : > { %v1178_v12 = vsel %vm714_vm3, %v3040_v10, -inf }
 0x476   : > { %1179 = vmax.xlane.f32.xlu2 %v1178_v12 }
 0x478   : > { %v1275_v17 = vpop.f32.mrf.mxu2 }
 0x479   : > { %v3046_v19 = vadd.f32 %v2141_v14, %v1275_v17 }
 0x47a   : > { %v1412_v30 = vpop.f32.mrf.mxu3 }
 0x47b   : > { %v1281_v20 = vsel %vm714_vm3, %v3046_v19, -inf  ;;  %v3052_v31 = vadd.f32 %v2142_v23, %v1412_v30 }
 0x47c   : > { %1282 = vmax.xlane.f32.xlu1 %v1281_v20 }
 0x47d   : > { %v1418_v33 = vsel %vm714_vm3, %v3052_v31, -inf }
 0x47e   : > { %1042 = vmax.xlane.f32.xlu2 %v1041_v24 }
 0x480   : > { %v1278_v32 = vpop.f32.mrf.mxu2 }
 0x481   : > { %v3057_v34 = vadd.f32 %v2141_v14, %v1278_v32 }
 0x482   : > { %2121 = vrot.lane.b32.xlu0 %v2110_v50, %s2550_s23 }
 0x483   : > { %v1284_v37 = vsel %vm714_vm3, %v3057_v34, -inf }
 0x486   : > { %1419 = vmax.xlane.f32.xlu2 %v1418_v33 }
 0x488   : > { %v1518_v35 = vpop.f32.mrf.mxu2 }
 0x489   : > { %v3063_v38 = vadd.f32 %v2143_v36, %v1518_v35 }
 0x48a   : > { %2126 = vrot.lane.b32.xlu0 %v2902_v29, %s2551_s26 }
 0x48b   : > { %v1524_v39 = vsel %vm714_vm3, %v3063_v38, -inf }
 0x48e   : > { %1285 = vmax.xlane.f32.xlu2 %v1284_v37 }
 0x490   : > { %v1521_v21 = vpop.f32.mrf.mxu2 }
 0x491   : > { %v3070_v40 = vadd.f32 %v2143_v36, %v1521_v21 }
 0x492   : > { %2131 = vrot.lane.b32.xlu0 %v2110_v50, %s2551_s26  ;;  %v940_v50 = vmul.f32 1.442695, %v938_v49 }
 0x493   : > { %v1527_v41 = vsel %vm714_vm3, %v3070_v40, -inf }
 0x494   : > { %2165 = vpow2.f32 %v940_v50 }
 0x495   : > { %2116 = vrot.lane.b32.xlu1 %v2902_v29, %s2550_s23  ;;  %v1415_v29 = vpop.f32.mrf.mxu3 }
 0x496   : > { %1525 = vmax.xlane.f32.xlu2 %v1524_v39  ;;  %v3076_v47 = vadd.f32 %v2142_v23, %v1415_v29 }
 0x498   : > { %v1421_v48 = vsel %vm714_vm3, %v3076_v47, -inf }
 0x49a   : > { %v2166_v1 = vpop.eup %2165 }
 0x49b   : > { %v3087_v3 = vmul.f32 0.0, %v2166_v1 }
 0x49e   : > { %1528 = vmax.xlane.f32.xlu2 %v1527_v41 }
 0x4a6   : > { %953 = vadd.xlane.f32.xlu2 %v952_v45 }
 0x4bf   : > { %1422 = vmax.xlane.f32.xlu1 %v1421_v48 }
 0x4df   : > { %v1040_v51 = vpop.xlane.xlu1 %1039 }
 0x4e0   : > { %v1044_v52 = vmax.f32 %v2962_v8, %v1040_v51 }
 0x4e1   : > { %v3082_v25 = vpop.xlane.xlu0 %1176 }
 0x4e2   : > { %v1046_v55 = vsub.f32 %v2962_v8, %v1044_v52  ;;  %v1052_v13 = vsub.f32 %v3035_v2, %v1044_v52  ;;  %v1187_v26 = vsub.f32 %v1170_v4, %v3082_v25  ;;  %v997_v8 = vadd.f32 %v3029_v56, %v3087_v3 }
 0x4e4   : > { %v1048_v57 = vmul.f32 1.442695, %v1046_v55  ;;  %v1054_v61 = vmul.f32 1.442695, %v1052_v13  ;;  %v1189_v62 = vmul.f32 1.442695, %v1187_v26 }
 0x4e6   : > { %2167 = vpow2.f32 %v1048_v57 }
 0x4e7   : > { %2169 = vpow2.f32 %v1054_v61 }
 0x4e8   : > { %2171 = vpow2.f32 %v1189_v62 }
 0x4e9   : > { %v3089_v5 = vpop.xlane.xlu2 %1179 }
 0x4ea   : > { %v1188_v6 = vsub.f32 %v3040_v10, %v3089_v5 }
 0x4ec   : > { %v3095_v2 = vpop.eup %2167  ;;  %v1191_v4 = vmul.f32 1.442695, %v1188_v6 }
 0x4ed   : > { %v3097_v7 = vpop.eup %2169  ;;  %v3100_v9 = vmul.f32 %v3095_v2, %v997_v8 }
 0x4ee   : > { %v2172_v12 = vpop.eup %2171  ;;  %2173 = vpow2.f32 %v1191_v4  ;;  %1885 = vmatmul.msk.f32.vlgmr.msra.gmra.mxu1 %vm714_vm3, %v3097_v7 }
 0x4ef   : > { %v1283_v14 = vpop.xlane.xlu1 %1282  ;;  %v1195_v17 = vsel %vm714_vm3, %v2172_v12, 0.0 }
 0x4f0   : > { %v3106_v10 = vmax.f32 %v3082_v25, %v1283_v14  ;;  %1196 = vadd.xlane.f32.xlu0 %v1195_v17  ;;  %v955_v17 = vsel %vm714_vm3, %v2972_v16, 0.0  ;;  %v834_v16 = vsel %vm714_vm3, %v2955_v63, 0.0 }
 0x4f1   : > { %v1043_v56 = vpop.xlane.xlu2 %1042 }
 0x4f2   : > { %v1289_v20 = vsub.f32 %v3082_v25, %v3106_v10  ;;  %v3111_v23 = vmax.f32 %v2965_v11, %v1043_v56  ;;  %v1295_v39 = vsub.f32 %v3046_v19, %v3106_v10 }
 0x4f4   : > { %v2174_v24 = vpop.eup %2173  ;;  %v1053_v30 = vsub.f32 %v3044_v18, %v3111_v23  ;;  %v2122_v32 = vpop.permute.xlu0 %2121  ;;  %v1297_v42 = vmul.f32 1.442695, %v1295_v39 }
 0x4f5   : > { %v1198_v33 = vsel %vm714_vm3, %v2174_v24, 0.0  ;;  %v2124_v35 = vunpack.i.h.bf16 %v2122_v32  ;;  %v2123_v36 = vunpack.i.l.bf16 %v2122_v32 }
 0x4f6   : > { %v1056_v37 = vmul.f32 1.442695, %v1053_v30  ;;  %1199 = vadd.xlane.f32.xlu1 %v1198_v33  ;;  %v735_v33 = vsel %vm714_vm3, %v2937_v54, 0.0 }
 0x4f7   : > { %1341 = vmatpush.msrb.mxu1 %v2123_v36 }
 0x4f8   : > { %2175 = vpow2.f32 %v1056_v37 }
 0x4f9   : > { %v3118_v21 = vpop.xlane.xlu2 %1419  ;;  %1342 = vmatpush.msrb.mxu1 %v2124_v35  ;;  %v837_v35 = vsel %vm714_vm3, %v3003_v46, 0.0 }
 0x4fa   : > { %v1430_v41 = vsub.f32 %v3052_v31, %v3118_v21 }
 0x4fc   : > { %v1432_v0 = vmul.f32 1.442695, %v1430_v41  ;;  %v2127_v18 = vpop.permute.xlu0 %2126 }
 0x4fd   : > { %v2128_v6 = vunpack.i.l.bf16 %v2127_v18  ;;  %v2129_v14 = vunpack.i.h.bf16 %v2127_v18 }
 0x4fe   : > { %2177 = vpow2.f32 %v1432_v0  ;;  %v2176_v43 = vpop.eup %2175 }
 0x4ff   : > { %1886 = vmatmul.msk.f32.gmra.mxu1 %vm714_vm3, %v2176_v43  ;;  %v1063_v45 = vsel %vm714_vm3, %v2176_v43, 0.0  ;;  %2179 = vpow2.f32 %v1297_v42  ;;  %v1060_v42 = vsel %vm714_vm3, %v3097_v7, 0.0  ;;  %v738_v7 = vsel %vm714_vm3, %v2949_v59, 0.0 }
 0x500   : > { %1064 = vadd.xlane.f32.xlu1 %v1063_v45  ;;  %v1424_v59 = vsub.f32 -inf, %v3118_v21 }
 0x501   : > { %v1286_v29 = vpop.xlane.xlu2 %1285 }
 0x502   : > { %v3125_v19 = vmax.f32 %v3089_v5, %v1286_v29 }
 0x504   : > { %v2178_v48 = vpop.eup %2177  ;;  %v1290_v49 = vsub.f32 %v3089_v5, %v3125_v19  ;;  %v1296_v31 = vsub.f32 %v3057_v34, %v3125_v19  ;;  %v2132_v50 = vpop.permute.xlu0 %2131 }
 0x505   : > { %v1438_v51 = vsel %vm714_vm3, %v2178_v48, 0.0  ;;  %v2134_v52 = vunpack.i.h.bf16 %v2132_v50  ;;  %v2133_v55 = vunpack.i.l.bf16 %v2132_v50  ;;  %v2180_v26 = vpop.eup %2179  ;;  %v1291_v50 = vmul.f32 1.442695, %v1289_v20 }
 0x506   : > { %v1299_v13 = vmul.f32 1.442695, %v1296_v31  ;;  %1439 = vadd.xlane.f32.xlu2 %v1438_v51  ;;  %v1303_v43 = vsel %vm714_vm3, %v2180_v26, 0.0 }
 0x507   : > { %v2117_v57 = vpop.permute.xlu1 %2116  ;;  %1584 = vmatpush.msra.mxu1 %v2133_v55 }
 0x508   : > { %v2118_v61 = vunpack.i.l.bf16 %v2117_v57  ;;  %1897 = vmatmul.msk.f32.vlgmr.msrb.gmra.mxu1 %vm714_vm3, %v2180_v26  ;;  %2181 = vpow2.f32 %v1299_v13  ;;  %v2119_v1 = vunpack.i.h.bf16 %v2117_v57 }
 0x509   : > { %v1526_v62 = vpop.xlane.xlu2 %1525  ;;  %1585 = vmatpush.msra.mxu1 %v2134_v52  ;;  %v1293_v52 = vmul.f32 1.442695, %v1290_v49  ;;  %v1426_v49 = vmul.f32 1.442695, %v1424_v59 }
 0x50a   : > { %1231 = vmatpush.msra.mxu0 %v2118_v61  ;;  %v3134_v34 = vmax.f32 %v3118_v21, %v1526_v62 }
 0x50c   : > { %v1532_v8 = vsub.f32 %v3118_v21, %v3134_v34  ;;  %v1538_v4 = vsub.f32 %v3063_v38, %v3134_v34  ;;  %1232 = vmatpush.msra.mxu0 %v2119_v1 }
 0x50d   : > { %1891 = vmatmul.msk.f32.vlgmr.msra.gmra.mxu0 %vm714_vm3, %v2172_v12 }
 0x50e   : > { %v1540_v56 = vmul.f32 1.442695, %v1538_v4  ;;  %956 = vadd.xlane.f32.xlu2 %v955_v17  ;;  %1474 = vmatpush.msrb.mxu0 %v2128_v6  ;;  %v2182_v30 = vpop.eup %2181 }
 0x50f   : > { %v1306_v32 = vsel %vm714_vm3, %v2182_v30, 0.0 }
 0x510   : > { %1898 = vmatmul.msk.f32.gmra.mxu1 %vm714_vm3, %v2182_v30  ;;  %1475 = vmatpush.msrb.mxu0 %v2129_v14  ;;  %2183 = vpow2.f32 %v1540_v56  ;;  %v1534_v30 = vmul.f32 1.442695, %v1532_v8 }
 0x511   : > { %1307 = vadd.xlane.f32.xlu0 %v1306_v32 }
 0x515   : > { %1892 = vmatmul.msk.f32.gmra.mxu0 %vm714_vm3, %v2174_v24  ;;  %v1529_v24 = vpop.xlane.xlu2 %1528 }
 0x516   : > { %v2184_v38 = vpop.eup %2183 }
 0x517   : > { %v1546_v12 = vsel %vm714_vm3, %v2184_v38, 0.0 }
 0x518   : > { %1909 = vmatmul.msk.f32.vlgmr.msra.gmra.mxu1 %vm714_vm3, %v2184_v38  ;;  %1547 = vadd.xlane.f32.xlu1 %v1546_v12 }
 0x519   : > { %835 = vadd.xlane.f32.xlu0 %v834_v16 }
 0x51d   : > { %1903 = vmatmul.msk.f32.vlgmr.msrb.gmra.mxu0 %vm714_vm3, %v2178_v48  ;;  %v1182_v48 = vsub.f32 -inf, %v3089_v5  ;;  %v1047_v5 = vsub.f32 %v2965_v11, %v3111_v23  ;;  %v3195_v32 = vpop.xlane.xlu2 %953 }
 0x51f   : > { %v1185_v31 = vmul.f32 1.442695, %v1182_v48  ;;  %v1050_v56 = vmul.f32 1.442695, %v1047_v5 }
 0x520   : > { %736 = vadd.xlane.f32.xlu1 %v735_v33 }
 0x528   : > { %838 = vadd.xlane.f32.xlu1 %v837_v35 }
 0x532   : > { %v3155_v36 = vpop.xlane.xlu1 %1422 }
 0x533   : > { %v1431_v37 = vsub.f32 %v3076_v47, %v3155_v36  ;;  %v3160_v63 = vmax.f32 %v3155_v36, %v1529_v24 }
 0x535   : > { %v1434_v39 = vmul.f32 1.442695, %v1431_v37  ;;  %v1533_v41 = vsub.f32 %v3155_v36, %v3160_v63  ;;  %v1539_v54 = vsub.f32 %v3070_v40, %v3160_v63  ;;  %v1181_v40 = vsub.f32 -inf, %v3082_v25 }
 0x536   : > { %v939_v25 = vsub.f32 -inf, %v2965_v11 }
 0x537   : > { %2185 = vpow2.f32 %v1434_v39  ;;  %v1542_v0 = vmul.f32 1.442695, %v1539_v54  ;;  %v1183_v45 = vmul.f32 1.442695, %v1181_v40 }
 0x538   : > { %v942_v1 = vmul.f32 1.442695, %v939_v25 }
 0x539   : > { %2187 = vpow2.f32 %v1542_v0 }
 0x53a   : > { %2189 = vpow2.f32 %v1183_v45 }
 0x53b   : > { %2191 = vpow2.f32 %v1185_v31 }
 0x53c   : > { %2193 = vpow2.f32 %v1291_v50 }
 0x53d   : > { %v2186_v46 = vpop.eup %2185  ;;  %2195 = vpow2.f32 %v1293_v52 }
 0x53e   : > { %1904 = vmatmul.msk.f32.gmra.mxu0 %vm714_vm3, %v2186_v46  ;;  %v1441_v18 = vsel %vm714_vm3, %v2186_v46, 0.0  ;;  %2197 = vpow2.f32 %v942_v1 }
 0x53f   : > { %1442 = vadd.xlane.f32.xlu2 %v1441_v18  ;;  %v2188_v47 = vpop.eup %2187  ;;  %2199 = vpow2.f32 %v1426_v49 }
 0x540   : > { %1910 = vmatmul.msk.f32.gmra.mxu1 %vm714_vm3, %v2188_v47  ;;  %v1549_v29 = vsel %vm714_vm3, %v2188_v47, 0.0  ;;  %v2190_v51 = vpop.eup %2189  ;;  %2201 = vpow2.f32 %v1050_v56 }
 0x541   : > { %v1193_v55 = vmul.f32 0.0, %v2190_v51  ;;  %v2192_v26 = vpop.eup %2191  ;;  %2203 = vpow2.f32 %v1534_v30 }
 0x542   : > { %v2194_v61 = vpop.eup %2193  ;;  %v1194_v20 = vmul.f32 0.0, %v2192_v26 }
 0x543   : > { %v2196_v4 = vpop.eup %2195 }
 0x544   : > { %v2198_v38 = vpop.eup %2197 }
 0x545   : > { %v2200_v12 = vpop.eup %2199  ;;  %v951_v11 = vmul.f32 0.0, %v2198_v38 }
 0x546   : > { %v1436_v23 = vmul.f32 0.0, %v2200_v12  ;;  %v2202_v16 = vpop.eup %2201  ;;  %v1536_v12 = vmul.f32 1.442695, %v1533_v41 }
 0x547   : > { %1061 = vadd.xlane.f32.xlu2 %v1060_v42  ;;  %v2204_v24 = vpop.eup %2203 }
 0x54f   : > { %1304 = vadd.xlane.f32.xlu2 %v1303_v43 }
 0x557   : > { %1550 = vadd.xlane.f32.xlu2 %v1549_v29 }
 0x55f   : > { %739 = vadd.xlane.f32.xlu2 %v738_v7 }
 0x563   : > { %v1197_v13 = vpop.xlane.xlu0 %1196 }
 0x564   : > { %v1201_v57 = vadd.f32 %v1197_v13, %v1193_v55 }
 0x566   : > { %v3184_v10 = vmul.f32 %v2194_v61, %v1201_v57 }
 0x569   : > { %v1200_v62 = vpop.xlane.xlu1 %1199 }
 0x56a   : > { %v1202_v6 = vadd.f32 %v1200_v62, %v1194_v20 }
 0x56b   : > { %v1101_v19 = vpop.f32.mrf.mxu1 }
 0x56c   : > { %v3190_v14 = vadd.f32 %v1101_v19, %v3100_v9  ;;  %v1302_v17 = vmul.f32 %v2196_v4, %v1202_v6  ;;  %v998_v9 = vadd.f32 %v3033_v60, %v951_v11 }
 0x56e   : > { %v1069_v37 = vmul.f32 %v2202_v16, %v998_v9 }
 0x573   : > { %v1065_v8 = vpop.xlane.xlu1 %1064 }
 0x579   : > { %v1440_v33 = vpop.xlane.xlu2 %1439 }
 0x57a   : > { %v1444_v35 = vadd.f32 %v1440_v33, %v1436_v23  ;;  %v958_v33 = vadd.f32 %v3195_v32, %v3087_v3 }
 0x57c   : > { %v1544_v39 = vmul.f32 %v2204_v24, %v1444_v35  ;;  %v1104_v54 = vpop.f32.mrf.mxu1  ;;  %v1058_v35 = vmul.f32 %v3095_v2, %v958_v33 }
 0x57d   : > { %v1108_v0 = vadd.f32 %v1104_v54, %v1069_v37 }
 0x581   : > { %v957_v21 = vpop.xlane.xlu2 %956 }
 0x582   : > { %v959_v34 = vadd.f32 %v957_v21, %v951_v11 }
 0x584   : > { %v1059_v46 = vmul.f32 %v2202_v16, %v959_v34  ;;  %v1308_v43 = vpop.xlane.xlu0 %1307 }
 0x585   : > { %v1344_v47 = vpop.f32.mrf.mxu1  ;;  %v1310_v60 = vadd.f32 %v1308_v43, %v1302_v17 }
 0x586   : > { %v1067_v18 = vadd.f32 %v1065_v8, %v1059_v46 }
 0x588   : > { %2205 = vrcp.f32 %v1067_v18 }
 0x589   : > { %2207 = vrcp.f32 %v1310_v60  ;;  %v1627_v60 = vld [vmem:[#allocation15 + $0x78] sm:$0xff] }
 0x58a   : > { %v1234_v42 = vpop.f32.mrf.mxu0  ;;  %1632 = vmatpush.msrb.mxu3 %v1627_v60 }
 0x58b   : > { %v1240_v40 = vadd.f32 %v1234_v42, %v1193_v55  ;;  %v1548_v45 = vpop.xlane.xlu1 %1547 }
 0x58c   : > { %v1552_v57 = vadd.f32 %v1548_v45, %v1544_v39  ;;  %v836_v1 = vpop.xlane.xlu0 %835 }
 0x58d   : > { %v1311_v29 = vmul.f32 %v2194_v61, %v1240_v40  ;;  %v1347_v51 = vpop.f32.mrf.mxu1 }
 0x58e   : > { %v2206_v48 = vpop.eup %2205  ;;  %2209 = vrcp.f32 %v1552_v57  ;;  %v1616_v57 = vld [vmem:[#allocation15 + $0x20] sm:$0xff] }
 0x58f   : > { %v1112_v31 = vmul.f32 %v2206_v48, %v1108_v0  ;;  %v2208_v62 = vpop.eup %2207  ;;  %v1350_v34 = vadd.f32 %v1344_v47, %v1311_v29 }
 0x592   : > { %v1237_v50 = vpop.f32.mrf.mxu0 }
 0x593   : > { %v1241_v7 = vadd.f32 %v1237_v50, %v1194_v20  ;;  %v737_v52 = vpop.xlane.xlu1 %736  ;;  %v1625_v50 = vld [vmem:[#allocation15 + $0x68] sm:$0xff] }
 0x594   : > { %v741_v26 = vadd.f32 %v737_v52, %v2976_v22  ;;  %v2210_v17 = vpop.eup %2209  ;;  %v1425_v22 = vsub.f32 -inf, %v3155_v36  ;;  %v1620_v52 = vld [vmem:[#allocation15 + $0x40] sm:$0xff] }
 0x595   : > { %v1312_v13 = vmul.f32 %v2196_v4, %v1241_v7  ;;  %v1587_v49 = vpop.f32.mrf.mxu1  ;;  %v873_v4 = vadd.f32 %v3027_v53, %v2982_v28  ;;  %v1622_v7 = vld [vmem:[#allocation15 + $0x50] sm:$0xff] }
 0x596   : > { %v832_v59 = vmul.f32 %v2979_v27, %v741_v26  ;;  %v1428_v38 = vmul.f32 1.442695, %v1425_v22  ;;  %v1617_v26 = vld [vmem:[#allocation15 + $0x28] sm:$0xff] }
 0x597   : > { %v1351_v25 = vadd.f32 %v1347_v51, %v1312_v13  ;;  %v1621_v51 = vld [vmem:[#allocation15 + $0x48] sm:$0xff]  ;;  %v1619_v13 = vld [vmem:[#allocation15 + $0x38] sm:$0xff] }
 0x598   : > { %v840_v55 = vadd.f32 %v836_v1, %v832_v59  ;;  %v1614_v59 = vld [vmem:[#allocation15 + $0x10] sm:$0xff]  ;;  %v1612_v1 = vld [vmem:[#allocation15] sm:$0xff] }
 0x599   : > { %v1355_v6 = vmul.f32 %v2208_v62, %v1351_v25  ;;  %v1615_v25 = vld [vmem:[#allocation15 + $0x18] sm:$0xff]  ;;  %v1613_v62 = vld [vmem:[#allocation15 + $0x8] sm:$0xff] }
 0x59a   : > { %v1477_v61 = vpop.f32.mrf.mxu0  ;;  %2211 = vrcp.f32 %v840_v55 }
 0x59b   : > { %v1483_v5 = vadd.f32 %v1477_v61, %v1436_v23  ;;  %2213 = vpow2.f32 %v1428_v38  ;;  %v839_v45 = vpop.xlane.xlu1 %838 }
 0x59c   : > { %2215 = vpow2.f32 %v1536_v12 }
 0x59d   : > { %v1554_v19 = vmul.f32 %v2204_v24, %v1483_v5 }
 0x59f   : > { %v1593_v20 = vadd.f32 %v1587_v49, %v1554_v19 }
 0x5a0   : > { %v2212_v56 = vpop.eup %2211 }
 0x5a1   : > { %v1597_v30 = vmul.f32 %v2210_v17, %v1593_v20  ;;  %v877_v27 = vmul.f32 %v2212_v56, %v873_v4  ;;  %v2214_v11 = vpop.eup %2213  ;;  %v2144_v4 = vld [vmem:[%s3352_s28] ss:$0 sm:$0xff] }
 0x5a2   : > { %v1437_v23 = vmul.f32 0.0, %v2214_v11  ;;  %v2216_v53 = vpop.eup %2215 }
 0x5a3   : > { %1601 = vrot.lane.b32.xlu1 %v1597_v30, %s2549_s16  ;;  %879 = vst.msk [vmem:[#allocation4] sm:$0xff] %vm678_vm2, %v877_v27 }
 0x5b2   : > { %v1443_v16 = vpop.xlane.xlu2 %1442 }
 0x5b3   : > { %v1445_v28 = vadd.f32 %v1443_v16, %v1437_v23 }
 0x5b5   : > { %v1545_v9 = vmul.f32 %v2216_v53, %v1445_v28 }
 0x5ba   : > { %v1062_v24 = vpop.xlane.xlu2 %1061 }
 0x5bb   : > { %v1066_v37 = vadd.f32 %v1062_v24, %v1058_v35  ;;  %v1480_v39 = vpop.f32.mrf.mxu0 }
 0x5bc   : > { %v1484_v54 = vadd.f32 %v1480_v39, %v1437_v23 }
 0x5bd   : > { %2217 = vrcp.f32 %v1066_v37  ;;  %v1590_v46 = vpop.f32.mrf.mxu1 }
 0x5be   : > { %v1555_v0 = vmul.f32 %v2216_v53, %v1484_v54 }
 0x5c0   : > { %v1594_v18 = vadd.f32 %v1590_v46, %v1555_v0 }
 0x5c2   : > { %v1305_v36 = vpop.xlane.xlu2 %1304 }
 0x5c3   : > { %v2218_v63 = vpop.eup %2217  ;;  %v1309_v41 = vadd.f32 %v1305_v36, %v3184_v10 }
 0x5c4   : > { %v1111_v21 = vmul.f32 %v2218_v63, %v3190_v14 }
 0x5c5   : > { %2219 = vrcp.f32 %v1309_v41 }
 0x5c6   : > { %1115 = vrot.lane.b32.xlu0 %v1111_v21, %s2551_s26 }
 0x5ca   : > { %v1551_v3 = vpop.xlane.xlu2 %1550 }
 0x5cb   : > { %v2220_v32 = vpop.eup %2219  ;;  %v1553_v8 = vadd.f32 %v1551_v3, %v1545_v9 }
 0x5cc   : > { %v1354_v2 = vmul.f32 %v2220_v32, %v1350_v34 }
 0x5cd   : > { %2221 = vrcp.f32 %v1553_v8 }
 0x5ce   : > { %1358 = vrot.lane.b32.xlu2 %v1354_v2, %s2550_s23  ;;  %1117 = vrot.lane.b32.xlu0 %v1112_v31, %s2551_s26  ;;  %v1626_v31 = vld [vmem:[#allocation15 + $0x70] sm:$0xff] }
 0x5cf   : > { %1633 = vmatpush.msrb.mxu3 %v1626_v31 }
 0x5d1   : > { %1634 = vmatpush.msrb.mxu3 %v1625_v50 }
 0x5d2   : > { %v740_v42 = vpop.xlane.xlu2 %739 }
 0x5d3   : > { %v2222_v43 = vpop.eup %2221  ;;  %v742_v10 = vadd.f32 %v740_v42, %v2998_v15  ;;  %v1624_v15 = vld [vmem:[#allocation15 + $0x60] sm:$0xff] }
 0x5d4   : > { %v1598_v14 = vmul.f32 %v2222_v43, %v1594_v18  ;;  %1635 = vmatpush.msrb.mxu3 %v1624_v15 }
 0x5d5   : > { %v833_v40 = vmul.f32 %v3001_v44, %v742_v10  ;;  %v1623_v44 = vld [vmem:[#allocation15 + $0x58] sm:$0xff] }
 0x5d6   : > { %1360 = vrot.lane.b32.xlu2 %v1355_v6, %s2550_s23  ;;  %1603 = vrot.lane.b32.xlu0 %v1598_v14, %s2549_s16  ;;  %s1671_s16 = scalar_lea.hbm %s3354_s15, %s1914_s30 }
 0x5d7   : > { %v841_v47 = vadd.f32 %v839_v45, %v833_v40  ;;  %1636 = vmatpush.msrb.mxu3 %v1623_v44  ;;  %s1674_s6 = sshll.u32 %s1671_s16, 4  ;;  %s1675_s6 = int_to_ptr.hbm [resolvable:$true] %s1674_s6 }
 0x5d8   : > { %s2419_s23 = sshra.s32 %s1675_s6, 4  ;;  %s2420_s23 = int_to_ptr.hbm [resolvable:$true] %s2419_s23 }
 0x5d9   : > { %2223 = vrcp.f32 %v841_v47  ;;  %1637 = vmatpush.msrb.mxu3 %v1622_v7  ;;  %s2421_s26 = scalar_lea.hbm %s2420_s23, 16  ;;  %p2426_p13 = scmp.lt.s32.totalorder %s2420_s23, %s3355_s25 }
 0x5da   : > { %p2422_p1 = scmp.ne.s32.totalorder %s2420_s23, %s2421_s26  ;;  %p2427_p5 = scmp.lt.s32.totalorder %s2425_s8, %s2421_s26 }
 0x5db   : > { %1638 = vmatpush.msrb.mxu3 %v1621_v51 }
 0x5dc   : > { %p2423_p10 = pnand %p2422_p1, %p2757_p9  ;;  %p2428_p8 = por %p2427_p5, %p2426_p13 }
 0x5dd   : > { %1639 = vmatpush.msrb.mxu3 %v1620_v52 }
 0x5de   : > { %p2424_p12 = pneg %p2423_p10 }
 0x5df   : > { %v2224_v29 = vpop.eup %2223  ;;  %1640 = vmatpush.msrb.mxu3 %v1619_v13 }
 0x5e0   : > { %v878_v48 = vmul.f32 %v2224_v29, %v3031_v58  ;;  %v1618_v58 = vld [vmem:[#allocation15 + $0x30] sm:$0xff]  ;;  %p2429_p11 = pnand %p2428_p8, %p2424_p12 }
 0x5e1   : > { %1641 = vmatpush.msrb.mxu3 %v1618_v58 }
 0x5e2   : > { %880 = vst.msk [vmem:[#allocation4 + $0x8] sm:$0xff] %vm678_vm2, %v878_v48 }
 0x5e3   : > { %1642 = vmatpush.msrb.mxu3 %v1617_v26 }
 0x5e5   : > { %1643 = vmatpush.msrb.mxu3 %v1616_v57 }
 0x5e7   : > { %1644 = vmatpush.msrb.mxu3 %v1615_v25 }
 0x5e9   : > { %1645 = vmatpush.msrb.mxu3 %v1614_v59 }
 0x5eb   : > { %1646 = vmatpush.msrb.mxu3 %v1613_v62 }
 0x5ed   : > { %1647 = vmatpush.msrb.mxu3 %v1612_v1 }
 0x615   : > { %v1602_v61 = vpop.permute.xlu1 %1601 }
 0x628   : > { %v1359_v55 = vpop.permute.xlu2 %1358 }
 0x630   : > { %v1361_v19 = vpop.permute.xlu2 %1360 }
 0x638   : > { %v1116_v6 = vpop.permute.xlu0 %1115 }
 0x639   : > { %1122 = vst.msk [vmem:[#allocation4] sm:$0xff] %vm1121_vm4, %v1116_v6 }
 0x63a   : > { %1365 = vst.msk [vmem:[#allocation4] sm:$0xff] %vm1364_vm5, %v1359_v55 }
 0x63b   : > { %1608 = vst.msk [vmem:[#allocation4] sm:$0xff] %vm1607_vm6, %v1602_v61 }
 0x640   : > { %v1118_v5 = vpop.permute.xlu0 %1117 }
 0x641   : > { %1123 = vst.msk [vmem:[#allocation4 + $0x8] sm:$0xff] %vm1121_vm4, %v1118_v5 }
 0x642   : > { %1366 = vst.msk [vmem:[#allocation4 + $0x8] sm:$0xff] %vm1364_vm5, %v1361_v19  ;;  %v1610_v49 = vld [vmem:[#allocation4] sm:$0xff] }
 0x643   : > { %1648 = vmatmul.f32.vlgmr.msrb.gmra.mxu3 %v1610_v49 }
 0x648   : > { %v1604_v20 = vpop.permute.xlu0 %1603 }
 0x649   : > { %1609 = vst.msk [vmem:[#allocation4 + $0x8] sm:$0xff] %vm1607_vm6, %v1604_v20 }
 0x650   : > { %v1611_v17 = vld [vmem:[#allocation4 + $0x8] sm:$0xff] }
 0x651   : > { %1651 = vmatmul.f32.gmra.mxu3 %v1611_v17 }
 0x6c6   : > { %v1649_v22 = vpop.f32.mrf.mxu3 }
 0x6c7   : > { %v1650_v56 = vadd.f32 %v2144_v4, %v1649_v22 }
 0x6c9   : > { %1655 = vst [vmem:[%s2837_s21] sm:$0xff] %v1650_v56 }
 0x6d4   : > { %v1652_v30 = vpop.f32.mrf.mxu3 }
 0x6d5   : > { %v1653_v27 = vadd.f32 %v2144_v4, %v1652_v30 }
 0x6d7   : > { %1656 = vst [vmem:[%s2837_s21 + $0x8] sm:$0xff] %v1653_v27 }
 0x6d8   : > { %2432 = shalt.err (!%p2429_p11)
}
 0x6d9   : > { %s2552_s27 = smov 128   ;;  %s2553_s21 = smov 8  }
 0x6da   : > { %1970 = dma.vmem_to_hbm [thread:$0]  (%p2757_p9), %s1673_s20, 256, %s1675_s6, %s1658_s17, %s2552_s27, %s2552_s27, %s2553_s21  }
 0x6db PF: > { %s3356_s3 = sld [smem:[#allocation24_spill]]  ;;  %p2003_p0 = scmp.ge.s32.totalorder %s2539_s19, 2 }
 0x6dd   : > { %p1993_p2 = pnand %p2003_p0, %p2769_p7 }
 0x6df   : > { %p1994_p3 = pneg %p1993_p2 }
 0x6e1   : > { %s1689_s1 = sand.u32 1, %s3356_s3  }
 0x6e2   : > { %s1690_s30 = scalar_lea.sflag [#allocation8], %s1689_s1 }
 0x6e3   : > { %2494 = dma.done.wait (%p1994_p3), %s1690_s30, 256  }
 0x6e4   : > { %2496 = vsyncadd (%p1994_p3), %s1690_s30, 4294967040  ;;  %s30_s19 = sadd.s32 1, %s2539_s19   ;;  %s3358_s30 = sld [smem:[#allocation23_spill]] }
 0x6e5   : > { %p27_p6 = scmp.ge.s32.totalorder %s30_s19, 6   ;;  %s3359_s15 = sld [smem:[#allocation27_spill]] }
 0x6e6   : > { %s3360_s17 = sld [smem:[#allocation30_spill]]  ;;  %s3362_s10 = smov %s2507_s11 }
 0x6e7   : > { %s3361_s22 = sld [smem:[#allocation32_spill]]  ;;  %s3363_s11 = smov %s2779_s7 }
 0x6e8   : > { %s3364_s12 = smov %s2515_s13  ;;  %s3365_s13 = smov %s2519_s14 }
 0x6e9   : > { %s3366_s14 = smov %s2782_s4  ;;  %s3367_s16 = smov %s2535_s18 }
 0x6ea   :  { %29 = sbr.rel (!%p27_p6) target bundleno = 22 (0x16), region = 143 }
 0x6ed   : > { %s3368_s18 = smov %s3361_s22 }
 0x6ef   :  { %1696 = vsyncpa [#allocation7], 1 }
 0x6f0   :  { %1698 = vsyncpa [#allocation7 + $0x1], 1 }
 0x6f1   :  { %1699 = vsyncpa [#allocation10], 1 }
 0x6f2   :  { %1701 = vsyncpa [#allocation10 + $0x1], 1 }
 0x6f3   :  { %1702 = vsyncpa [#allocation13], 1 }
 0x6f4   :  { %1703 = vsyncpa [#allocation16], 1 }
 0x6f5   :  { %1704 = vsyncpa [#allocation8], 1 }
 0x6f6   :  { %1706 = vsyncpa [#allocation8 + $0x1], 1 }

</bundles_post_ra>
